<compile_context>
chip_gen: v6e
topology: v6e:2x2x1
jax: 0.10.0
libtpu: 0.0.40
codegen_flags: <defaults>
</compile_context>

<pallas_src>
import jax
import jax.numpy as jnp
from jax.experimental import pallas as pl
from jax.experimental.pallas import tpu as pltpu


def _make_conv1x1_relu_kernel(use_bf16):
    mm_dtype = jnp.bfloat16 if use_bf16 else None

    def kernel(x_ref, w_ref, b_ref, o_ref):
        # x_ref: (1, Cin, HW)   w_ref: (TCO, Cin)   b_ref: (TCO, 1)
        # o_ref: (1, TCO, HW)
        w = w_ref[...]
        x = x_ref[0]
        if mm_dtype is not None:
            # In-kernel cast: VPU work hidden under the DMA pipeline, avoids
            # extra HBM read/write of standalone astype ops in the wrapper.
            w = w.astype(mm_dtype)
            x = x.astype(mm_dtype)
        acc = jnp.dot(w, x, preferred_element_type=jnp.float32)
        # bias broadcast over columns (lanes) + ReLU, fused into the store.
        o_ref[0] = jnp.maximum(acc + b_ref[...], 0.0).astype(o_ref.dtype)

    return kernel


def _default_num_cout_blocks(cout):
    """1 block on single-TensorCore chips (v5e/v6e); 2 on v7x-class chips."""
    kind = ""
    try:
        kind = jax.devices()[0].device_kind.lower()
    except Exception:
        pass
    if "v7" in kind and cout % 512 == 0:
        # TODO(synk): on v7x, CORE_PARALLEL / core_map would *guarantee* the
        # 2-TC split; "parallel" semantics are used here for lowering safety.
        return 2
    return 1


def conv1x1_relu(x_nchw, weight, bias, *, num_cout_blocks=None, use_bf16=True,
                 out_dtype=None):
    """x_nchw: (N, Cin, H, W); weight: (Cout, Cin) from a 1x1 conv; bias: (Cout,)."""
    N, Cin, H, W = x_nchw.shape
    Cout = weight.shape[0]
    HW = H * W

    if num_cout_blocks is None:
        num_cout_blocks = _default_num_cout_blocks(Cout)
    assert Cout % num_cout_blocks == 0, "num_cout_blocks must divide Cout"
    tco = Cout // num_cout_blocks

    if out_dtype is None:
        out_dtype = x_nchw.dtype  # f32 by default: matches the PyTorch module.

    # NCHW -> (N, Cin, HW): pure reshape, no transpose, no cast.
    x = x_nchw.reshape(N, Cin, HW)
    w = weight                      # used as-is, (Cout, Cin)
    b = bias.reshape(Cout, 1).astype(jnp.float32)

    # NOTE: HW=576 is kept as a single full-extent block (legal because block
    # == full array dim).  If HW ever gets tiled, block sizes must become
    # multiples of 128.  At Cin=512 this keeps ~2.4 MiB of double-buffered
    # activation/output blocks resident -- fine on all current generations,
    # but re-check against v7x's 64 MiB VMEM for much larger spatial sizes.

    itemsize = lambda a: jnp.dtype(a.dtype).itemsize
    cost = pl.CostEstimate(
        flops=2 * N * HW * Cin * Cout,
        transcendentals=0,
        bytes_accessed=(x.size * itemsize(x) + w.size * itemsize(w)
                        + b.size * 4
                        + N * Cout * HW * jnp.dtype(out_dtype).itemsize),
    )

    out = pl.pallas_call(
        _make_conv1x1_relu_kernel(use_bf16),
        out_shape=jax.ShapeDtypeStruct((N, Cout, HW), out_dtype),
        grid=(N, num_cout_blocks),
        in_specs=[
            # X block stays resident across the Cout grid axis (same block idx).
            pl.BlockSpec((1, Cin, HW), lambda n, j: (n, 0, 0)),
            pl.BlockSpec((tco, Cin), lambda n, j: (j, 0)),
            pl.BlockSpec((tco, 1), lambda n, j: (j, 0)),
        ],
        out_specs=pl.BlockSpec((1, tco, HW), lambda n, j: (n, j, 0)),
        compiler_params=pltpu.CompilerParams(
            dimension_semantics=("parallel", "parallel")),
        cost_estimate=cost,
    )(x, w, b)

    # (N, Cout, HW) -> NCHW: pure reshape, no transpose.
    return out.reshape(N, Cout, H, W)


if __name__ == "__main__":
    key = jax.random.PRNGKey(0)
    k_x, k_w, k_b = jax.random.split(key, 3)

    # Shapes implied by the module: Conv2d(512, 512, 1), input (1, 512, 24, 24).
    N, C, Hsp, Wsp = 1, 512, 24, 24
    x1 = jax.random.normal(k_x, (N, C, Hsp, Wsp), dtype=jnp.float32)

    # Deterministic Conv2d(512, 512, 1) params, PyTorch-style uniform(-1/sqrt(fan_in), +).
    fan_in = C * 1 * 1
    bound = 1.0 / (fan_in ** 0.5)
    weight = jax.random.uniform(k_w, (C, C), jnp.float32, -bound, bound)  # (Cout, Cin)
    bias = jax.random.uniform(k_b, (C,), jnp.float32, -bound, bound)

    y = conv1x1_relu(x1, weight, bias)
    jax.block_until_ready(y)

    # Sanity check against plain-JAX f32 reference (bf16 MXU inputs => loose tol).
    ref = jnp.einsum("nchw,oc->nohw", x1, weight) + bias[None, :, None, None]
    ref = jnp.maximum(ref, 0.0)
    assert y.shape == (N, C, Hsp, Wsp)
    assert jnp.allclose(y, ref, atol=2e-2, rtol=2e-2)

    print("KERNEL_OK")
</pallas_src>

<mosaic_0001>
module attributes {stable_mosaic.version = 11 : i64} {
  func.func @kernel(%arg0: i32, %arg1: i32, %arg2: memref<1x512x576xf32, #tpu.memory_space<vmem>>, %arg3: memref<512x512xf32, #tpu.memory_space<vmem>>, %arg4: memref<512x1xf32, #tpu.memory_space<vmem>>, %arg5: memref<1x512x576xf32, #tpu.memory_space<vmem>>) attributes {dimension_semantics = [#tpu.dimension_semantics<parallel>, #tpu.dimension_semantics<parallel>], iteration_bounds = array<i64: 1, 1>, scalar_prefetch = 0 : i64, scratch_operands = 0 : i64, tpu.core_type = #tpu.core_type<tc>, window_params = [{transform_indices = @transform_0, window_bounds = array<i64: 1, 512, 576>}, {transform_indices = @transform_1, window_bounds = array<i64: 512, 512>}, {transform_indices = @transform_2, window_bounds = array<i64: 512, 1>}, {transform_indices = @transform_3, window_bounds = array<i64: 1, 512, 576>}]} {
    %c0 = arith.constant 0 : index
    %c0_0 = arith.constant 0 : index
    %0 = vector.load %arg3[%c0, %c0_0] : memref<512x512xf32, #tpu.memory_space<vmem>>, vector<512x512xf32>
    %c0_1 = arith.constant 0 : index
    %c0_2 = arith.constant 0 : index
    %c0_3 = arith.constant 0 : index
    %1 = vector.load %arg2[%c0_1, %c0_2, %c0_3] : memref<1x512x576xf32, #tpu.memory_space<vmem>>, vector<1x512x576xf32>
    %2 = vector.shape_cast %1 : vector<1x512x576xf32> to vector<512x576xf32>
    %3 = arith.truncf %0 : vector<512x512xf32> to vector<512x512xbf16>
    %4 = arith.truncf %2 : vector<512x576xf32> to vector<512x576xbf16>
    %cst = arith.constant dense<0.000000e+00> : vector<512x576xf32>
    %5 = tpu.matmul %3, %4, %cst {dimension_numbers = #tpu.dot_dimension_numbers<[1], [0], [0], [1], [0, 0, 1, 1], [], []>} : vector<512x512xbf16>, vector<512x576xbf16>, vector<512x576xf32> -> vector<512x576xf32>
    %c0_4 = arith.constant 0 : index
    %c0_5 = arith.constant 0 : index
    %6 = vector.load %arg4[%c0_4, %c0_5] : memref<512x1xf32, #tpu.memory_space<vmem>>, vector<512x1xf32>
    %7 = vector.broadcast %6 : vector<512x1xf32> to vector<512x576xf32>
    %8 = arith.addf %5, %7 : vector<512x576xf32>
    %cst_6 = arith.constant 0.000000e+00 : f32
    %9 = vector.broadcast %cst_6 : f32 to vector<512x576xf32>
    %10 = arith.maximumf %8, %9 : vector<512x576xf32>
    %c0_7 = arith.constant 0 : index
    %c0_8 = arith.constant 0 : index
    %c0_9 = arith.constant 0 : index
    %11 = vector.load %arg5[%c0_7, %c0_8, %c0_9] : memref<1x512x576xf32, #tpu.memory_space<vmem>>, vector<1x512x576xf32>
    %12 = vector.shape_cast %11 : vector<1x512x576xf32> to vector<512x576xf32>
    %13 = vector.shape_cast %10 : vector<512x576xf32> to vector<1x512x576xf32>
    tpu.vector_store %arg5[%c0_7, %c0_8, %c0_9], %13 {strides = array<i32>} : memref<1x512x576xf32, #tpu.memory_space<vmem>>, vector<1x512x576xf32>,
    return
  }
  func.func @transform_0(%arg0: i32, %arg1: i32) -> (i32, i32, i32) {
    %c0_i32 = arith.constant 0 : i32
    %c0_i32_0 = arith.constant 0 : i32
    %c0_i32_1 = arith.constant 0 : i32
    return %arg0, %c0_i32, %c0_i32_0 : i32, i32, i32
  }
  func.func @transform_1(%arg0: i32, %arg1: i32) -> (i32, i32) {
    %c0_i32 = arith.constant 0 : i32
    %c0_i32_0 = arith.constant 0 : i32
    return %arg1, %c0_i32 : i32, i32
  }
  func.func @transform_2(%arg0: i32, %arg1: i32) -> (i32, i32) {
    %c0_i32 = arith.constant 0 : i32
    %c0_i32_0 = arith.constant 0 : i32
    return %arg1, %c0_i32 : i32, i32
  }
  func.func @transform_3(%arg0: i32, %arg1: i32) -> (i32, i32, i32) {
    %c0_i32 = arith.constant 0 : i32
    %c0_i32_0 = arith.constant 0 : i32
    return %arg0, %arg1, %c0_i32 : i32, i32, i32
  }
}

</mosaic_0001>

<bundles_post_ra>
// kernel: tpu_custom_call.1
= control target key start
LH: loop header
LB: loop body
LE: loop exit
PB: predicated region body
PF: predicated region fallthrough
CT: control target
= control target key end

     0   :  { %v7992_v25 = vmov 0   ;;  %vm3577_vm0 = vcmask 523264   ;;  %s7988_s0 = inlined_call_operand.vmem [shape: f32[1,512,576], index: 0, kind: input, shape index: {}]   ;;  %s7989_s1 = inlined_call_operand.vmem [shape: f32[512,512], index: 1, kind: input, shape index: {}]   ;;  %s7990_s2 = inlined_call_operand.vmem [shape: f32[512,1], index: 2, kind: input, shape index: {}]   ;;  %s7991_s3 = inlined_call_operand.vmem [shape: f32[1,512,576], index: 3, kind: output, shape index: {}]  }
   0x1   :  { %v342_v0 = vld [vmem:[%s7988_s0 + $0x238] sm:$0xff]  ;;  %v347_v1 = vld [vmem:[%s7988_s0 + $0x260] sm:$0xff]  ;;  %v341_v5 = vld [vmem:[%s7988_s0 + $0x230] sm:$0xff]  ;;  %3899 = vset.pattern.permute.xlu0 %v7992_v25  ;;  %3900 = vset.pattern.permute.xlu1 %v7992_v25 }
   0x2   :  { %v502_v2 = vld [vmem:[%s7988_s0 + $0x738] sm:$0xff]  ;;  %v755_v3 = vpack.c.bf16 %v347_v1, %v342_v0  ;;  %v507_v4 = vld [vmem:[%s7988_s0 + $0x760] sm:$0xff]  ;;  %v501_v9 = vld [vmem:[%s7988_s0 + $0x730] sm:$0xff] }
   0x3   :  { %v346_v6 = vld [vmem:[%s7988_s0 + $0x258] sm:$0xff]  ;;  %v835_v7 = vpack.c.bf16 %v507_v4, %v502_v2  ;;  %v332_v11 = vld [vmem:[%s7988_s0 + $0x1e8] sm:$0xff]  ;;  %v337_v13 = vld [vmem:[%s7988_s0 + $0x210] sm:$0xff] }
   0x4   :  { %v754_v8 = vpack.c.bf16 %v346_v6, %v341_v5  ;;  %v506_v10 = vld [vmem:[%s7988_s0 + $0x758] sm:$0xff]  ;;  %1263 = vmatprep.subr.bf16.mxu0 %v755_v3  ;;  %v492_v14 = vld [vmem:[%s7988_s0 + $0x6e8] sm:$0xff]  ;;  %v497_v15 = vld [vmem:[%s7988_s0 + $0x710] sm:$0xff]  ;;  %v750_v16 = vpack.c.bf16 %v337_v13, %v332_v11 }
   0x5   :  { %v834_v12 = vpack.c.bf16 %v506_v10, %v501_v9  ;;  %1616 = vmatprep.subr.bf16.mxu1 %v835_v7  ;;  %v830_v17 = vpack.c.bf16 %v497_v15, %v492_v14  ;;  %v331_v18 = vld [vmem:[%s7988_s0 + $0x1e0] sm:$0xff]  ;;  %v336_v19 = vld [vmem:[%s7988_s0 + $0x208] sm:$0xff]  ;;  %v322_v23 = vld [vmem:[%s7988_s0 + $0x198] sm:$0xff] }
   0x6   :  { %1264 = vmatpush1.bf16.msra.mxu0 %v754_v8  ;;  %v491_v20 = vld [vmem:[%s7988_s0 + $0x6e0] sm:$0xff]  ;;  %v749_v21 = vpack.c.bf16 %v336_v19, %v331_v18  ;;  %v496_v22 = vld [vmem:[%s7988_s0 + $0x708] sm:$0xff]  ;;  %v482_v28 = vld [vmem:[%s7988_s0 + $0x698] sm:$0xff] }
   0x7   :  { %1617 = vmatpush1.bf16.msra.mxu1 %v834_v12  ;;  %v327_v24 = vld [vmem:[%s7988_s0 + $0x1c0] sm:$0xff]  ;;  %1265 = vmatprep.subr.bf16.mxu0 %v750_v16  ;;  %v829_v26 = vpack.c.bf16 %v496_v22, %v491_v20  ;;  %v321_v30 = vld [vmem:[%s7988_s0 + $0x190] sm:$0xff]  ;;  %v326_v32 = vld [vmem:[%s7988_s0 + $0x1b8] sm:$0xff] }
   0x8   :  { %1618 = vmatprep.subr.bf16.mxu1 %v830_v17  ;;  %v745_v27 = vpack.c.bf16 %v327_v24, %v322_v23  ;;  %v487_v29 = vld [vmem:[%s7988_s0 + $0x6c0] sm:$0xff]  ;;  %v481_v33 = vld [vmem:[%s7988_s0 + $0x690] sm:$0xff]  ;;  %v486_v34 = vld [vmem:[%s7988_s0 + $0x6b8] sm:$0xff]  ;;  %v744_v35 = vpack.c.bf16 %v326_v32, %v321_v30 }
   0x9   :  { %v825_v31 = vpack.c.bf16 %v487_v29, %v482_v28  ;;  %v312_v36 = vld [vmem:[%s7988_s0 + $0x148] sm:$0xff]  ;;  %v317_v37 = vld [vmem:[%s7988_s0 + $0x170] sm:$0xff]  ;;  %v824_v39 = vpack.c.bf16 %v486_v34, %v481_v33  ;;  %v311_v42 = vld [vmem:[%s7988_s0 + $0x140] sm:$0xff] }
   0xa   :  { %1266 = vmatpush1.bf16.msra.mxu0 %v749_v21  ;;  %v472_v38 = vld [vmem:[%s7988_s0 + $0x648] sm:$0xff]  ;;  %v740_v40 = vpack.c.bf16 %v317_v37, %v312_v36  ;;  %v477_v41 = vld [vmem:[%s7988_s0 + $0x670] sm:$0xff]  ;;  %v471_v45 = vld [vmem:[%s7988_s0 + $0x640] sm:$0xff] }
   0xb   :  { %1619 = vmatpush1.bf16.msra.mxu1 %v829_v26  ;;  %1267 = vmatprep.subr.bf16.mxu0 %v745_v27  ;;  %v316_v43 = vld [vmem:[%s7988_s0 + $0x168] sm:$0xff]  ;;  %v820_v44 = vpack.c.bf16 %v477_v41, %v472_v38  ;;  %v302_v47 = vld [vmem:[%s7988_s0 + $0xf8] sm:$0xff]  ;;  %v307_v48 = vld [vmem:[%s7988_s0 + $0x120] sm:$0xff] }
   0xc   :  { %1620 = vmatprep.subr.bf16.mxu1 %v825_v31  ;;  %v476_v46 = vld [vmem:[%s7988_s0 + $0x668] sm:$0xff]  ;;  %v462_v49 = vld [vmem:[%s7988_s0 + $0x5f8] sm:$0xff]  ;;  %v467_v50 = vld [vmem:[%s7988_s0 + $0x620] sm:$0xff]  ;;  %v739_v51 = vpack.c.bf16 %v316_v43, %v311_v42  ;;  %v735_v53 = vpack.c.bf16 %v307_v48, %v302_v47 }
   0xd   :  { %v819_v52 = vpack.c.bf16 %v476_v46, %v471_v45  ;;  %v301_v54 = vld [vmem:[%s7988_s0 + $0xf0] sm:$0xff]  ;;  %v306_v55 = vld [vmem:[%s7988_s0 + $0x118] sm:$0xff]  ;;  %v815_v57 = vpack.c.bf16 %v467_v50, %v462_v49  ;;  %v292_v59 = vld [vmem:[%s7988_s0 + $0xa8] sm:$0xff] }
   0xe   :  { %1268 = vmatpush1.bf16.msra.mxu0 %v744_v35  ;;  %v461_v56 = vld [vmem:[%s7988_s0 + $0x5f0] sm:$0xff]  ;;  %v466_v58 = vld [vmem:[%s7988_s0 + $0x618] sm:$0xff]  ;;  %v452_v61 = vld [vmem:[%s7988_s0 + $0x5a8] sm:$0xff]  ;;  %v734_v63 = vpack.c.bf16 %v306_v55, %v301_v54 }
   0xf   :  { %1621 = vmatpush1.bf16.msra.mxu1 %v824_v39  ;;  %1269 = vmatprep.subr.bf16.mxu0 %v740_v40  ;;  %v297_v60 = vld [vmem:[%s7988_s0 + $0xd0] sm:$0xff]  ;;  %v814_v0 = vpack.c.bf16 %v466_v58, %v461_v56  ;;  %v291_v2 = vld [vmem:[%s7988_s0 + $0xa0] sm:$0xff]  ;;  %v296_v3 = vld [vmem:[%s7988_s0 + $0xc8] sm:$0xff] }
  0x10   :  { %1622 = vmatprep.subr.bf16.mxu1 %v820_v44  ;;  %v457_v62 = vld [vmem:[%s7988_s0 + $0x5d0] sm:$0xff]  ;;  %v730_v1 = vpack.c.bf16 %v297_v60, %v292_v59  ;;  %v451_v4 = vld [vmem:[%s7988_s0 + $0x5a0] sm:$0xff]  ;;  %v456_v6 = vld [vmem:[%s7988_s0 + $0x5c8] sm:$0xff]  ;;  %v729_v11 = vpack.c.bf16 %v296_v3, %v291_v2 }
  0x11   :  { %v810_v5 = vpack.c.bf16 %v457_v62, %v452_v61  ;;  %v282_v7 = vld [vmem:[%s7988_s0 + $0x58] sm:$0xff]  ;;  %v287_v8 = vld [vmem:[%s7988_s0 + $0x80] sm:$0xff]  ;;  %v809_v12 = vpack.c.bf16 %v456_v6, %v451_v4  ;;  %v281_v14 = vld [vmem:[%s7988_s0 + $0x50] sm:$0xff] }
  0x12   :  { %1270 = vmatpush1.bf16.msra.mxu0 %v739_v51  ;;  %v442_v9 = vld [vmem:[%s7988_s0 + $0x558] sm:$0xff]  ;;  %v447_v10 = vld [vmem:[%s7988_s0 + $0x580] sm:$0xff]  ;;  %v725_v13 = vpack.c.bf16 %v287_v8, %v282_v7  ;;  %v441_v16 = vld [vmem:[%s7988_s0 + $0x550] sm:$0xff] }
  0x13   :  { %1623 = vmatpush1.bf16.msra.mxu1 %v819_v52  ;;  %1271 = vmatprep.subr.bf16.mxu0 %v735_v53  ;;  %v286_v15 = vld [vmem:[%s7988_s0 + $0x78] sm:$0xff]  ;;  %v805_v17 = vpack.c.bf16 %v447_v10, %v442_v9  ;;  %v272_v19 = vld [vmem:[%s7988_s0 + $0x8] sm:$0xff]  ;;  %v277_v20 = vld [vmem:[%s7988_s0 + $0x30] sm:$0xff] }
  0x14   :  { %1624 = vmatprep.subr.bf16.mxu1 %v815_v57  ;;  %v446_v18 = vld [vmem:[%s7988_s0 + $0x578] sm:$0xff]  ;;  %v432_v21 = vld [vmem:[%s7988_s0 + $0x508] sm:$0xff]  ;;  %v437_v22 = vld [vmem:[%s7988_s0 + $0x530] sm:$0xff]  ;;  %v724_v23 = vpack.c.bf16 %v286_v15, %v281_v14  ;;  %v720_v26 = vpack.c.bf16 %v277_v20, %v272_v19 }
  0x15   :  { %v804_v24 = vpack.c.bf16 %v446_v18, %v441_v16  ;;  %v271_v27 = vld [vmem:[%s7988_s0] sm:$0xff]  ;;  %v276_v28 = vld [vmem:[%s7988_s0 + $0x28] sm:$0xff]  ;;  %v800_v30 = vpack.c.bf16 %v437_v22, %v432_v21  ;;  %v422_v32 = vld [vmem:[%s7988_s0 + $0x4b8] sm:$0xff] }
  0x16   :  { %1272 = vmatpush1.bf16.msra.mxu0 %v734_v63  ;;  %v431_v29 = vld [vmem:[%s7988_s0 + $0x500] sm:$0xff]  ;;  %v436_v31 = vld [vmem:[%s7988_s0 + $0x528] sm:$0xff]  ;;  %v582_v34 = vld [vmem:[%s7988_s0 + $0x9b8] sm:$0xff]  ;;  %v719_v36 = vpack.c.bf16 %v276_v28, %v271_v27 }
  0x17   :  { %1625 = vmatpush1.bf16.msra.mxu1 %v814_v0  ;;  %1273 = vmatprep.subr.bf16.mxu0 %v730_v1  ;;  %v427_v33 = vld [vmem:[%s7988_s0 + $0x4e0] sm:$0xff]  ;;  %v799_v37 = vpack.c.bf16 %v436_v31, %v431_v29  ;;  %v421_v39 = vld [vmem:[%s7988_s0 + $0x4b0] sm:$0xff]  ;;  %v426_v40 = vld [vmem:[%s7988_s0 + $0x4d8] sm:$0xff] }
  0x18   :  { %1626 = vmatprep.subr.bf16.mxu1 %v810_v5  ;;  %v587_v35 = vld [vmem:[%s7988_s0 + $0x9e0] sm:$0xff]  ;;  %v795_v38 = vpack.c.bf16 %v427_v33, %v422_v32  ;;  %v581_v41 = vld [vmem:[%s7988_s0 + $0x9b0] sm:$0xff]  ;;  %v586_v43 = vld [vmem:[%s7988_s0 + $0x9d8] sm:$0xff]  ;;  %v794_v48 = vpack.c.bf16 %v426_v40, %v421_v39 }
  0x19   :  { %v875_v42 = vpack.c.bf16 %v587_v35, %v582_v34  ;;  %v412_v44 = vld [vmem:[%s7988_s0 + $0x468] sm:$0xff]  ;;  %v417_v45 = vld [vmem:[%s7988_s0 + $0x490] sm:$0xff]  ;;  %v874_v49 = vpack.c.bf16 %v586_v43, %v581_v41  ;;  %v411_v51 = vld [vmem:[%s7988_s0 + $0x460] sm:$0xff] }
  0x1a   :  { %1274 = vmatpush1.bf16.msra.mxu0 %v729_v11  ;;  %v572_v46 = vld [vmem:[%s7988_s0 + $0x968] sm:$0xff]  ;;  %v577_v47 = vld [vmem:[%s7988_s0 + $0x990] sm:$0xff]  ;;  %v790_v50 = vpack.c.bf16 %v417_v45, %v412_v44  ;;  %v571_v53 = vld [vmem:[%s7988_s0 + $0x960] sm:$0xff] }
  0x1b   :  { %1627 = vmatpush1.bf16.msra.mxu1 %v809_v12  ;;  %1275 = vmatprep.subr.bf16.mxu0 %v725_v13  ;;  %v416_v52 = vld [vmem:[%s7988_s0 + $0x488] sm:$0xff]  ;;  %v870_v54 = vpack.c.bf16 %v577_v47, %v572_v46  ;;  %v402_v56 = vld [vmem:[%s7988_s0 + $0x418] sm:$0xff]  ;;  %v407_v57 = vld [vmem:[%s7988_s0 + $0x440] sm:$0xff] }
  0x1c   :  { %1628 = vmatprep.subr.bf16.mxu1 %v805_v17  ;;  %v576_v55 = vld [vmem:[%s7988_s0 + $0x988] sm:$0xff]  ;;  %v562_v58 = vld [vmem:[%s7988_s0 + $0x918] sm:$0xff]  ;;  %v567_v59 = vld [vmem:[%s7988_s0 + $0x940] sm:$0xff]  ;;  %v789_v60 = vpack.c.bf16 %v416_v52, %v411_v51  ;;  %v785_v62 = vpack.c.bf16 %v407_v57, %v402_v56 }
  0x1d   :  { %v869_v61 = vpack.c.bf16 %v576_v55, %v571_v53  ;;  %v401_v63 = vld [vmem:[%s7988_s0 + $0x410] sm:$0xff]  ;;  %v406_v0 = vld [vmem:[%s7988_s0 + $0x438] sm:$0xff]  ;;  %v865_v2 = vpack.c.bf16 %v567_v59, %v562_v58  ;;  %v392_v4 = vld [vmem:[%s7988_s0 + $0x3c8] sm:$0xff] }
  0x1e   :  { %1276 = vmatpush1.bf16.msra.mxu0 %v724_v23  ;;  %v561_v1 = vld [vmem:[%s7988_s0 + $0x910] sm:$0xff]  ;;  %v566_v3 = vld [vmem:[%s7988_s0 + $0x938] sm:$0xff]  ;;  %v552_v6 = vld [vmem:[%s7988_s0 + $0x8c8] sm:$0xff]  ;;  %v784_v8 = vpack.c.bf16 %v406_v0, %v401_v63 }
  0x1f   :  { %1629 = vmatpush1.bf16.msra.mxu1 %v804_v24  ;;  %1277 = vmatprep.subr.bf16.mxu0 %v720_v26  ;;  %v397_v5 = vld [vmem:[%s7988_s0 + $0x3f0] sm:$0xff]  ;;  %v391_v9 = vld [vmem:[%s7988_s0 + $0x3c0] sm:$0xff]  ;;  %v396_v10 = vld [vmem:[%s7988_s0 + $0x3e8] sm:$0xff]  ;;  %v864_v12 = vpack.c.bf16 %v566_v3, %v561_v1 }
  0x20   :  { %1630 = vmatprep.subr.bf16.mxu1 %v800_v30  ;;  %v557_v7 = vld [vmem:[%s7988_s0 + $0x8f0] sm:$0xff]  ;;  %v551_v11 = vld [vmem:[%s7988_s0 + $0x8c0] sm:$0xff]  ;;  %v780_v13 = vpack.c.bf16 %v397_v5, %v392_v4  ;;  %v556_v14 = vld [vmem:[%s7988_s0 + $0x8e8] sm:$0xff]  ;;  %v779_v24 = vpack.c.bf16 %v396_v10, %v391_v9 }
  0x21   :  { %v382_v15 = vld [vmem:[%s7988_s0 + $0x378] sm:$0xff]  ;;  %v387_v16 = vld [vmem:[%s7988_s0 + $0x3a0] sm:$0xff]  ;;  %v860_v17 = vpack.c.bf16 %v557_v7, %v552_v6  ;;  %v16_v20 = vld [vmem:[%s7989_s1 + $0x8] sm:$0xff]  ;;  %v859_v28 = vpack.c.bf16 %v556_v14, %v551_v11 }
  0x22   :  { %1278 = vmatpush1.bf16.msra.mxu0 %v719_v36  ;;  %v542_v18 = vld [vmem:[%s7988_s0 + $0x878] sm:$0xff]  ;;  %v547_v19 = vld [vmem:[%s7988_s0 + $0x8a0] sm:$0xff]  ;;  %v20_v21 = vld [vmem:[%s7989_s1 + $0x28] sm:$0xff]  ;;  %v775_v29 = vpack.c.bf16 %v387_v16, %v382_v15 }
  0x23   :  { %1631 = vmatpush1.bf16.msra.mxu1 %v799_v37  ;;  %1279 = vmatprep.subr.bf16.mxu0 %v795_v38  ;;  %v18_v22 = vld [vmem:[%s7989_s1 + $0x18] sm:$0xff]  ;;  %v4236_v26 = vpack.c.bf16 %v20_v21, %v16_v20  ;;  %v381_v30 = vld [vmem:[%s7988_s0 + $0x370] sm:$0xff]  ;;  %v855_v33 = vpack.c.bf16 %v547_v19, %v542_v18  ;;  %v372_v35 = vld [vmem:[%s7988_s0 + $0x328] sm:$0xff] }
  0x24   :  { %1632 = vmatprep.subr.bf16.mxu1 %v875_v42  ;;  %v22_v23 = vld [vmem:[%s7989_s1 + $0x38] sm:$0xff]  ;;  %v541_v32 = vld [vmem:[%s7988_s0 + $0x870] sm:$0xff]  ;;  %v532_v37 = vld [vmem:[%s7988_s0 + $0x828] sm:$0xff] }
  0x25   :  { %8288 = vst [vmem:[#allocation2_spill] sm:$0xff] %v4236_v26  ;;  %v4238_v27 = vpack.c.bf16 %v22_v23, %v18_v22  ;;  %v386_v31 = vld [vmem:[%s7988_s0 + $0x398] sm:$0xff]  ;;  %v377_v36 = vld [vmem:[%s7988_s0 + $0x350] sm:$0xff]  ;;  %1295 = vmatprep.mubr.bf16.mxu0 %v4236_v26  ;;  %v371_v42 = vld [vmem:[%s7988_s0 + $0x320] sm:$0xff] }
  0x26   :  { %1280 = vmatpush2.bf16.msra.mxu0 %v794_v48  ;;  %v546_v34 = vld [vmem:[%s7988_s0 + $0x898] sm:$0xff]  ;;  %v537_v38 = vld [vmem:[%s7988_s0 + $0x850] sm:$0xff]  ;;  %v774_v39 = vpack.c.bf16 %v386_v31, %v381_v30  ;;  %v770_v41 = vpack.c.bf16 %v377_v36, %v372_v35  ;;  %v376_v43 = vld [vmem:[%s7988_s0 + $0x348] sm:$0xff] }
  0x27   :  { %1633 = vmatpush2.bf16.msra.mxu1 %v874_v49  ;;  %1281 = vmatprep.subr.bf16.mxu0 %v790_v50  ;;  %8289 = vst [vmem:[#allocation3_spill] sm:$0xff] %v4238_v27  ;;  %v854_v40 = vpack.c.bf16 %v546_v34, %v541_v32  ;;  %v531_v44 = vld [vmem:[%s7988_s0 + $0x820] sm:$0xff]  ;;  %v850_v45 = vpack.c.bf16 %v537_v38, %v532_v37  ;;  %v536_v46 = vld [vmem:[%s7988_s0 + $0x848] sm:$0xff]  ;;  %v362_v47 = vld [vmem:[%s7988_s0 + $0x2d8] sm:$0xff] }
  0x28   :  { %1634 = vmatprep.subr.bf16.mxu1 %v870_v54  ;;  %1648 = vmatprep.mubr.bf16.mxu1 %v4238_v27  ;;  %v367_v48 = vld [vmem:[%s7988_s0 + $0x300] sm:$0xff]  ;;  %v522_v49 = vld [vmem:[%s7988_s0 + $0x7d8] sm:$0xff]  ;;  %v769_v51 = vpack.c.bf16 %v376_v43, %v371_v42  ;;  %v849_v52 = vpack.c.bf16 %v536_v46, %v531_v44  ;;  %v361_v54 = vld [vmem:[%s7988_s0 + $0x2d0] sm:$0xff] }
  0x29   :  { %v527_v50 = vld [vmem:[%s7988_s0 + $0x800] sm:$0xff]  ;;  %v765_v53 = vpack.c.bf16 %v367_v48, %v362_v47  ;;  %v366_v55 = vld [vmem:[%s7988_s0 + $0x2f8] sm:$0xff]  ;;  %v521_v56 = vld [vmem:[%s7988_s0 + $0x7d0] sm:$0xff] }
  0x2a   :  { %1282 = vmatpush2.bf16.msra.mxu0 %v789_v60  ;;  %v845_v57 = vpack.c.bf16 %v527_v50, %v522_v49  ;;  %v526_v58 = vld [vmem:[%s7988_s0 + $0x7f8] sm:$0xff]  ;;  %v352_v59 = vld [vmem:[%s7988_s0 + $0x288] sm:$0xff]  ;;  %v357_v60 = vld [vmem:[%s7988_s0 + $0x2b0] sm:$0xff]  ;;  %v764_v63 = vpack.c.bf16 %v366_v55, %v361_v54 }
  0x2b   :  { %1635 = vmatpush2.bf16.msra.mxu1 %v869_v61  ;;  %1283 = vmatprep.subr.bf16.mxu0 %v785_v62  ;;  %v512_v61 = vld [vmem:[%s7988_s0 + $0x788] sm:$0xff]  ;;  %v517_v62 = vld [vmem:[%s7988_s0 + $0x7b0] sm:$0xff]  ;;  %v351_v0 = vld [vmem:[%s7988_s0 + $0x280] sm:$0xff]  ;;  %v844_v1 = vpack.c.bf16 %v526_v58, %v521_v56 }
  0x2c   :  { %1636 = vmatprep.subr.bf16.mxu1 %v865_v2  ;;  %v760_v2 = vpack.c.bf16 %v357_v60, %v352_v59  ;;  %v356_v3 = vld [vmem:[%s7988_s0 + $0x2a8] sm:$0xff]  ;;  %v511_v4 = vld [vmem:[%s7988_s0 + $0x780] sm:$0xff]  ;;  %v840_v6 = vpack.c.bf16 %v517_v62, %v512_v61  ;;  %v349_v9 = vld [vmem:[%s7988_s0 + $0x270] sm:$0xff] }
  0x2d   :  { %v516_v5 = vld [vmem:[%s7988_s0 + $0x7a8] sm:$0xff]  ;;  %v15_v7 = vld [vmem:[%s7989_s1] sm:$0xff]  ;;  %v17_v14 = vld [vmem:[%s7989_s1 + $0x10] sm:$0xff] }
  0x2e   :  { %1284 = vmatpush2.bf16.msra.mxu0 %v784_v8  ;;  %v344_v8 = vld [vmem:[%s7988_s0 + $0x248] sm:$0xff]  ;;  %v19_v10 = vld [vmem:[%s7989_s1 + $0x20] sm:$0xff]  ;;  %v21_v15 = vld [vmem:[%s7989_s1 + $0x30] sm:$0xff] }
  0x2f   :  { %1637 = vmatpush2.bf16.msra.mxu1 %v864_v12  ;;  %1285 = vmatprep.subr.bf16.mxu0 %v780_v13  ;;  %v504_v11 = vld [vmem:[%s7988_s0 + $0x748] sm:$0xff]  ;;  %v509_v12 = vld [vmem:[%s7988_s0 + $0x770] sm:$0xff]  ;;  %v759_v13 = vpack.c.bf16 %v356_v3, %v351_v0  ;;  %v343_v16 = vld [vmem:[%s7988_s0 + $0x240] sm:$0xff]  ;;  %v757_v18 = vpack.c.bf16 %v349_v9, %v344_v8 }
  0x30   :  { %1638 = vmatprep.subr.bf16.mxu1 %v860_v17  ;;  %v839_v17 = vpack.c.bf16 %v516_v5, %v511_v4  ;;  %v348_v19 = vld [vmem:[%s7988_s0 + $0x268] sm:$0xff]  ;;  %v503_v20 = vld [vmem:[%s7988_s0 + $0x740] sm:$0xff]  ;;  %v837_v22 = vpack.c.bf16 %v509_v12, %v504_v11  ;;  %v30_v30 = vld [vmem:[%s7989_s1 + $0x78] sm:$0xff] }
  0x31   :  { %v508_v21 = vld [vmem:[%s7988_s0 + $0x768] sm:$0xff]  ;;  %v334_v31 = vld [vmem:[%s7988_s0 + $0x1f8] sm:$0xff]  ;;  %v339_v32 = vld [vmem:[%s7988_s0 + $0x220] sm:$0xff]  ;;  %v756_v34 = vpack.c.bf16 %v348_v19, %v343_v16 }
  0x32   :  { %1286 = vmatpush2.bf16.msra.mxu0 %v779_v24  ;;  %v24_v23 = vld [vmem:[%s7989_s1 + $0x48] sm:$0xff]  ;;  %v494_v35 = vld [vmem:[%s7988_s0 + $0x6f8] sm:$0xff]  ;;  %v499_v36 = vld [vmem:[%s7988_s0 + $0x720] sm:$0xff]  ;;  %v836_v37 = vpack.c.bf16 %v508_v21, %v503_v20  ;;  %v752_v44 = vpack.c.bf16 %v339_v32, %v334_v31 }
  0x33   :  { %1639 = vmatpush2.bf16.msra.mxu1 %v859_v28  ;;  %1287 = vmatprep.subr.bf16.mxu0 %v775_v29  ;;  %v28_v24 = vld [vmem:[%s7989_s1 + $0x68] sm:$0xff]  ;;  %v26_v28 = vld [vmem:[%s7989_s1 + $0x58] sm:$0xff]  ;;  %v4371_v29 = vpack.c.bf16 %v19_v10, %v15_v7  ;;  %v23_v43 = vld [vmem:[%s7989_s1 + $0x40] sm:$0xff]  ;;  %v832_v49 = vpack.c.bf16 %v499_v36, %v494_v35 }
  0x34   :  { %1640 = vmatprep.subr.bf16.mxu1 %v855_v33  ;;  %v4382_v33 = vpack.c.bf16 %v21_v15, %v17_v14  ;;  %v4390_v38 = vpack.c.bf16 %v28_v24, %v24_v23  ;;  %v4401_v42 = vpack.c.bf16 %v30_v30, %v26_v28  ;;  %v324_v46 = vld [vmem:[%s7988_s0 + $0x1a8] sm:$0xff]  ;;  %v329_v47 = vld [vmem:[%s7988_s0 + $0x1d0] sm:$0xff]  ;;  %v27_v48 = vld [vmem:[%s7989_s1 + $0x60] sm:$0xff] }
  0x35   :  { %8290 = vst [vmem:[#allocation4_spill] sm:$0xff] %v4371_v29  ;;  %v484_v50 = vld [vmem:[%s7988_s0 + $0x6a8] sm:$0xff]  ;;  %v38_v58 = vld [vmem:[%s7989_s1 + $0xb8] sm:$0xff]  ;;  %v747_v60 = vpack.c.bf16 %v329_v47, %v324_v46  ;;  %v323_v61 = vld [vmem:[%s7988_s0 + $0x1a0] sm:$0xff] }
  0x36   :  { %1288 = vmatpush2.bf16.msra.mxu0 %v774_v39  ;;  %8291 = vst [vmem:[#allocation5_spill] sm:$0xff] %v4390_v38  ;;  %v333_v39 = vld [vmem:[%s7988_s0 + $0x1f0] sm:$0xff]  ;;  %8292 = vst [vmem:[#allocation6_spill] sm:$0xff] %v4401_v42  ;;  %v32_v54 = vld [vmem:[%s7989_s1 + $0x88] sm:$0xff] }
  0x37   :  { %1641 = vmatpush2.bf16.msra.mxu1 %v854_v40  ;;  %1289 = vmatprep.subr.bf16.mxu0 %v770_v41  ;;  %v338_v40 = vld [vmem:[%s7988_s0 + $0x218] sm:$0xff]  ;;  %v493_v41 = vld [vmem:[%s7988_s0 + $0x6f0] sm:$0xff]  ;;  %v36_v56 = vld [vmem:[%s7989_s1 + $0xa8] sm:$0xff] }
  0x38   :  { %1642 = vmatprep.subr.bf16.mxu1 %v850_v45  ;;  %v498_v45 = vld [vmem:[%s7988_s0 + $0x718] sm:$0xff]  ;;  %v751_v55 = vpack.c.bf16 %v338_v40, %v333_v39  ;;  %v328_v62 = vld [vmem:[%s7988_s0 + $0x1c8] sm:$0xff]  ;;  %v483_v0 = vld [vmem:[%s7988_s0 + $0x6a0] sm:$0xff] }
  0x39   :  { %v831_v59 = vpack.c.bf16 %v498_v45, %v493_v41  ;;  %v314_v3 = vld [vmem:[%s7988_s0 + $0x158] sm:$0xff]  ;;  %v319_v4 = vld [vmem:[%s7988_s0 + $0x180] sm:$0xff]  ;;  %v746_v10 = vpack.c.bf16 %v328_v62, %v323_v61  ;;  %v313_v15 = vld [vmem:[%s7988_s0 + $0x150] sm:$0xff] }
  0x3a   :  { %1290 = vmatpush2.bf16.msra.mxu0 %v769_v51  ;;  %v489_v51 = vld [vmem:[%s7988_s0 + $0x6d0] sm:$0xff]  ;;  %v474_v7 = vld [vmem:[%s7988_s0 + $0x658] sm:$0xff]  ;;  %v479_v8 = vld [vmem:[%s7988_s0 + $0x680] sm:$0xff]  ;;  %v742_v14 = vpack.c.bf16 %v319_v4, %v314_v3 }
  0x3b   :  { %1643 = vmatpush2.bf16.msra.mxu1 %v849_v52  ;;  %1291 = vmatprep.subr.bf16.mxu0 %v765_v53  ;;  %v25_v52 = vld [vmem:[%s7989_s1 + $0x50] sm:$0xff]  ;;  %v31_v11 = vld [vmem:[%s7989_s1 + $0x80] sm:$0xff]  ;;  %v318_v16 = vld [vmem:[%s7988_s0 + $0x178] sm:$0xff]  ;;  %v822_v19 = vpack.c.bf16 %v479_v8, %v474_v7 }
  0x3c   :  { %1644 = vmatprep.subr.bf16.mxu1 %v845_v57  ;;  %v29_v53 = vld [vmem:[%s7989_s1 + $0x70] sm:$0xff]  ;;  %v34_v57 = vld [vmem:[%s7989_s1 + $0x98] sm:$0xff]  ;;  %v35_v12 = vld [vmem:[%s7989_s1 + $0xa0] sm:$0xff]  ;;  %v741_v30 = vpack.c.bf16 %v318_v16, %v313_v15 }
  0x3d   :  { %v4466_v5 = vpack.c.bf16 %v29_v53, %v25_v52  ;;  %v4476_v9 = vpack.c.bf16 %v38_v58, %v34_v57  ;;  %v473_v20 = vld [vmem:[%s7988_s0 + $0x650] sm:$0xff]  ;;  %v478_v21 = vld [vmem:[%s7988_s0 + $0x678] sm:$0xff]  ;;  %v44_v23 = vld [vmem:[%s7989_s1 + $0xe8] sm:$0xff]  ;;  %v4533_v40 = vpack.c.bf16 %v35_v12, %v31_v11 }
  0x3e   :  { %1292 = vmatpush2.bf16.msra.mxu0 %v764_v63  ;;  %v827_v63 = vpack.c.bf16 %v489_v51, %v484_v50  ;;  %v42_v24 = vld [vmem:[%s7989_s1 + $0xd8] sm:$0xff]  ;;  %v304_v31 = vld [vmem:[%s7988_s0 + $0x108] sm:$0xff]  ;;  %v309_v32 = vld [vmem:[%s7988_s0 + $0x130] sm:$0xff] }
  0x3f   :  { %1645 = vmatpush2.bf16.msra.mxu1 %v844_v1  ;;  %1293 = vmatprep.subr.bf16.mxu0 %v760_v2  ;;  %v4455_v1 = vpack.c.bf16 %v27_v48, %v23_v43  ;;  %v488_v2 = vld [vmem:[%s7988_s0 + $0x6c8] sm:$0xff]  ;;  %8293 = vst [vmem:[#allocation7_spill] sm:$0xff] %v4466_v5  ;;  %8295 = vst [vmem:[#allocation9_spill] sm:$0xff] %v4476_v9  ;;  %v46_v28 = vld [vmem:[%s7989_s1 + $0xf8] sm:$0xff]  ;;  %v737_v35 = vpack.c.bf16 %v309_v32, %v304_v31 }
  0x40   :  { %1646 = vmatprep.subr.bf16.mxu1 %v840_v6  ;;  %v4468_v6 = vpack.c.bf16 %v36_v56, %v32_v54  ;;  %v303_v36 = vld [vmem:[%s7988_s0 + $0x100] sm:$0xff]  ;;  %v464_v39 = vld [vmem:[%s7988_s0 + $0x608] sm:$0xff]  ;;  %v469_v41 = vld [vmem:[%s7988_s0 + $0x630] sm:$0xff] }
  0x41   :  { %v463_v43 = vld [vmem:[%s7988_s0 + $0x600] sm:$0xff]  ;;  %v817_v47 = vpack.c.bf16 %v469_v41, %v464_v39  ;;  %v880_v54 = vld [vmem:[%s7990_s2 + $0x8] sm:$0xff]  ;;  %v45_v56 = vld [vmem:[%s7989_s1 + $0xf0] sm:$0xff] }
  0x42   :  { %1294 = vmatpush2.bf16.msra.mxu0 %v759_v13  ;;  %8294 = vst [vmem:[#allocation8_spill] sm:$0xff] %v4468_v6  ;;  %v826_v13 = vpack.c.bf16 %v488_v2, %v483_v0  ;;  %v879_v48 = vld [vmem:[%s7990_s2] sm:$0xff]  ;;  %v881_v57 = vld [vmem:[%s7990_s2 + $0x10] sm:$0xff]  ;;  %v48_v58 = vld [vmem:[%s7989_s1 + $0x108] sm:$0xff] }
  0x43   :  { %1647 = vmatpush2.bf16.msra.mxu1 %v839_v17  ;;  %1969 = vmatprep.subr.bf16.mxu0 %v757_v18  ;;  %v33_v17 = vld [vmem:[%s7989_s1 + $0x90] sm:$0xff]  ;;  %v39_v52 = vld [vmem:[%s7989_s1 + $0xc0] sm:$0xff]  ;;  %v54_v61 = vld [vmem:[%s7989_s1 + $0x138] sm:$0xff] }
  0x44   :  { %2322 = vmatprep.subr.bf16.mxu1 %v837_v22  ;;  %v37_v18 = vld [vmem:[%s7989_s1 + $0xb0] sm:$0xff]  ;;  %v40_v22 = vld [vmem:[%s7989_s1 + $0xc8] sm:$0xff]  ;;  %945 = vperm.xlu0 %3899, %v879_v48   ;;  %v43_v53 = vld [vmem:[%s7989_s1 + $0xe0] sm:$0xff] }
  0x45   :  { %1296 = vmatmul.mubr.bf16.vlgmr.msra.gmra.mxu0 %v4371_v29  ;;  %v4544_v45 = vpack.c.bf16 %v37_v18, %v33_v17  ;;  %v4546_v46 = vpack.c.bf16 %v44_v23, %v40_v22  ;;  %v294_v62 = vld [vmem:[%s7988_s0 + $0xb8] sm:$0xff]  ;;  %v4593_v0 = vpack.c.bf16 %v43_v53, %v39_v52  ;;  %955 = vperm.xlu1 %3900, %v881_v57   ;;  %v293_v4 = vld [vmem:[%s7988_s0 + $0xb0] sm:$0xff]  ;;  %v883_v18 = vld [vmem:[%s7990_s2 + $0x20] sm:$0xff] }
  0x46   :  { %1649 = vmatmul.mubr.bf16.vlgmr.msra.gmra.mxu1 %v4382_v33  ;;  %1970 = vmatpush1.bf16.msra.mxu0 %v756_v34  ;;  %v821_v34 = vpack.c.bf16 %v478_v21, %v473_v20  ;;  %v882_v3 = vld [vmem:[%s7990_s2 + $0x18] sm:$0xff]  ;;  %v47_v20 = vld [vmem:[%s7989_s1 + $0x100] sm:$0xff]  ;;  %v49_v22 = vld [vmem:[%s7989_s1 + $0x110] sm:$0xff] }
  0x47   :  { %2323 = vmatpush1.bf16.msra.mxu1 %v836_v37  ;;  %1305 = vmatprep.mubr.bf16.mxu0 %v4390_v38  ;;  %v308_v37 = vld [vmem:[%s7988_s0 + $0x128] sm:$0xff]  ;;  %8296 = vst [vmem:[#allocation10_spill] sm:$0xff] %v4546_v46  ;;  %v298_v7 = vld [vmem:[%s7988_s0 + $0xd8] sm:$0xff]  ;;  %v51_v21 = vld [vmem:[%s7989_s1 + $0x120] sm:$0xff] }
  0x48   :  { %1658 = vmatprep.mubr.bf16.mxu1 %v4401_v42  ;;  %1971 = vmatprep.subr.bf16.mxu0 %v752_v44  ;;  %v468_v44 = vld [vmem:[%s7988_s0 + $0x628] sm:$0xff]  ;;  %v736_v50 = vpack.c.bf16 %v308_v37, %v303_v36  ;;  %v731_v11 = vpack.c.bf16 %v298_v7, %v293_v4  ;;  %v454_v12 = vld [vmem:[%s7988_s0 + $0x5b8] sm:$0xff]  ;;  %v289_v41 = vld [vmem:[%s7988_s0 + $0x90] sm:$0xff] }
  0x49   :  { %2324 = vmatprep.subr.bf16.mxu1 %v832_v49  ;;  %v4551_v49 = vpack.c.bf16 %v46_v28, %v42_v24  ;;  %v816_v51 = vpack.c.bf16 %v468_v44, %v463_v43  ;;  %950 = vperm.xlu0 %3899, %v880_v54   ;;  %v458_v17 = vld [vmem:[%s7988_s0 + $0x5d8] sm:$0xff]  ;;  %v884_v23 = vld [vmem:[%s7990_s2 + $0x28] sm:$0xff]  ;;  %v885_v24 = vld [vmem:[%s7990_s2 + $0x30] sm:$0xff] }
  0x4a   :  { %1972 = vmatpush1.bf16.msra.mxu0 %v751_v55  ;;  %v41_v55 = vld [vmem:[%s7989_s1 + $0xd0] sm:$0xff]  ;;  %960 = vperm.xlu1 %3900, %v882_v3   ;;  %v60_v31 = vld [vmem:[%s7989_s1 + $0x168] sm:$0xff]  ;;  %v58_v32 = vld [vmem:[%s7989_s1 + $0x158] sm:$0xff] }
  0x4b   :  { %2325 = vmatpush1.bf16.msra.mxu1 %v831_v59  ;;  %1973 = vmatprep.subr.bf16.mxu0 %v747_v60  ;;  %8297 = vst [vmem:[#allocation11_spill] sm:$0xff] %v4551_v49  ;;  %v52_v59 = vld [vmem:[%s7989_s1 + $0x128] sm:$0xff]  ;;  %v50_v60 = vld [vmem:[%s7989_s1 + $0x118] sm:$0xff]  ;;  %v4604_v8 = vpack.c.bf16 %v45_v56, %v41_v55  ;;  %v53_v28 = vld [vmem:[%s7989_s1 + $0x130] sm:$0xff] }
  0x4c   :  { %2326 = vmatprep.subr.bf16.mxu1 %v827_v63  ;;  %v299_v63 = vld [vmem:[%s7988_s0 + $0xe0] sm:$0xff]  ;;  %v4617_v15 = vpack.c.bf16 %v54_v61, %v50_v60  ;;  %v284_v36 = vld [vmem:[%s7988_s0 + $0x68] sm:$0xff]  ;;  %v4664_v37 = vpack.c.bf16 %v53_v28, %v49_v22  ;;  %v886_v52 = vld [vmem:[%s7990_s2 + $0x38] sm:$0xff] }
  0x4d   :  { %1306 = vmatmul.mubr.bf16.gmra.mxu0 %v4455_v1  ;;  %v732_v2 = vpack.c.bf16 %v299_v63, %v294_v62  ;;  %965 = vperm.xlu0 %3899, %v883_v18   ;;  %v283_v43 = vld [vmem:[%s7988_s0 + $0x60] sm:$0xff]  ;;  %v288_v48 = vld [vmem:[%s7988_s0 + $0x88] sm:$0xff]  ;;  %v57_v60 = vld [vmem:[%s7989_s1 + $0x150] sm:$0xff] }
  0x4e   :  { %1659 = vmatmul.mubr.bf16.gmra.mxu1 %v4466_v5  ;;  %1315 = vmatprep.mubr.bf16.mxu0 %v4468_v6  ;;  %8299 = vst [vmem:[#allocation13_spill] sm:$0xff] %v4617_v15  ;;  %v726_v53 = vpack.c.bf16 %v288_v48, %v283_v43  ;;  %v443_v55 = vld [vmem:[%s7988_s0 + $0x560] sm:$0xff]  ;;  %v448_v56 = vld [vmem:[%s7988_s0 + $0x588] sm:$0xff]  ;;  %v61_v62 = vld [vmem:[%s7989_s1 + $0x170] sm:$0xff] }
  0x4f   :  { %1668 = vmatprep.mubr.bf16.mxu1 %v4476_v9  ;;  %1974 = vmatpush1.bf16.msra.mxu0 %v746_v10  ;;  %v4606_v10 = vpack.c.bf16 %v52_v59, %v48_v58  ;;  %v55_v57 = vld [vmem:[%s7989_s1 + $0x140] sm:$0xff]  ;;  %v806_v58 = vpack.c.bf16 %v448_v56, %v443_v55  ;;  %v64_v63 = vld [vmem:[%s7989_s1 + $0x188] sm:$0xff]  ;;  %v66_v3 = vld [vmem:[%s7989_s1 + $0x198] sm:$0xff] }
  0x50   :  { %2327 = vmatpush1.bf16.msra.mxu1 %v826_v13  ;;  %1975 = vmatprep.subr.bf16.mxu0 %v742_v14  ;;  %v459_v13 = vld [vmem:[%s7988_s0 + $0x5e0] sm:$0xff]  ;;  %v453_v14 = vld [vmem:[%s7988_s0 + $0x5b0] sm:$0xff]  ;;  %v70_v4 = vld [vmem:[%s7989_s1 + $0x1b8] sm:$0xff] }
  0x51   :  { %2328 = vmatprep.subr.bf16.mxu1 %v822_v19  ;;  %8298 = vst [vmem:[#allocation12_spill] sm:$0xff] %v4606_v10  ;;  %v812_v16 = vpack.c.bf16 %v459_v13, %v454_v12  ;;  %v811_v19 = vpack.c.bf16 %v458_v17, %v453_v14  ;;  %975 = vperm.xlu0 %3899, %v885_v24   ;;  %v59_v59 = vld [vmem:[%s7989_s1 + $0x160] sm:$0xff]  ;;  %v888_v7 = vld [vmem:[%s7990_s2 + $0x48] sm:$0xff]  ;;  %v889_v14 = vld [vmem:[%s7990_s2 + $0x50] sm:$0xff] }
  0x52   :  { %970 = vperm.xlu1 %3900, %v884_v23   ;;  %v887_v61 = vld [vmem:[%s7990_s2 + $0x40] sm:$0xff]  ;;  %v4730_v12 = vpack.c.bf16 %v61_v62, %v57_v60  ;;  %v274_v17 = vld [vmem:[%s7988_s0 + $0x18] sm:$0xff]  ;;  %v273_v22 = vld [vmem:[%s7988_s0 + $0x10] sm:$0xff] }
  0x53   :  { %1976 = vmatpush1.bf16.msra.mxu0 %v741_v30  ;;  %v56_v30 = vld [vmem:[%s7989_s1 + $0x148] sm:$0xff]  ;;  %v279_v18 = vld [vmem:[%s7988_s0 + $0x40] sm:$0xff]  ;;  %v278_v23 = vld [vmem:[%s7988_s0 + $0x38] sm:$0xff] }
  0x54   :  { %2329 = vmatpush1.bf16.msra.mxu1 %v821_v34  ;;  %1977 = vmatprep.subr.bf16.mxu0 %v737_v35  ;;  %v62_v34 = vld [vmem:[%s7989_s1 + $0x178] sm:$0xff]  ;;  %v4659_v35 = vpack.c.bf16 %v51_v21, %v47_v20  ;;  %v4666_v39 = vpack.c.bf16 %v60_v31, %v56_v30  ;;  %v63_v20 = vld [vmem:[%s7989_s1 + $0x180] sm:$0xff]  ;;  %v722_v21 = vpack.c.bf16 %v279_v18, %v274_v17  ;;  %v433_v31 = vld [vmem:[%s7988_s0 + $0x510] sm:$0xff] }
  0x55   :  { %1316 = vmatmul.mubr.bf16.gmra.mxu0 %v4533_v40  ;;  %2330 = vmatprep.subr.bf16.mxu1 %v817_v47  ;;  %v4674_v44 = vpack.c.bf16 %v62_v34, %v58_v32  ;;  %v727_v47 = vpack.c.bf16 %v289_v41, %v284_v36  ;;  %v434_v24 = vld [vmem:[%s7988_s0 + $0x518] sm:$0xff]  ;;  %v721_v28 = vpack.c.bf16 %v278_v23, %v273_v22  ;;  %v439_v30 = vld [vmem:[%s7988_s0 + $0x540] sm:$0xff]  ;;  %v65_v36 = vld [vmem:[%s7989_s1 + $0x190] sm:$0xff] }
  0x56   :  { %1669 = vmatmul.mubr.bf16.gmra.mxu1 %v4544_v45  ;;  %1325 = vmatprep.mubr.bf16.mxu0 %v4546_v46  ;;  %v438_v32 = vld [vmem:[%s7988_s0 + $0x538] sm:$0xff]  ;;  %v67_v34 = vld [vmem:[%s7989_s1 + $0x1a0] sm:$0xff]  ;;  %v802_v41 = vpack.c.bf16 %v439_v30, %v434_v24  ;;  %v69_v48 = vld [vmem:[%s7989_s1 + $0x1b0] sm:$0xff] }
  0x57   :  { %1678 = vmatprep.mubr.bf16.mxu1 %v4551_v49  ;;  %1978 = vmatpush1.bf16.msra.mxu0 %v736_v50  ;;  %v444_v50 = vld [vmem:[%s7988_s0 + $0x568] sm:$0xff]  ;;  %v801_v43 = vpack.c.bf16 %v438_v32, %v433_v31  ;;  %v4802_v56 = vpack.c.bf16 %v69_v48, %v65_v36  ;;  %v71_v60 = vld [vmem:[%s7989_s1 + $0x1c0] sm:$0xff]  ;;  %v82_v31 = vld [vmem:[%s7989_s1 + $0x218] sm:$0xff] }
  0x58   :  { %2331 = vmatpush1.bf16.msra.mxu1 %v816_v51  ;;  %1979 = vmatprep.subr.bf16.mxu0 %v732_v2  ;;  %v449_v51 = vld [vmem:[%s7988_s0 + $0x590] sm:$0xff]  ;;  %v68_v2 = vld [vmem:[%s7989_s1 + $0x1a8] sm:$0xff]  ;;  %v423_v17 = vld [vmem:[%s7988_s0 + $0x4c0] sm:$0xff] }
  0x59   :  { %2332 = vmatprep.subr.bf16.mxu1 %v812_v16  ;;  %v807_v54 = vpack.c.bf16 %v449_v51, %v444_v50  ;;  %980 = vperm.xlu1 %3900, %v886_v52   ;;  %v4732_v13 = vpack.c.bf16 %v68_v2, %v64_v63  ;;  %v4737_v16 = vpack.c.bf16 %v70_v4, %v66_v3  ;;  %v72_v50 = vld [vmem:[%s7989_s1 + $0x1c8] sm:$0xff]  ;;  %v74_v52 = vld [vmem:[%s7989_s1 + $0x1d8] sm:$0xff]  ;;  %v429_v63 = vld [vmem:[%s7988_s0 + $0x4f0] sm:$0xff] }
  0x5a   :  { %985 = vperm.xlu0 %3899, %v887_v61   ;;  %v76_v51 = vld [vmem:[%s7989_s1 + $0x1e8] sm:$0xff]  ;;  %v75_v61 = vld [vmem:[%s7989_s1 + $0x1e0] sm:$0xff]  ;;  %v73_v2 = vld [vmem:[%s7989_s1 + $0x1d0] sm:$0xff] }
  0x5b   :  { %1980 = vmatpush1.bf16.msra.mxu0 %v731_v11  ;;  %v4728_v11 = vpack.c.bf16 %v59_v59, %v55_v57  ;;  %v892_v55 = vld [vmem:[%s7990_s2 + $0x68] sm:$0xff]  ;;  %v4804_v57 = vpack.c.bf16 %v76_v51, %v72_v50  ;;  %v77_v3 = vld [vmem:[%s7989_s1 + $0x1f0] sm:$0xff]  ;;  %v583_v22 = vld [vmem:[%s7988_s0 + $0x9c0] sm:$0xff]  ;;  %v4869_v36 = vpack.c.bf16 %v75_v61, %v71_v60 }
  0x5c   :  { %2333 = vmatpush1.bf16.msra.mxu1 %v811_v19  ;;  %1981 = vmatprep.subr.bf16.mxu0 %v727_v47  ;;  %v890_v19 = vld [vmem:[%s7990_s2 + $0x58] sm:$0xff]  ;;  %v891_v47 = vld [vmem:[%s7990_s2 + $0x60] sm:$0xff]  ;;  %v424_v62 = vld [vmem:[%s7988_s0 + $0x4c8] sm:$0xff] }
  0x5d   :  { %1326 = vmatmul.mubr.bf16.gmra.mxu0 %v4593_v0  ;;  %2334 = vmatprep.subr.bf16.mxu1 %v807_v54  ;;  %v4797_v54 = vpack.c.bf16 %v67_v34, %v63_v20  ;;  %v80_v4 = vld [vmem:[%s7989_s1 + $0x208] sm:$0xff]  ;;  %v895_v30 = vld [vmem:[%s7990_s2 + $0x80] sm:$0xff]  ;;  %v86_v32 = vld [vmem:[%s7989_s1 + $0x238] sm:$0xff] }
  0x5e   :  { %1679 = vmatmul.mubr.bf16.gmra.mxu1 %v4604_v8  ;;  %1335 = vmatprep.mubr.bf16.mxu0 %v4606_v10  ;;  %v428_v18 = vld [vmem:[%s7988_s0 + $0x4e8] sm:$0xff]  ;;  %v897_v48 = vld [vmem:[%s7990_s2 + $0x90] sm:$0xff]  ;;  %v4881_v50 = vpack.c.bf16 %v86_v32, %v82_v31  ;;  %v79_v51 = vld [vmem:[%s7989_s1 + $0x200] sm:$0xff] }
  0x5f   :  { %1688 = vmatprep.mubr.bf16.mxu1 %v4617_v15  ;;  %1982 = vmatpush1.bf16.msra.mxu0 %v726_v53  ;;  %v78_v53 = vld [vmem:[%s7989_s1 + $0x1f8] sm:$0xff]  ;;  %v584_v20 = vld [vmem:[%s7988_s0 + $0x9c8] sm:$0xff] }
  0x60   :  { %2335 = vmatpush1.bf16.msra.mxu1 %v806_v58  ;;  %990 = vperm.xlu1 %3900, %v888_v7   ;;  %v893_v58 = vld [vmem:[%s7990_s2 + $0x70] sm:$0xff]  ;;  %v4809_v59 = vpack.c.bf16 %v78_v53, %v74_v52  ;;  %v797_v7 = vpack.c.bf16 %v429_v63, %v424_v62  ;;  %v84_v23 = vld [vmem:[%s7989_s1 + $0x228] sm:$0xff]  ;;  %8300 = vst [vmem:[#allocation14_spill] sm:$0xff] %v4881_v50  ;;  %v83_v52 = vld [vmem:[%s7989_s1 + $0x220] sm:$0xff] }
  0x61   :  { %995 = vperm.xlu0 %3899, %v889_v14   ;;  %1983 = vmatprep.subr.bf16.mxu0 %v722_v21  ;;  %v894_v14 = vld [vmem:[%s7990_s2 + $0x78] sm:$0xff]  ;;  %v589_v21 = vld [vmem:[%s7988_s0 + $0x9f0] sm:$0xff]  ;;  %v92_v60 = vld [vmem:[%s7989_s1 + $0x268] sm:$0xff] }
  0x62   :  { %2336 = vmatprep.subr.bf16.mxu1 %v802_v41  ;;  %v877_v24 = vpack.c.bf16 %v589_v21, %v584_v20  ;;  %v4871_v41 = vpack.c.bf16 %v77_v3, %v73_v2  ;;  %v81_v53 = vld [vmem:[%s7989_s1 + $0x210] sm:$0xff]  ;;  %v414_v61 = vld [vmem:[%s7988_s0 + $0x478] sm:$0xff]  ;;  %v419_v2 = vld [vmem:[%s7988_s0 + $0x4a0] sm:$0xff] }
  0x63   :  { %1984 = vmatpush1.bf16.msra.mxu0 %v721_v28  ;;  %v588_v28 = vld [vmem:[%s7988_s0 + $0x9e8] sm:$0xff]  ;;  %v90_v62 = vld [vmem:[%s7989_s1 + $0x258] sm:$0xff]  ;;  %v573_v21 = vld [vmem:[%s7988_s0 + $0x970] sm:$0xff] }
  0x64   :  { %1000 = vperm.xlu1 %3900, %v890_v19   ;;  %2337 = vmatpush1.bf16.msra.mxu1 %v801_v43  ;;  %v796_v19 = vpack.c.bf16 %v428_v18, %v423_v17  ;;  %v876_v34 = vpack.c.bf16 %v588_v28, %v583_v22  ;;  %v4873_v43 = vpack.c.bf16 %v84_v23, %v80_v4  ;;  %v94_v63 = vld [vmem:[%s7989_s1 + $0x278] sm:$0xff]  ;;  %v413_v4 = vld [vmem:[%s7988_s0 + $0x470] sm:$0xff]  ;;  %v579_v18 = vld [vmem:[%s7988_s0 + $0x9a0] sm:$0xff] }
  0x65   :  { %1336 = vmatmul.mubr.bf16.gmra.mxu0 %v4659_v35  ;;  %1005 = vperm.xlu0 %3899, %v891_v47   ;;  %v896_v47 = vld [vmem:[%s7990_s2 + $0x88] sm:$0xff]  ;;  %v898_v3 = vld [vmem:[%s7990_s2 + $0x98] sm:$0xff]  ;;  %v899_v23 = vld [vmem:[%s7990_s2 + $0xa0] sm:$0xff]  ;;  %v4947_v32 = vpack.c.bf16 %v94_v63, %v90_v62 }
  0x66   :  { %1689 = vmatmul.mubr.bf16.gmra.mxu1 %v4664_v37  ;;  %1345 = vmatprep.mubr.bf16.mxu0 %v4666_v39  ;;  %v574_v17 = vld [vmem:[%s7988_s0 + $0x978] sm:$0xff]  ;;  %v404_v62 = vld [vmem:[%s7988_s0 + $0x428] sm:$0xff]  ;;  %v409_v63 = vld [vmem:[%s7988_s0 + $0x450] sm:$0xff] }
  0x67   :  { %1698 = vmatprep.mubr.bf16.mxu1 %v4674_v44  ;;  %1985 = vmatprep.subr.bf16.mxu0 %v797_v7  ;;  %v792_v7 = vpack.c.bf16 %v419_v2, %v414_v61  ;;  %v872_v20 = vpack.c.bf16 %v579_v18, %v574_v17  ;;  %v578_v22 = vld [vmem:[%s7988_s0 + $0x998] sm:$0xff]  ;;  %8303 = vst [vmem:[#allocation17_spill] sm:$0xff] %v4947_v32 }
  0x68   :  { %1010 = vperm.xlu1 %3900, %v892_v55   ;;  %1986 = vmatpush2.bf16.msra.mxu0 %v796_v19  ;;  %v85_v55 = vld [vmem:[%s7989_s1 + $0x230] sm:$0xff]  ;;  %v871_v28 = vpack.c.bf16 %v578_v22, %v573_v21  ;;  %v102_v61 = vld [vmem:[%s7989_s1 + $0x2b8] sm:$0xff]  ;;  %v568_v21 = vld [vmem:[%s7988_s0 + $0x948] sm:$0xff] }
  0x69   :  { %1015 = vperm.xlu0 %3899, %v893_v58   ;;  %2338 = vmatprep.subr.bf16.mxu1 %v877_v24  ;;  %v88_v58 = vld [vmem:[%s7989_s1 + $0x248] sm:$0xff]  ;;  %v4941_v24 = vpack.c.bf16 %v83_v52, %v79_v51  ;;  %v901_v51 = vld [vmem:[%s7990_s2 + $0xb0] sm:$0xff]  ;;  %v902_v2 = vld [vmem:[%s7990_s2 + $0xb8] sm:$0xff] }
  0x6a   :  { %2339 = vmatpush2.bf16.msra.mxu1 %v876_v34  ;;  %1987 = vmatprep.subr.bf16.mxu0 %v792_v7  ;;  %v4945_v31 = vpack.c.bf16 %v92_v60, %v88_v58  ;;  %v900_v34 = vld [vmem:[%s7990_s2 + $0xa8] sm:$0xff]  ;;  %v89_v52 = vld [vmem:[%s7989_s1 + $0x250] sm:$0xff]  ;;  %v98_v60 = vld [vmem:[%s7989_s1 + $0x298] sm:$0xff] }
  0x6b   :  { %2340 = vmatprep.subr.bf16.mxu1 %v872_v20  ;;  %v100_v58 = vld [vmem:[%s7989_s1 + $0x2a8] sm:$0xff]  ;;  %v563_v20 = vld [vmem:[%s7988_s0 + $0x920] sm:$0xff] }
  0x6c   :  { %1020 = vperm.xlu1 %3900, %v894_v14   ;;  %v418_v14 = vld [vmem:[%s7988_s0 + $0x498] sm:$0xff]  ;;  %8302 = vst [vmem:[#allocation16_spill] sm:$0xff] %v4945_v31  ;;  %v408_v7 = vld [vmem:[%s7988_s0 + $0x448] sm:$0xff] }
  0x6d   :  { %1346 = vmatmul.mubr.bf16.gmra.mxu0 %v4728_v11  ;;  %1025 = vperm.xlu0 %3899, %v895_v30   ;;  %v791_v19 = vpack.c.bf16 %v418_v14, %v413_v4  ;;  %v4943_v30 = vpack.c.bf16 %v85_v55, %v81_v53  ;;  %v93_v53 = vld [vmem:[%s7989_s1 + $0x270] sm:$0xff]  ;;  %v96_v55 = vld [vmem:[%s7989_s1 + $0x288] sm:$0xff]  ;;  %v403_v4 = vld [vmem:[%s7988_s0 + $0x420] sm:$0xff] }
  0x6e   :  { %1699 = vmatmul.mubr.bf16.gmra.mxu1 %v4730_v12  ;;  %1355 = vmatprep.mubr.bf16.mxu0 %v4732_v13  ;;  %v564_v14 = vld [vmem:[%s7988_s0 + $0x928] sm:$0xff]  ;;  %v786_v18 = vpack.c.bf16 %v408_v7, %v403_v4  ;;  %v5012_v22 = vpack.c.bf16 %v93_v53, %v89_v52  ;;  %v905_v53 = vld [vmem:[%s7990_s2 + $0xd0] sm:$0xff]  ;;  %v399_v4 = vld [vmem:[%s7988_s0 + $0x400] sm:$0xff] }
  0x6f   :  { %1708 = vmatprep.mubr.bf16.mxu1 %v4737_v16  ;;  %8301 = vst [vmem:[#allocation15_spill] sm:$0xff] %v4943_v30  ;;  %1988 = vmatpush2.bf16.msra.mxu0 %v791_v19  ;;  %v569_v19 = vld [vmem:[%s7988_s0 + $0x950] sm:$0xff]  ;;  %v904_v52 = vld [vmem:[%s7990_s2 + $0xc8] sm:$0xff] }
  0x70   :  { %1030 = vperm.xlu1 %3900, %v896_v47   ;;  %2341 = vmatpush2.bf16.msra.mxu1 %v871_v28  ;;  %v87_v47 = vld [vmem:[%s7989_s1 + $0x240] sm:$0xff]  ;;  %8305 = vst [vmem:[#allocation19_spill] sm:$0xff] %v5012_v22  ;;  %v867_v28 = vpack.c.bf16 %v569_v19, %v564_v14  ;;  %v393_v19 = vld [vmem:[%s7988_s0 + $0x3d0] sm:$0xff] }
  0x71   :  { %1035 = vperm.xlu0 %3899, %v897_v48   ;;  %v91_v48 = vld [vmem:[%s7989_s1 + $0x260] sm:$0xff] }
  0x72   :  { %v5001_v17 = vpack.c.bf16 %v91_v48, %v87_v47  ;;  %v903_v47 = vld [vmem:[%s7990_s2 + $0xc0] sm:$0xff]  ;;  %v5019_v48 = vpack.c.bf16 %v102_v61, %v98_v60  ;;  %2342 = vmatprep.subr.bf16.mxu1 %v867_v28  ;;  %v101_v60 = vld [vmem:[%s7989_s1 + $0x2b0] sm:$0xff]  ;;  %v104_v61 = vld [vmem:[%s7989_s1 + $0x2c8] sm:$0xff] }
  0x74   :  { %1040 = vperm.xlu1 %3900, %v898_v3   ;;  %v787_v3 = vpack.c.bf16 %v409_v63, %v404_v62  ;;  %8304 = vst [vmem:[#allocation18_spill] sm:$0xff] %v5001_v17  ;;  %8307 = vst [vmem:[#allocation21_spill] sm:$0xff] %v5019_v48  ;;  %v108_v62 = vld [vmem:[%s7989_s1 + $0x2e8] sm:$0xff]  ;;  %v106_v63 = vld [vmem:[%s7989_s1 + $0x2d8] sm:$0xff] }
  0x75   :  { %1356 = vmatmul.mubr.bf16.gmra.mxu0 %v4797_v54  ;;  %1045 = vperm.xlu0 %3899, %v899_v23   ;;  %v5014_v23 = vpack.c.bf16 %v100_v58, %v96_v55  ;;  %v99_v55 = vld [vmem:[%s7989_s1 + $0x2a0] sm:$0xff]  ;;  %v97_v58 = vld [vmem:[%s7989_s1 + $0x290] sm:$0xff]  ;;  %v5074_v28 = vpack.c.bf16 %v108_v62, %v104_v61 }
  0x76   :  { %1709 = vmatmul.mubr.bf16.gmra.mxu1 %v4802_v56  ;;  %1365 = vmatprep.mubr.bf16.mxu0 %v4804_v57  ;;  %v103_v62 = vld [vmem:[%s7989_s1 + $0x2c0] sm:$0xff] }
  0x77   :  { %1718 = vmatprep.mubr.bf16.mxu1 %v4809_v59  ;;  %8306 = vst [vmem:[#allocation20_spill] sm:$0xff] %v5014_v23  ;;  %1989 = vmatprep.subr.bf16.mxu0 %v787_v3  ;;  %v394_v3 = vld [vmem:[%s7988_s0 + $0x3d8] sm:$0xff]  ;;  %8310 = vst [vmem:[#allocation24_spill] sm:$0xff] %v5074_v28 }
  0x78   :  { %1050 = vperm.xlu1 %3900, %v900_v34   ;;  %v866_v34 = vpack.c.bf16 %v568_v21, %v563_v20  ;;  %1990 = vmatpush2.bf16.msra.mxu0 %v786_v18  ;;  %v782_v14 = vpack.c.bf16 %v399_v4, %v394_v3  ;;  %v906_v18 = vld [vmem:[%s7990_s2 + $0xd8] sm:$0xff]  ;;  %v5072_v21 = vpack.c.bf16 %v101_v60, %v97_v58  ;;  %v907_v60 = vld [vmem:[%s7990_s2 + $0xe0] sm:$0xff]  ;;  %v908_v3 = vld [vmem:[%s7990_s2 + $0xe8] sm:$0xff] }
  0x79   :  { %1055 = vperm.xlu0 %3899, %v901_v51   ;;  %v95_v51 = vld [vmem:[%s7989_s1 + $0x280] sm:$0xff]  ;;  %v398_v20 = vld [vmem:[%s7988_s0 + $0x3f8] sm:$0xff]  ;;  %v909_v4 = vld [vmem:[%s7990_s2 + $0xf0] sm:$0xff] }
  0x7a   :  { %2343 = vmatpush2.bf16.msra.mxu1 %v866_v34  ;;  %v5061_v7 = vpack.c.bf16 %v99_v55, %v95_v51  ;;  %8309 = vst [vmem:[#allocation23_spill] sm:$0xff] %v5072_v21  ;;  %v781_v34 = vpack.c.bf16 %v398_v20, %v393_v19  ;;  %v559_v51 = vld [vmem:[%s7988_s0 + $0x900] sm:$0xff]  ;;  %1991 = vmatprep.subr.bf16.mxu0 %v782_v14  ;;  %v558_v58 = vld [vmem:[%s7988_s0 + $0x8f8] sm:$0xff]  ;;  %v109_v14 = vld [vmem:[%s7989_s1 + $0x2f0] sm:$0xff] }
  0x7b   :  { %v116_v19 = vld [vmem:[%s7989_s1 + $0x328] sm:$0xff]  ;;  %v114_v20 = vld [vmem:[%s7989_s1 + $0x318] sm:$0xff] }
  0x7c   :  { %1060 = vperm.xlu1 %3900, %v902_v2   ;;  %v110_v2 = vld [vmem:[%s7989_s1 + $0x2f8] sm:$0xff]  ;;  %8308 = vst [vmem:[#allocation22_spill] sm:$0xff] %v5061_v7  ;;  %1992 = vmatpush2.bf16.msra.mxu0 %v781_v34 }
  0x7d   :  { %1366 = vmatmul.mubr.bf16.gmra.mxu0 %v4869_v36  ;;  %1065 = vperm.xlu0 %3899, %v903_v47   ;;  %v554_v47 = vld [vmem:[%s7988_s0 + $0x8d8] sm:$0xff] }
  0x7e   :  { %1719 = vmatmul.mubr.bf16.gmra.mxu1 %v4871_v41  ;;  %1375 = vmatprep.mubr.bf16.mxu0 %v4873_v43  ;;  %v862_v55 = vpack.c.bf16 %v559_v51, %v554_v47  ;;  %v118_v34 = vld [vmem:[%s7989_s1 + $0x338] sm:$0xff]  ;;  %v384_v51 = vld [vmem:[%s7988_s0 + $0x388] sm:$0xff] }
  0x7f   :  { %1728 = vmatprep.mubr.bf16.mxu1 %v4881_v50 }
  0x80   :  { %1070 = vperm.xlu1 %3900, %v904_v52   ;;  %v553_v52 = vld [vmem:[%s7988_s0 + $0x8d0] sm:$0xff]  ;;  %2344 = vmatprep.subr.bf16.mxu1 %v862_v55 }
  0x81   :  { %1075 = vperm.xlu0 %3899, %v905_v53   ;;  %v5085_v53 = vpack.c.bf16 %v110_v2, %v106_v63  ;;  %v861_v61 = vpack.c.bf16 %v558_v58, %v553_v52  ;;  %v107_v63 = vld [vmem:[%s7989_s1 + $0x2e0] sm:$0xff]  ;;  %v105_v2 = vld [vmem:[%s7989_s1 + $0x2d0] sm:$0xff] }
  0x82   :  { %v5127_v47 = vpack.c.bf16 %v107_v63, %v103_v62  ;;  %v5132_v52 = vpack.c.bf16 %v109_v14, %v105_v2  ;;  %v389_v58 = vld [vmem:[%s7988_s0 + $0x3b0] sm:$0xff]  ;;  %v5145_v62 = vpack.c.bf16 %v118_v34, %v114_v20  ;;  %v388_v2 = vld [vmem:[%s7988_s0 + $0x3a8] sm:$0xff]  ;;  %v111_v34 = vld [vmem:[%s7989_s1 + $0x300] sm:$0xff] }
  0x83   :  { %8311 = vst [vmem:[#allocation25_spill] sm:$0xff] %v5085_v53  ;;  %2345 = vmatpush2.bf16.msra.mxu1 %v861_v61  ;;  %v383_v61 = vld [vmem:[%s7988_s0 + $0x380] sm:$0xff]  ;;  %v777_v63 = vpack.c.bf16 %v389_v58, %v384_v51  ;;  %v548_v20 = vld [vmem:[%s7988_s0 + $0x8a8] sm:$0xff] }
  0x84   :  { %1080 = vperm.xlu1 %3900, %v906_v18   ;;  %v112_v18 = vld [vmem:[%s7989_s1 + $0x308] sm:$0xff]  ;;  %8312 = vst [vmem:[#allocation26_spill] sm:$0xff] %v5127_v47  ;;  %8313 = vst [vmem:[#allocation27_spill] sm:$0xff] %v5132_v52  ;;  %v776_v14 = vpack.c.bf16 %v388_v2, %v383_v61  ;;  %v911_v58 = vld [vmem:[%s7990_s2 + $0x100] sm:$0xff] }
  0x85   :  { %1376 = vmatmul.mubr.bf16.gmra.mxu0 %v4941_v24  ;;  %1085 = vperm.xlu0 %3899, %v907_v60   ;;  %v5134_v55 = vpack.c.bf16 %v116_v19, %v112_v18  ;;  %v910_v60 = vld [vmem:[%s7990_s2 + $0xf8] sm:$0xff]  ;;  %8315 = vst [vmem:[#allocation29_spill] sm:$0xff] %v5145_v62  ;;  %v543_v19 = vld [vmem:[%s7988_s0 + $0x880] sm:$0xff]  ;;  %v113_v61 = vld [vmem:[%s7989_s1 + $0x310] sm:$0xff] }
  0x86   :  { %1729 = vmatmul.mubr.bf16.gmra.mxu1 %v4943_v30  ;;  %1385 = vmatprep.mubr.bf16.mxu0 %v4945_v31  ;;  %v856_v51 = vpack.c.bf16 %v548_v20, %v543_v19  ;;  %v120_v2 = vld [vmem:[%s7989_s1 + $0x348] sm:$0xff]  ;;  %v122_v19 = vld [vmem:[%s7989_s1 + $0x358] sm:$0xff] }
  0x87   :  { %1738 = vmatprep.mubr.bf16.mxu1 %v4947_v32  ;;  %8314 = vst [vmem:[#allocation28_spill] sm:$0xff] %v5134_v55  ;;  %1993 = vmatprep.subr.bf16.mxu0 %v777_v63  ;;  %v117_v63 = vld [vmem:[%s7989_s1 + $0x330] sm:$0xff]  ;;  %v126_v20 = vld [vmem:[%s7989_s1 + $0x378] sm:$0xff] }
  0x88   :  { %1090 = vperm.xlu1 %3900, %v908_v3   ;;  %v544_v3 = vld [vmem:[%s7988_s0 + $0x888] sm:$0xff]  ;;  %1994 = vmatpush2.bf16.msra.mxu0 %v776_v14  ;;  %v913_v14 = vld [vmem:[%s7990_s2 + $0x110] sm:$0xff] }
  0x89   :  { %1095 = vperm.xlu0 %3899, %v909_v4   ;;  %v549_v4 = vld [vmem:[%s7988_s0 + $0x8b0] sm:$0xff] }
  0x8a   :  { %v857_v18 = vpack.c.bf16 %v549_v4, %v544_v3  ;;  %v124_v3 = vld [vmem:[%s7989_s1 + $0x368] sm:$0xff] }
  0x8b   :  { %v912_v4 = vld [vmem:[%s7990_s2 + $0x108] sm:$0xff] }
  0x8c   :  { %1100 = vperm.xlu1 %3900, %v910_v60   ;;  %v115_v60 = vld [vmem:[%s7989_s1 + $0x320] sm:$0xff]  ;;  %2346 = vmatprep.subr.bf16.mxu1 %v857_v18 }
  0x8d   :  { %1386 = vmatmul.mubr.bf16.gmra.mxu0 %v5001_v17  ;;  %1105 = vperm.xlu0 %3899, %v911_v58   ;;  %v5196_v25 = vpack.c.bf16 %v115_v60, %v111_v34  ;;  %v379_v18 = vld [vmem:[%s7988_s0 + $0x360] sm:$0xff]  ;;  %v914_v34 = vld [vmem:[%s7990_s2 + $0x118] sm:$0xff]  ;;  %v373_v60 = vld [vmem:[%s7988_s0 + $0x330] sm:$0xff] }
  0x8e   :  { %1739 = vmatmul.mubr.bf16.gmra.mxu1 %v5012_v22  ;;  %1395 = vmatprep.mubr.bf16.mxu0 %v5014_v23 }
  0x8f   :  { %1748 = vmatprep.mubr.bf16.mxu1 %v5019_v48  ;;  %8316 = vst [vmem:[#allocation30_spill] sm:$0xff] %v5196_v25  ;;  %2347 = vmatpush2.bf16.msra.mxu1 %v856_v51  ;;  %v119_v51 = vld [vmem:[%s7989_s1 + $0x340] sm:$0xff] }
  0x90   :  { %1110 = vperm.xlu1 %3900, %v912_v4   ;;  %v538_v4 = vld [vmem:[%s7988_s0 + $0x858] sm:$0xff] }
  0x91   :  { %1115 = vperm.xlu0 %3899, %v913_v14  }
  0x94   :  { %1120 = vperm.xlu1 %3900, %v914_v34   ;;  %v915_v34 = vld [vmem:[%s7990_s2 + $0x120] sm:$0xff] }
  0x95   :  { %1396 = vmatmul.mubr.bf16.gmra.mxu0 %v5061_v7  ;;  %1125 = vperm.xlu0 %3899, %v915_v34  }
  0x96   :  { %1749 = vmatmul.mubr.bf16.gmra.mxu1 %v5072_v21  ;;  %1405 = vmatprep.mubr.bf16.mxu0 %v5074_v28  ;;  %v921_v28 = vld [vmem:[%s7990_s2 + $0x150] sm:$0xff] }
  0x97   :  { %1758 = vmatprep.mubr.bf16.mxu1 %v5085_v53  ;;  %v920_v53 = vld [vmem:[%s7990_s2 + $0x148] sm:$0xff] }
  0x9d   :  { %1406 = vmatmul.mubr.bf16.gmra.mxu0 %v5127_v47  ;;  %v374_v47 = vld [vmem:[%s7988_s0 + $0x338] sm:$0xff] }
  0x9e   :  { %1759 = vmatmul.mubr.bf16.gmra.mxu1 %v5132_v52  ;;  %1415 = vmatprep.mubr.bf16.mxu0 %v5134_v55  ;;  %v5203_v55 = vpack.c.bf16 %v124_v3, %v120_v2  ;;  %v5205_v52 = vpack.c.bf16 %v126_v20, %v122_v19  ;;  %v772_v58 = vpack.c.bf16 %v379_v18, %v374_v47  ;;  %v539_v47 = vld [vmem:[%s7988_s0 + $0x860] sm:$0xff]  ;;  %v533_v3 = vld [vmem:[%s7988_s0 + $0x830] sm:$0xff] }
  0x9f   :  { %1768 = vmatprep.mubr.bf16.mxu1 %v5145_v62  ;;  %v5201_v62 = vpack.c.bf16 %v117_v63, %v113_v61  ;;  %v378_v61 = vld [vmem:[%s7988_s0 + $0x358] sm:$0xff]  ;;  %v123_v19 = vld [vmem:[%s7989_s1 + $0x360] sm:$0xff]  ;;  %v121_v20 = vld [vmem:[%s7989_s1 + $0x350] sm:$0xff]  ;;  %v851_v18 = vpack.c.bf16 %v538_v4, %v533_v3 }
  0xa0   :  { %8318 = vst [vmem:[#allocation32_spill] sm:$0xff] %v5203_v55  ;;  %8319 = vst [vmem:[#allocation33_spill] sm:$0xff] %v5205_v52  ;;  %v534_v63 = vld [vmem:[%s7988_s0 + $0x838] sm:$0xff]  ;;  %v771_v2 = vpack.c.bf16 %v378_v61, %v373_v60  ;;  %v125_v60 = vld [vmem:[%s7989_s1 + $0x370] sm:$0xff]  ;;  %1995 = vmatprep.subr.bf16.mxu0 %v772_v58  ;;  %v5265_v3 = vpack.c.bf16 %v123_v19, %v119_v51 }
  0xa1   :  { %8317 = vst [vmem:[#allocation31_spill] sm:$0xff] %v5201_v62  ;;  %v852_v14 = vpack.c.bf16 %v539_v47, %v534_v63  ;;  %v128_v61 = vld [vmem:[%s7989_s1 + $0x388] sm:$0xff]  ;;  %v130_v63 = vld [vmem:[%s7989_s1 + $0x398] sm:$0xff]  ;;  %v127_v51 = vld [vmem:[%s7989_s1 + $0x380] sm:$0xff] }
  0xa2   :  { %v134_v47 = vld [vmem:[%s7989_s1 + $0x3b8] sm:$0xff]  ;;  %1996 = vmatpush2.bf16.msra.mxu0 %v771_v2  ;;  %8320 = vst [vmem:[#allocation34_spill] sm:$0xff] %v5265_v3  ;;  %v916_v4 = vld [vmem:[%s7990_s2 + $0x128] sm:$0xff]  ;;  %v131_v2 = vld [vmem:[%s7989_s1 + $0x3a0] sm:$0xff] }
  0xa3   :  { %2348 = vmatprep.subr.bf16.mxu1 %v852_v14  ;;  %1130 = vperm.xlu1 %3900, %v916_v4   ;;  %v369_v19 = vld [vmem:[%s7988_s0 + $0x310] sm:$0xff] }
  0xa4   :  { %2349 = vmatpush2.bf16.msra.mxu1 %v851_v18  ;;  %v133_v14 = vld [vmem:[%s7989_s1 + $0x3b0] sm:$0xff]  ;;  %v136_v18 = vld [vmem:[%s7989_s1 + $0x3c8] sm:$0xff] }
  0xa5   :  { %1416 = vmatmul.mubr.bf16.gmra.mxu0 %v5196_v25  ;;  %v5277_v25 = vpack.c.bf16 %v134_v47, %v130_v63  ;;  %v368_v63 = vld [vmem:[%s7988_s0 + $0x308] sm:$0xff]  ;;  %v529_v4 = vld [vmem:[%s7988_s0 + $0x810] sm:$0xff] }
  0xa6   :  { %1769 = vmatmul.mubr.bf16.gmra.mxu1 %v5201_v62  ;;  %1425 = vmatprep.mubr.bf16.mxu0 %v5203_v55  ;;  %v132_v55 = vld [vmem:[%s7989_s1 + $0x3a8] sm:$0xff]  ;;  %v917_v62 = vld [vmem:[%s7990_s2 + $0x130] sm:$0xff] }
  0xa7   :  { %1778 = vmatprep.mubr.bf16.mxu1 %v5205_v52  ;;  %v5270_v52 = vpack.c.bf16 %v125_v60, %v121_v20  ;;  %v5272_v58 = vpack.c.bf16 %v132_v55, %v128_v61  ;;  %8323 = vst [vmem:[#allocation37_spill] sm:$0xff] %v5277_v25  ;;  %v364_v55 = vld [vmem:[%s7988_s0 + $0x2e8] sm:$0xff]  ;;  %v129_v20 = vld [vmem:[%s7989_s1 + $0x390] sm:$0xff]  ;;  %1135 = vperm.xlu0 %3899, %v917_v62   ;;  %v918_v60 = vld [vmem:[%s7990_s2 + $0x138] sm:$0xff] }
  0xa8   :  { %v767_v34 = vpack.c.bf16 %v369_v19, %v364_v55  ;;  %v363_v61 = vld [vmem:[%s7988_s0 + $0x2e0] sm:$0xff]  ;;  %v524_v62 = vld [vmem:[%s7988_s0 + $0x7e8] sm:$0xff]  ;;  %1140 = vperm.xlu1 %3900, %v918_v60  }
  0xa9   :  { %8321 = vst [vmem:[#allocation35_spill] sm:$0xff] %v5270_v52  ;;  %8322 = vst [vmem:[#allocation36_spill] sm:$0xff] %v5272_v58  ;;  %v766_v47 = vpack.c.bf16 %v368_v63, %v363_v61  ;;  %v523_v55 = vld [vmem:[%s7988_s0 + $0x7e0] sm:$0xff]  ;;  %v140_v19 = vld [vmem:[%s7989_s1 + $0x3e8] sm:$0xff]  ;;  %v847_v61 = vpack.c.bf16 %v529_v4, %v524_v62  ;;  %v5337_v62 = vpack.c.bf16 %v131_v2, %v127_v51 }
  0xaa   :  { %1997 = vmatprep.subr.bf16.mxu0 %v767_v34  ;;  %v528_v63 = vld [vmem:[%s7988_s0 + $0x808] sm:$0xff]  ;;  %v5339_v4 = vpack.c.bf16 %v133_v14, %v129_v20  ;;  %v139_v51 = vld [vmem:[%s7989_s1 + $0x3e0] sm:$0xff]  ;;  %v146_v20 = vld [vmem:[%s7989_s1 + $0x418] sm:$0xff] }
  0xab   :  { %1998 = vmatpush2.bf16.msra.mxu0 %v766_v47  ;;  %v846_v34 = vpack.c.bf16 %v528_v63, %v523_v55  ;;  %8324 = vst [vmem:[#allocation38_spill] sm:$0xff] %v5337_v62  ;;  %2350 = vmatprep.subr.bf16.mxu1 %v847_v61  ;;  %v148_v2 = vld [vmem:[%s7989_s1 + $0x428] sm:$0xff]  ;;  %v150_v14 = vld [vmem:[%s7989_s1 + $0x438] sm:$0xff]  ;;  %v359_v61 = vld [vmem:[%s7988_s0 + $0x2c0] sm:$0xff] }
  0xac   :  { %8325 = vst [vmem:[#allocation39_spill] sm:$0xff] %v5339_v4  ;;  %1150 = vperm.xlu1 %3900, %v920_v53   ;;  %v922_v53 = vld [vmem:[%s7990_s2 + $0x158] sm:$0xff]  ;;  %v923_v63 = vld [vmem:[%s7990_s2 + $0x160] sm:$0xff] }
  0xad   :  { %1426 = vmatmul.mubr.bf16.gmra.mxu0 %v5265_v3  ;;  %v5341_v3 = vpack.c.bf16 %v140_v19, %v136_v18  ;;  %2351 = vmatpush2.bf16.msra.mxu1 %v846_v34  ;;  %v354_v19 = vld [vmem:[%s7988_s0 + $0x298] sm:$0xff]  ;;  %v5397_v34 = vpack.c.bf16 %v150_v14, %v146_v20  ;;  %v152_v20 = vld [vmem:[%s7989_s1 + $0x448] sm:$0xff] }
  0xae   :  { %1779 = vmatmul.mubr.bf16.gmra.mxu1 %v5270_v52  ;;  %1435 = vmatprep.mubr.bf16.mxu0 %v5272_v58  ;;  %v919_v58 = vld [vmem:[%s7990_s2 + $0x140] sm:$0xff]  ;;  %v138_v52 = vld [vmem:[%s7989_s1 + $0x3d8] sm:$0xff] }
  0xaf   :  { %1788 = vmatprep.mubr.bf16.mxu1 %v5277_v25  ;;  %v142_v25 = vld [vmem:[%s7989_s1 + $0x3f8] sm:$0xff]  ;;  %1145 = vperm.xlu0 %3899, %v919_v58   ;;  %8326 = vst [vmem:[#allocation40_spill] sm:$0xff] %v5341_v3  ;;  %v135_v58 = vld [vmem:[%s7989_s1 + $0x3c0] sm:$0xff]  ;;  %8331 = vst [vmem:[#allocation45_spill] sm:$0xff] %v5397_v34 }
  0xb0   :  { %v5349_v60 = vpack.c.bf16 %v142_v25, %v138_v52  ;;  %v137_v25 = vld [vmem:[%s7989_s1 + $0x3d0] sm:$0xff]  ;;  %v144_v52 = vld [vmem:[%s7989_s1 + $0x408] sm:$0xff]  ;;  %1160 = vperm.xlu1 %3900, %v922_v53   ;;  %v5382_v18 = vpack.c.bf16 %v139_v51, %v135_v58  ;;  %v762_v58 = vpack.c.bf16 %v359_v61, %v354_v19  ;;  %v143_v51 = vld [vmem:[%s7989_s1 + $0x400] sm:$0xff] }
  0xb1   :  { %v5386_v55 = vpack.c.bf16 %v148_v2, %v144_v52  ;;  %v353_v53 = vld [vmem:[%s7988_s0 + $0x290] sm:$0xff]  ;;  %v514_v19 = vld [vmem:[%s7988_s0 + $0x798] sm:$0xff]  ;;  %v519_v61 = vld [vmem:[%s7988_s0 + $0x7c0] sm:$0xff] }
  0xb2   :  { %8327 = vst [vmem:[#allocation41_spill] sm:$0xff] %v5349_v60  ;;  %8328 = vst [vmem:[#allocation42_spill] sm:$0xff] %v5382_v18  ;;  %v145_v52 = vld [vmem:[%s7989_s1 + $0x410] sm:$0xff]  ;;  %1999 = vmatprep.subr.bf16.mxu0 %v762_v58  ;;  %v156_v58 = vld [vmem:[%s7989_s1 + $0x468] sm:$0xff] }
  0xb3   :  { %1155 = vperm.xlu0 %3899, %v921_v28   ;;  %v141_v28 = vld [vmem:[%s7989_s1 + $0x3f0] sm:$0xff]  ;;  %8330 = vst [vmem:[#allocation44_spill] sm:$0xff] %v5386_v55 }
  0xb4   :  { %v5384_v47 = vpack.c.bf16 %v141_v28, %v137_v25  ;;  %v147_v25 = vld [vmem:[%s7989_s1 + $0x420] sm:$0xff]  ;;  %v358_v28 = vld [vmem:[%s7988_s0 + $0x2b8] sm:$0xff]  ;;  %v149_v2 = vld [vmem:[%s7989_s1 + $0x430] sm:$0xff] }
  0xb5   :  { %1436 = vmatmul.mubr.bf16.gmra.mxu0 %v5337_v62  ;;  %v761_v14 = vpack.c.bf16 %v358_v28, %v353_v53  ;;  %v842_v53 = vpack.c.bf16 %v519_v61, %v514_v19  ;;  %v518_v28 = vld [vmem:[%s7988_s0 + $0x7b8] sm:$0xff]  ;;  %v5449_v19 = vpack.c.bf16 %v147_v25, %v143_v51  ;;  %v5451_v61 = vpack.c.bf16 %v149_v2, %v145_v52  ;;  %v160_v51 = vld [vmem:[%s7989_s1 + $0x488] sm:$0xff] }
  0xb6   :  { %1789 = vmatmul.mubr.bf16.gmra.mxu1 %v5339_v4  ;;  %1445 = vmatprep.mubr.bf16.mxu0 %v5341_v3  ;;  %8329 = vst [vmem:[#allocation43_spill] sm:$0xff] %v5384_v47  ;;  %v925_v3 = vld [vmem:[%s7990_s2 + $0x170] sm:$0xff]  ;;  %v164_v25 = vld [vmem:[%s7989_s1 + $0x4a8] sm:$0xff]  ;;  %v162_v52 = vld [vmem:[%s7989_s1 + $0x498] sm:$0xff] }
  0xb7   :  { %1798 = vmatprep.mubr.bf16.mxu1 %v5349_v60  ;;  %1165 = vperm.xlu0 %3899, %v923_v63   ;;  %v513_v63 = vld [vmem:[%s7988_s0 + $0x790] sm:$0xff]  ;;  %8333 = vst [vmem:[#allocation46_spill] sm:$0xff] %v5449_v19  ;;  %8334 = vst [vmem:[#allocation47_spill] sm:$0xff] %v5451_v61  ;;  %v5453_v60 = vpack.c.bf16 %v156_v58, %v152_v20  ;;  %v166_v2 = vld [vmem:[%s7989_s1 + $0x4b8] sm:$0xff]  ;;  %v5496_v58 = vpack.c.bf16 %v164_v25, %v160_v51 }
  0xb8   :  { %2000 = vmatpush2.bf16.msra.mxu0 %v761_v14  ;;  %v8332_v14 = vmov 0   ;;  %2352 = vmatprep.subr.bf16.mxu1 %v842_v53  ;;  %v927_v53 = vld [vmem:[%s7990_s2 + $0x180] sm:$0xff]  ;;  %v168_v51 = vld [vmem:[%s7989_s1 + $0x4c8] sm:$0xff] }
  0xb9   :  { %2675 = vmatprep.subr.bf16.mxu0 %v8332_v14  ;;  %8335 = vst [vmem:[#allocation48_spill] sm:$0xff] %v5453_v60  ;;  %8339 = vst [vmem:[#allocation52_spill] sm:$0xff] %v5496_v58  ;;  %v172_v25 = vld [vmem:[%s7989_s1 + $0x4e8] sm:$0xff] }
  0xbb   :  { %1175 = vperm.xlu0 %3899, %v925_v3   ;;  %v153_v3 = vld [vmem:[%s7989_s1 + $0x450] sm:$0xff] }
  0xbd   :  { %1446 = vmatmul.mubr.bf16.gmra.mxu0 %v5382_v18  ;;  %v841_v18 = vpack.c.bf16 %v518_v28, %v513_v63  ;;  %v5501_v28 = vpack.c.bf16 %v166_v2, %v162_v52  ;;  %v170_v52 = vld [vmem:[%s7989_s1 + $0x4d8] sm:$0xff] }
  0xbe   :  { %1799 = vmatmul.mubr.bf16.gmra.mxu1 %v5384_v47  ;;  %1455 = vmatprep.mubr.bf16.mxu0 %v5386_v55  ;;  %v924_v55 = vld [vmem:[%s7990_s2 + $0x168] sm:$0xff]  ;;  %v154_v47 = vld [vmem:[%s7989_s1 + $0x458] sm:$0xff] }
  0xbf   :  { %1808 = vmatprep.mubr.bf16.mxu1 %v5397_v34  ;;  %v158_v34 = vld [vmem:[%s7989_s1 + $0x478] sm:$0xff]  ;;  %1170 = vperm.xlu1 %3900, %v924_v55   ;;  %v151_v55 = vld [vmem:[%s7989_s1 + $0x440] sm:$0xff]  ;;  %8340 = vst [vmem:[#allocation53_spill] sm:$0xff] %v5501_v28 }
  0xc0   :  { %2353 = vmatpush2.bf16.msra.mxu1 %v841_v18  ;;  %v5458_v4 = vpack.c.bf16 %v158_v34, %v154_v47  ;;  %v155_v18 = vld [vmem:[%s7989_s1 + $0x460] sm:$0xff]  ;;  %v926_v47 = vld [vmem:[%s7990_s2 + $0x178] sm:$0xff]  ;;  %v157_v34 = vld [vmem:[%s7989_s1 + $0x470] sm:$0xff]  ;;  %1185 = vperm.xlu0 %3899, %v927_v53   ;;  %v5834_v62 = vpop.permute.xlu1 %955 }
  0xc1   :  { %2964 = vmatprep.subr.bf16.mxu1 %v8332_v14  ;;  %v5492_v20 = vpack.c.bf16 %v155_v18, %v151_v55  ;;  %v5494_v63 = vpack.c.bf16 %v157_v34, %v153_v3  ;;  %v163_v55 = vld [vmem:[%s7989_s1 + $0x4a0] sm:$0xff]  ;;  %v161_v18 = vld [vmem:[%s7989_s1 + $0x490] sm:$0xff]  ;;  %v928_v3 = vld [vmem:[%s7990_s2 + $0x188] sm:$0xff]  ;;  %8371 = vst [vmem:[#allocation84_spill] sm:$0xff] %v5834_v62 }
  0xc2   :  { %8336 = vst [vmem:[#allocation49_spill] sm:$0xff] %v5458_v4  ;;  %v165_v34 = vld [vmem:[%s7989_s1 + $0x4b0] sm:$0xff]  ;;  %v174_v2 = vld [vmem:[%s7989_s1 + $0x4f8] sm:$0xff] }
  0xc3   :  { %1180 = vperm.xlu1 %3900, %v926_v47   ;;  %8337 = vst [vmem:[#allocation50_spill] sm:$0xff] %v5492_v20  ;;  %8338 = vst [vmem:[#allocation51_spill] sm:$0xff] %v5494_v63  ;;  %v159_v47 = vld [vmem:[%s7989_s1 + $0x480] sm:$0xff] }
  0xc4   :  { %v5534_v53 = vpack.c.bf16 %v163_v55, %v159_v47  ;;  %v171_v47 = vld [vmem:[%s7989_s1 + $0x4e0] sm:$0xff]  ;;  %v169_v55 = vld [vmem:[%s7989_s1 + $0x4d0] sm:$0xff] }
  0xc5   :  { %1456 = vmatmul.mubr.bf16.gmra.mxu0 %v5449_v19 }
  0xc6   :  { %1809 = vmatmul.mubr.bf16.gmra.mxu1 %v5451_v61  ;;  %1465 = vmatprep.mubr.bf16.mxu0 %v5453_v60  ;;  %8341 = vst [vmem:[#allocation54_spill] sm:$0xff] %v5534_v53  ;;  %v215_v60 = vld [vmem:[%s7989_s1 + $0x640] sm:$0xff]  ;;  %v226_v61 = vld [vmem:[%s7989_s1 + $0x698] sm:$0xff] }
  0xc7   :  { %1818 = vmatprep.mubr.bf16.mxu1 %v5458_v4  ;;  %1190 = vperm.xlu1 %3900, %v928_v3   ;;  %v167_v3 = vld [vmem:[%s7989_s1 + $0x4c0] sm:$0xff] }
  0xcd   :  { %1466 = vmatmul.mubr.bf16.gmra.mxu0 %v5492_v20  ;;  %v5543_v20 = vpack.c.bf16 %v174_v2, %v170_v52  ;;  %v182_v52 = vld [vmem:[%s7989_s1 + $0x538] sm:$0xff]  ;;  %v5576_v2 = vpack.c.bf16 %v171_v47, %v167_v3  ;;  %v179_v3 = vld [vmem:[%s7989_s1 + $0x520] sm:$0xff]  ;;  %v177_v47 = vld [vmem:[%s7989_s1 + $0x510] sm:$0xff] }
  0xce   :  { %1819 = vmatmul.mubr.bf16.gmra.mxu1 %v5494_v63  ;;  %1475 = vmatprep.mubr.bf16.mxu0 %v5496_v58  ;;  %v5538_v58 = vpack.c.bf16 %v172_v25, %v168_v51  ;;  %v929_v63 = vld [vmem:[%s7990_s2 + $0x190] sm:$0xff]  ;;  %v180_v51 = vld [vmem:[%s7989_s1 + $0x528] sm:$0xff]  ;;  %v178_v25 = vld [vmem:[%s7989_s1 + $0x518] sm:$0xff] }
  0xcf   :  { %1828 = vmatprep.mubr.bf16.mxu1 %v5501_v28  ;;  %v5536_v28 = vpack.c.bf16 %v165_v34, %v161_v18  ;;  %8344 = vst [vmem:[#allocation57_spill] sm:$0xff] %v5543_v20  ;;  %1195 = vperm.xlu0 %3899, %v929_v63   ;;  %v930_v63 = vld [vmem:[%s7990_s2 + $0x198] sm:$0xff]  ;;  %v173_v18 = vld [vmem:[%s7989_s1 + $0x4f0] sm:$0xff]  ;;  %v176_v34 = vld [vmem:[%s7989_s1 + $0x508] sm:$0xff] }
  0xd0   :  { %8343 = vst [vmem:[#allocation56_spill] sm:$0xff] %v5538_v58  ;;  %1200 = vperm.xlu1 %3900, %v930_v63   ;;  %8345 = vst [vmem:[#allocation58_spill] sm:$0xff] %v5576_v2  ;;  %v175_v63 = vld [vmem:[%s7989_s1 + $0x500] sm:$0xff] }
  0xd1   :  { %8342 = vst [vmem:[#allocation55_spill] sm:$0xff] %v5536_v28 }
  0xd5   :  { %1476 = vmatmul.mubr.bf16.gmra.mxu0 %v5534_v53  ;;  %v5585_v53 = vpack.c.bf16 %v182_v52, %v178_v25  ;;  %v190_v25 = vld [vmem:[%s7989_s1 + $0x578] sm:$0xff]  ;;  %v5618_v52 = vpack.c.bf16 %v179_v3, %v175_v63  ;;  %v187_v63 = vld [vmem:[%s7989_s1 + $0x560] sm:$0xff]  ;;  %v185_v3 = vld [vmem:[%s7989_s1 + $0x550] sm:$0xff] }
  0xd6   :  { %1829 = vmatmul.mubr.bf16.gmra.mxu1 %v5536_v28  ;;  %1485 = vmatprep.mubr.bf16.mxu0 %v5538_v58  ;;  %v5580_v58 = vpack.c.bf16 %v180_v51, %v176_v34  ;;  %v931_v28 = vld [vmem:[%s7990_s2 + $0x1a0] sm:$0xff]  ;;  %v188_v34 = vld [vmem:[%s7989_s1 + $0x568] sm:$0xff]  ;;  %v186_v51 = vld [vmem:[%s7989_s1 + $0x558] sm:$0xff] }
  0xd7   :  { %1838 = vmatprep.mubr.bf16.mxu1 %v5543_v20  ;;  %v5578_v20 = vpack.c.bf16 %v173_v18, %v169_v55  ;;  %8348 = vst [vmem:[#allocation61_spill] sm:$0xff] %v5585_v53  ;;  %1205 = vperm.xlu0 %3899, %v931_v28   ;;  %v932_v28 = vld [vmem:[%s7990_s2 + $0x1a8] sm:$0xff]  ;;  %v181_v55 = vld [vmem:[%s7989_s1 + $0x530] sm:$0xff]  ;;  %8349 = vst [vmem:[#allocation62_spill] sm:$0xff] %v5618_v52 }
  0xd8   :  { %8347 = vst [vmem:[#allocation60_spill] sm:$0xff] %v5580_v58  ;;  %v184_v18 = vld [vmem:[%s7989_s1 + $0x548] sm:$0xff]  ;;  %1210 = vperm.xlu1 %3900, %v932_v28   ;;  %v183_v28 = vld [vmem:[%s7989_s1 + $0x540] sm:$0xff] }
  0xd9   :  { %8346 = vst [vmem:[#allocation59_spill] sm:$0xff] %v5578_v20 }
  0xdd   :  { %1486 = vmatmul.mubr.bf16.gmra.mxu0 %v5576_v2  ;;  %v5627_v2 = vpack.c.bf16 %v190_v25, %v186_v51  ;;  %v198_v51 = vld [vmem:[%s7989_s1 + $0x5b8] sm:$0xff]  ;;  %v5660_v25 = vpack.c.bf16 %v187_v63, %v183_v28  ;;  %v195_v28 = vld [vmem:[%s7989_s1 + $0x5a0] sm:$0xff]  ;;  %v193_v63 = vld [vmem:[%s7989_s1 + $0x590] sm:$0xff] }
  0xde   :  { %1839 = vmatmul.mubr.bf16.gmra.mxu1 %v5578_v20  ;;  %1495 = vmatprep.mubr.bf16.mxu0 %v5580_v58  ;;  %v5622_v58 = vpack.c.bf16 %v188_v34, %v184_v18  ;;  %v933_v20 = vld [vmem:[%s7990_s2 + $0x1b0] sm:$0xff]  ;;  %v196_v18 = vld [vmem:[%s7989_s1 + $0x5a8] sm:$0xff]  ;;  %v194_v34 = vld [vmem:[%s7989_s1 + $0x598] sm:$0xff] }
  0xdf   :  { %1848 = vmatprep.mubr.bf16.mxu1 %v5585_v53  ;;  %v5620_v53 = vpack.c.bf16 %v181_v55, %v177_v47  ;;  %8352 = vst [vmem:[#allocation65_spill] sm:$0xff] %v5627_v2  ;;  %1215 = vperm.xlu0 %3899, %v933_v20   ;;  %v934_v20 = vld [vmem:[%s7990_s2 + $0x1b8] sm:$0xff]  ;;  %v189_v47 = vld [vmem:[%s7989_s1 + $0x570] sm:$0xff]  ;;  %v192_v55 = vld [vmem:[%s7989_s1 + $0x588] sm:$0xff] }
  0xe0   :  { %8351 = vst [vmem:[#allocation64_spill] sm:$0xff] %v5622_v58  ;;  %1220 = vperm.xlu1 %3900, %v934_v20   ;;  %8353 = vst [vmem:[#allocation66_spill] sm:$0xff] %v5660_v25  ;;  %v191_v20 = vld [vmem:[%s7989_s1 + $0x580] sm:$0xff] }
  0xe1   :  { %8350 = vst [vmem:[#allocation63_spill] sm:$0xff] %v5620_v53 }
  0xe5   :  { %1496 = vmatmul.mubr.bf16.gmra.mxu0 %v5618_v52  ;;  %v5669_v52 = vpack.c.bf16 %v198_v51, %v194_v34  ;;  %v206_v34 = vld [vmem:[%s7989_s1 + $0x5f8] sm:$0xff]  ;;  %v5702_v51 = vpack.c.bf16 %v195_v28, %v191_v20  ;;  %v203_v20 = vld [vmem:[%s7989_s1 + $0x5e0] sm:$0xff]  ;;  %v201_v28 = vld [vmem:[%s7989_s1 + $0x5d0] sm:$0xff] }
  0xe6   :  { %1849 = vmatmul.mubr.bf16.gmra.mxu1 %v5620_v53  ;;  %1505 = vmatprep.mubr.bf16.mxu0 %v5622_v58  ;;  %v5664_v58 = vpack.c.bf16 %v196_v18, %v192_v55  ;;  %v935_v53 = vld [vmem:[%s7990_s2 + $0x1c0] sm:$0xff]  ;;  %v204_v55 = vld [vmem:[%s7989_s1 + $0x5e8] sm:$0xff]  ;;  %v202_v18 = vld [vmem:[%s7989_s1 + $0x5d8] sm:$0xff] }
  0xe7   :  { %1858 = vmatprep.mubr.bf16.mxu1 %v5627_v2  ;;  %v5662_v2 = vpack.c.bf16 %v189_v47, %v185_v3  ;;  %8356 = vst [vmem:[#allocation69_spill] sm:$0xff] %v5669_v52  ;;  %1225 = vperm.xlu0 %3899, %v935_v53   ;;  %v936_v53 = vld [vmem:[%s7990_s2 + $0x1c8] sm:$0xff]  ;;  %v197_v3 = vld [vmem:[%s7989_s1 + $0x5b0] sm:$0xff]  ;;  %8357 = vst [vmem:[#allocation70_spill] sm:$0xff] %v5702_v51 }
  0xe8   :  { %8355 = vst [vmem:[#allocation68_spill] sm:$0xff] %v5664_v58  ;;  %v200_v47 = vld [vmem:[%s7989_s1 + $0x5c8] sm:$0xff]  ;;  %1230 = vperm.xlu1 %3900, %v936_v53   ;;  %v199_v53 = vld [vmem:[%s7989_s1 + $0x5c0] sm:$0xff] }
  0xe9   :  { %8354 = vst [vmem:[#allocation67_spill] sm:$0xff] %v5662_v2 }
  0xed   :  { %1506 = vmatmul.mubr.bf16.gmra.mxu0 %v5660_v25  ;;  %v5711_v25 = vpack.c.bf16 %v206_v34, %v202_v18  ;;  %v214_v18 = vld [vmem:[%s7989_s1 + $0x638] sm:$0xff]  ;;  %v5744_v34 = vpack.c.bf16 %v203_v20, %v199_v53  ;;  %v211_v53 = vld [vmem:[%s7989_s1 + $0x620] sm:$0xff]  ;;  %v209_v20 = vld [vmem:[%s7989_s1 + $0x610] sm:$0xff] }
  0xee   :  { %1859 = vmatmul.mubr.bf16.gmra.mxu1 %v5662_v2  ;;  %1515 = vmatprep.mubr.bf16.mxu0 %v5664_v58  ;;  %v5706_v58 = vpack.c.bf16 %v204_v55, %v200_v47  ;;  %v937_v2 = vld [vmem:[%s7990_s2 + $0x1d0] sm:$0xff]  ;;  %v212_v47 = vld [vmem:[%s7989_s1 + $0x628] sm:$0xff]  ;;  %v210_v55 = vld [vmem:[%s7989_s1 + $0x618] sm:$0xff] }
  0xef   :  { %1868 = vmatprep.mubr.bf16.mxu1 %v5669_v52  ;;  %v5704_v52 = vpack.c.bf16 %v197_v3, %v193_v63  ;;  %8360 = vst [vmem:[#allocation73_spill] sm:$0xff] %v5711_v25  ;;  %1235 = vperm.xlu0 %3899, %v937_v2   ;;  %v938_v2 = vld [vmem:[%s7990_s2 + $0x1d8] sm:$0xff]  ;;  %v205_v63 = vld [vmem:[%s7989_s1 + $0x5f0] sm:$0xff]  ;;  %v208_v3 = vld [vmem:[%s7989_s1 + $0x608] sm:$0xff] }
  0xf0   :  { %8359 = vst [vmem:[#allocation72_spill] sm:$0xff] %v5706_v58  ;;  %1240 = vperm.xlu1 %3900, %v938_v2   ;;  %8361 = vst [vmem:[#allocation74_spill] sm:$0xff] %v5744_v34  ;;  %v207_v2 = vld [vmem:[%s7989_s1 + $0x600] sm:$0xff] }
  0xf1   :  { %8358 = vst [vmem:[#allocation71_spill] sm:$0xff] %v5704_v52 }
  0xf5   :  { %1516 = vmatmul.mubr.bf16.gmra.mxu0 %v5702_v51  ;;  %v5753_v51 = vpack.c.bf16 %v214_v18, %v210_v55  ;;  %v222_v55 = vld [vmem:[%s7989_s1 + $0x678] sm:$0xff]  ;;  %v5786_v18 = vpop.permute.xlu0 %945 }
  0xf6   :  { %1869 = vmatmul.mubr.bf16.gmra.mxu1 %v5704_v52  ;;  %1525 = vmatprep.mubr.bf16.mxu0 %v5706_v58  ;;  %v5748_v58 = vpack.c.bf16 %v212_v47, %v208_v3  ;;  %v939_v52 = vld [vmem:[%s7990_s2 + $0x1e0] sm:$0xff]  ;;  %v220_v3 = vld [vmem:[%s7989_s1 + $0x668] sm:$0xff]  ;;  %v218_v47 = vld [vmem:[%s7989_s1 + $0x658] sm:$0xff]  ;;  %8365 = vst [vmem:[#allocation78_spill] sm:$0xff] %v5786_v18 }
  0xf7   :  { %1878 = vmatprep.mubr.bf16.mxu1 %v5711_v25  ;;  %v5746_v25 = vpack.c.bf16 %v205_v63, %v201_v28  ;;  %8364 = vst [vmem:[#allocation77_spill] sm:$0xff] %v5753_v51  ;;  %1245 = vperm.xlu0 %3899, %v939_v52   ;;  %v940_v52 = vld [vmem:[%s7990_s2 + $0x1e8] sm:$0xff]  ;;  %v213_v28 = vld [vmem:[%s7989_s1 + $0x630] sm:$0xff] }
  0xf8   :  { %8363 = vst [vmem:[#allocation76_spill] sm:$0xff] %v5748_v58  ;;  %v216_v63 = vld [vmem:[%s7989_s1 + $0x648] sm:$0xff]  ;;  %1250 = vperm.xlu1 %3900, %v940_v52   ;;  %v941_v52 = vld [vmem:[%s7990_s2 + $0x1f0] sm:$0xff] }
  0xf9   :  { %8362 = vst [vmem:[#allocation75_spill] sm:$0xff] %v5746_v25 }
  0xfb   :  { %1255 = vperm.xlu0 %3899, %v941_v52   ;;  %v228_v52 = vld [vmem:[%s7989_s1 + $0x6a8] sm:$0xff] }
  0xfd   :  { %1526 = vmatmul.mubr.bf16.gmra.mxu0 %v5744_v34  ;;  %v5797_v34 = vpack.c.bf16 %v222_v55, %v218_v47  ;;  %v5818_v55 = vpop.permute.xlu0 %950 }
  0xfe   :  { %1879 = vmatmul.mubr.bf16.gmra.mxu1 %v5746_v25  ;;  %1535 = vmatprep.mubr.bf16.mxu0 %v5748_v58  ;;  %v5790_v58 = vpack.c.bf16 %v213_v28, %v209_v20  ;;  %v5792_v25 = vpack.c.bf16 %v220_v3, %v216_v63  ;;  %v217_v28 = vld [vmem:[%s7989_s1 + $0x650] sm:$0xff]  ;;  %v942_v3 = vld [vmem:[%s7990_s2 + $0x1f8] sm:$0xff]  ;;  %8370 = vst [vmem:[#allocation83_spill] sm:$0xff] %v5818_v55 }
  0xff   :  { %1888 = vmatprep.mubr.bf16.mxu1 %v5753_v51  ;;  %v5788_v51 = vpack.c.bf16 %v211_v53, %v207_v2  ;;  %8369 = vst [vmem:[#allocation82_spill] sm:$0xff] %v5797_v34  ;;  %v219_v2 = vld [vmem:[%s7989_s1 + $0x660] sm:$0xff]  ;;  %v221_v63 = vld [vmem:[%s7989_s1 + $0x670] sm:$0xff]  ;;  %1260 = vperm.xlu1 %3900, %v942_v3  }
 0x100   :  { %8367 = vst [vmem:[#allocation80_spill] sm:$0xff] %v5790_v58  ;;  %8368 = vst [vmem:[#allocation81_spill] sm:$0xff] %v5792_v25  ;;  %v5836_v21 = vpack.c.bf16 %v219_v2, %v215_v60  ;;  %v5838_v7 = vpack.c.bf16 %v221_v63, %v217_v28  ;;  %v5868_v63 = vpop.permute.xlu1 %960 }
 0x101   :  { %8366 = vst [vmem:[#allocation79_spill] sm:$0xff] %v5788_v51  ;;  %8376 = vst [vmem:[#allocation89_spill] sm:$0xff] %v5868_v63 }
 0x102   :  { %8372 = vst [vmem:[#allocation85_spill] sm:$0xff] %v5836_v21  ;;  %8373 = vst [vmem:[#allocation86_spill] sm:$0xff] %v5838_v7 }
 0x105   :  { %v1297_v4 = vpop.f32.mrf.mxu0  ;;  %1536 = vmatmul.mubr.bf16.gmra.mxu0 %v5788_v51 }
 0x106   :  { %v1298_v53 = vadd.f32 %v1297_v4, %v5786_v18  ;;  %v1650_v20 = vpop.f32.mrf.mxu1  ;;  %1889 = vmatmul.mubr.bf16.gmra.mxu1 %v5790_v58  ;;  %1545 = vmatprep.mubr.bf16.mxu0 %v5792_v25  ;;  %v224_v4 = vld [vmem:[%s7989_s1 + $0x688] sm:$0xff] }
 0x107   :  { %v1299_v47 = vpop.f32.mrf.mxu0  ;;  %1898 = vmatprep.mubr.bf16.mxu1 %v5797_v34  ;;  %v230_v34 = vld [vmem:[%s7989_s1 + $0x6b8] sm:$0xff] }
 0x108   :  { %v1651_v25 = vadd.f32 %v1650_v20, %v1298_v53  ;;  %v1300_v58 = vadd.f32 %v1299_v47, %v5786_v18  ;;  %v1652_v51 = vpop.f32.mrf.mxu1  ;;  %v5841_v18 = vpack.c.bf16 %v228_v52, %v224_v4  ;;  %v5843_v23 = vpack.c.bf16 %v230_v34, %v226_v61  ;;  %v225_v34 = vld [vmem:[%s7989_s1 + $0x690] sm:$0xff]  ;;  %v232_v4 = vld [vmem:[%s7989_s1 + $0x6c8] sm:$0xff] }
 0x109   :  { %v1301_v19 = vpop.f32.mrf.mxu0  ;;  %v236_v52 = vld [vmem:[%s7989_s1 + $0x6e8] sm:$0xff] }
 0x10a   :  { %v3253_v3 = vmax.f32 %v1651_v25, 0.0  ;;  %v1653_v53 = vadd.f32 %v1652_v51, %v1300_v58  ;;  %v1302_v20 = vadd.f32 %v1301_v19, %v5818_v55  ;;  %v1654_v47 = vpop.f32.mrf.mxu1  ;;  %8374 = vst [vmem:[#allocation87_spill] sm:$0xff] %v5841_v18  ;;  %8375 = vst [vmem:[#allocation88_spill] sm:$0xff] %v5843_v23  ;;  %v223_v19 = vld [vmem:[%s7989_s1 + $0x680] sm:$0xff] }
 0x10b   :  { %v1303_v48 = vpop.f32.mrf.mxu0 }
 0x10c   :  { %3573 = vst [vmem:[%s7991_s3] sm:$0xff] %v3253_v3  ;;  %v3254_v22 = vmax.f32 %v1653_v53, 0.0  ;;  %v1655_v17 = vadd.f32 %v1654_v47, %v1302_v20  ;;  %v1304_v60 = vadd.f32 %v1303_v48, %v5818_v55  ;;  %v1656_v2 = vpop.f32.mrf.mxu1  ;;  %v227_v48 = vld [vmem:[%s7989_s1 + $0x6a0] sm:$0xff] }
 0x10d   :  { %v1307_v28 = vpop.f32.mrf.mxu0  ;;  %1546 = vmatmul.mubr.bf16.gmra.mxu0 %v5836_v21 }
 0x10e   :  { %3574 = vst [vmem:[%s7991_s3 + $0x8] sm:$0xff] %v3254_v22  ;;  %v3258_v61 = vmax.f32 %v1655_v17, 0.0  ;;  %v1657_v58 = vadd.f32 %v1656_v2, %v1304_v60  ;;  %v1308_v25 = vadd.f32 %v1307_v28, %v5834_v62  ;;  %v1660_v51 = vpop.f32.mrf.mxu1  ;;  %1899 = vmatmul.mubr.bf16.gmra.mxu1 %v5838_v7  ;;  %1555 = vmatprep.mubr.bf16.mxu0 %v5841_v18  ;;  %v229_v17 = vld [vmem:[%s7989_s1 + $0x6b0] sm:$0xff]  ;;  %v234_v60 = vld [vmem:[%s7989_s1 + $0x6d8] sm:$0xff] }
 0x10f   :  { %v1309_v22 = vpop.f32.mrf.mxu0  ;;  %1908 = vmatprep.mubr.bf16.mxu1 %v5843_v23  ;;  %v238_v2 = vld [vmem:[%s7989_s1 + $0x6f8] sm:$0xff]  ;;  %v5887_v23 = vpack.c.bf16 %v227_v48, %v223_v19  ;;  %v5889_v18 = vpack.c.bf16 %v229_v17, %v225_v34 }
 0x110   :  { %3579 = vst [vmem:[%s7991_s3 + $0x28] sm:$0xff] %v3258_v61  ;;  %v3259_v3 = vmax.f32 %v1657_v58, 0.0  ;;  %v1661_v53 = vadd.f32 %v1660_v51, %v1308_v25  ;;  %v1310_v20 = vadd.f32 %v1309_v22, %v5834_v62  ;;  %v1662_v47 = vpop.f32.mrf.mxu1  ;;  %v5895_v22 = vpack.c.bf16 %v236_v52, %v232_v4  ;;  %v5897_v62 = vpop.permute.xlu0 %965  ;;  %v231_v4 = vld [vmem:[%s7989_s1 + $0x6c0] sm:$0xff] }
 0x111   :  { %v1311_v28 = vpop.f32.mrf.mxu0  ;;  %8377 = vst [vmem:[#allocation90_spill] sm:$0xff] %v5887_v23  ;;  %8378 = vst [vmem:[#allocation91_spill] sm:$0xff] %v5889_v18  ;;  %v5899_v21 = vpack.c.bf16 %v238_v2, %v234_v60  ;;  %v233_v60 = vld [vmem:[%s7989_s1 + $0x6d0] sm:$0xff] }
 0x112   :  { %3580 = vst [vmem:[%s7991_s3 + $0x30] sm:$0xff] %v3259_v3  ;;  %v3263_v61 = vmax.f32 %v1661_v53, 0.0  ;;  %v1663_v58 = vadd.f32 %v1662_v47, %v1310_v20  ;;  %v1312_v25 = vadd.f32 %v1311_v28, %v5868_v63  ;;  %v1664_v51 = vpop.f32.mrf.mxu1  ;;  %8379 = vst [vmem:[#allocation92_spill] sm:$0xff] %v5895_v22  ;;  %v237_v2 = vld [vmem:[%s7989_s1 + $0x6f0] sm:$0xff] }
 0x113   :  { %v1313_v7 = vpop.f32.mrf.mxu0  ;;  %8380 = vst [vmem:[#allocation93_spill] sm:$0xff] %v5897_v62  ;;  %8381 = vst [vmem:[#allocation94_spill] sm:$0xff] %v5899_v21 }
 0x114   :  { %3584 = vst [vmem:[%s7991_s3 + $0x50] sm:$0xff] %v3263_v61  ;;  %v3264_v19 = vmax.f32 %v1663_v58, 0.0  ;;  %v1665_v48 = vadd.f32 %v1664_v51, %v1312_v25  ;;  %v1314_v34 = vadd.f32 %v1313_v7, %v5868_v63  ;;  %v1666_v17 = vpop.f32.mrf.mxu1  ;;  %v235_v7 = vld [vmem:[%s7989_s1 + $0x6e0] sm:$0xff]  ;;  %v5924_v61 = vpop.permute.xlu1 %970  ;;  %v240_v58 = vld [vmem:[%s7989_s1 + $0x708] sm:$0xff] }
 0x115   :  { %v1317_v3 = vpop.f32.mrf.mxu0  ;;  %1556 = vmatmul.mubr.bf16.gmra.mxu0 %v5887_v23  ;;  %8382 = vst [vmem:[#allocation95_spill] sm:$0xff] %v5924_v61  ;;  %v244_v25 = vld [vmem:[%s7989_s1 + $0x728] sm:$0xff]  ;;  %v5953_v23 = vpop.permute.xlu0 %975 }
 0x116   :  { %3585 = vst [vmem:[%s7991_s3 + $0x58] sm:$0xff] %v3264_v19  ;;  %v3268_v52 = vmax.f32 %v1665_v48, 0.0  ;;  %v1667_v53 = vadd.f32 %v1666_v17, %v1314_v34  ;;  %v1670_v20 = vpop.f32.mrf.mxu1  ;;  %1909 = vmatmul.mubr.bf16.gmra.mxu1 %v5889_v18  ;;  %v1318_v47 = vadd.f32 %v1317_v3, %v5897_v62  ;;  %1565 = vmatprep.mubr.bf16.mxu0 %v5895_v22  ;;  %v242_v17 = vld [vmem:[%s7989_s1 + $0x718] sm:$0xff]  ;;  %8386 = vst [vmem:[#allocation99_spill] sm:$0xff] %v5953_v23 }
 0x117   :  { %v1319_v28 = vpop.f32.mrf.mxu0  ;;  %1918 = vmatprep.mubr.bf16.mxu1 %v5899_v21  ;;  %v246_v3 = vld [vmem:[%s7989_s1 + $0x738] sm:$0xff]  ;;  %v5943_v22 = vpack.c.bf16 %v235_v7, %v231_v4  ;;  %v5945_v18 = vpack.c.bf16 %v237_v2, %v233_v60 }
 0x118   :  { %3589 = vst [vmem:[%s7991_s3 + $0x78] sm:$0xff] %v3268_v52  ;;  %v3269_v51 = vmax.f32 %v1667_v53, 0.0  ;;  %v1671_v19 = vadd.f32 %v1670_v20, %v1318_v47  ;;  %v1320_v48 = vadd.f32 %v1319_v28, %v5897_v62  ;;  %v1672_v34 = vpop.f32.mrf.mxu1  ;;  %v5951_v28 = vpack.c.bf16 %v244_v25, %v240_v58 }
 0x119   :  { %v1321_v21 = vpop.f32.mrf.mxu0  ;;  %8383 = vst [vmem:[#allocation96_spill] sm:$0xff] %v5943_v22  ;;  %8384 = vst [vmem:[#allocation97_spill] sm:$0xff] %v5945_v18  ;;  %v5955_v63 = vpack.c.bf16 %v246_v3, %v242_v17  ;;  %v245_v17 = vld [vmem:[%s7989_s1 + $0x730] sm:$0xff] }
 0x11a   :  { %3590 = vst [vmem:[%s7991_s3 + $0x80] sm:$0xff] %v3269_v51  ;;  %v3273_v52 = vmax.f32 %v1671_v19, 0.0  ;;  %v1673_v53 = vadd.f32 %v1672_v34, %v1320_v48  ;;  %v1322_v20 = vadd.f32 %v1321_v21, %v5924_v61  ;;  %v1674_v47 = vpop.f32.mrf.mxu1  ;;  %8385 = vst [vmem:[#allocation98_spill] sm:$0xff] %v5951_v28  ;;  %v239_v21 = vld [vmem:[%s7989_s1 + $0x700] sm:$0xff]  ;;  %v241_v34 = vld [vmem:[%s7989_s1 + $0x710] sm:$0xff] }
 0x11b   :  { %v1323_v62 = vpop.f32.mrf.mxu0  ;;  %8387 = vst [vmem:[#allocation100_spill] sm:$0xff] %v5955_v63 }
 0x11c   :  { %3594 = vst [vmem:[%s7991_s3 + $0xa0] sm:$0xff] %v3273_v52  ;;  %v3274_v4 = vmax.f32 %v1673_v53, 0.0  ;;  %v1675_v7 = vadd.f32 %v1674_v47, %v1322_v20  ;;  %v1324_v60 = vadd.f32 %v1323_v62, %v5924_v61  ;;  %v1676_v2 = vpop.f32.mrf.mxu1  ;;  %v243_v62 = vld [vmem:[%s7989_s1 + $0x720] sm:$0xff]  ;;  %v5980_v52 = vpop.permute.xlu1 %980  ;;  %v248_v53 = vld [vmem:[%s7989_s1 + $0x748] sm:$0xff] }
 0x11d   :  { %v1327_v51 = vpop.f32.mrf.mxu0  ;;  %1566 = vmatmul.mubr.bf16.gmra.mxu0 %v5943_v22  ;;  %8388 = vst [vmem:[#allocation101_spill] sm:$0xff] %v5980_v52  ;;  %v252_v20 = vld [vmem:[%s7989_s1 + $0x768] sm:$0xff]  ;;  %v6009_v22 = vpop.permute.xlu0 %985 }
 0x11e   :  { %3595 = vst [vmem:[%s7991_s3 + $0xa8] sm:$0xff] %v3274_v4  ;;  %v3278_v58 = vmax.f32 %v1675_v7, 0.0  ;;  %v1677_v25 = vadd.f32 %v1676_v2, %v1324_v60  ;;  %v1680_v19 = vpop.f32.mrf.mxu1  ;;  %1919 = vmatmul.mubr.bf16.gmra.mxu1 %v5945_v18  ;;  %v1328_v48 = vadd.f32 %v1327_v51, %v5953_v23  ;;  %1575 = vmatprep.mubr.bf16.mxu0 %v5951_v28  ;;  %v250_v2 = vld [vmem:[%s7989_s1 + $0x758] sm:$0xff]  ;;  %8392 = vst [vmem:[#allocation105_spill] sm:$0xff] %v6009_v22 }
 0x11f   :  { %v1329_v3 = vpop.f32.mrf.mxu0  ;;  %1928 = vmatprep.mubr.bf16.mxu1 %v5955_v63  ;;  %v254_v51 = vld [vmem:[%s7989_s1 + $0x778] sm:$0xff]  ;;  %v5999_v28 = vpack.c.bf16 %v243_v62, %v239_v21  ;;  %v6001_v18 = vpack.c.bf16 %v245_v17, %v241_v34 }
 0x120   :  { %3599 = vst [vmem:[%s7991_s3 + $0xc8] sm:$0xff] %v3278_v58  ;;  %v3279_v47 = vmax.f32 %v1677_v25, 0.0  ;;  %v1681_v4 = vadd.f32 %v1680_v19, %v1328_v48  ;;  %v1330_v7 = vadd.f32 %v1329_v3, %v5953_v23  ;;  %v1682_v60 = vpop.f32.mrf.mxu1  ;;  %v6007_v3 = vpack.c.bf16 %v252_v20, %v248_v53 }
 0x121   :  { %v1331_v63 = vpop.f32.mrf.mxu0  ;;  %8389 = vst [vmem:[#allocation102_spill] sm:$0xff] %v5999_v28  ;;  %8390 = vst [vmem:[#allocation103_spill] sm:$0xff] %v6001_v18  ;;  %v6011_v61 = vpack.c.bf16 %v254_v51, %v250_v2  ;;  %v253_v2 = vld [vmem:[%s7989_s1 + $0x770] sm:$0xff] }
 0x122   :  { %3600 = vst [vmem:[%s7991_s3 + $0xd0] sm:$0xff] %v3279_v47  ;;  %v3283_v58 = vmax.f32 %v1681_v4, 0.0  ;;  %v1683_v25 = vadd.f32 %v1682_v60, %v1330_v7  ;;  %v1332_v19 = vadd.f32 %v1331_v63, %v5980_v52  ;;  %v1684_v48 = vpop.f32.mrf.mxu1  ;;  %8391 = vst [vmem:[#allocation104_spill] sm:$0xff] %v6007_v3  ;;  %v247_v63 = vld [vmem:[%s7989_s1 + $0x740] sm:$0xff]  ;;  %v249_v60 = vld [vmem:[%s7989_s1 + $0x750] sm:$0xff] }
 0x123   :  { %v1333_v23 = vpop.f32.mrf.mxu0  ;;  %8393 = vst [vmem:[#allocation106_spill] sm:$0xff] %v6011_v61 }
 0x124   :  { %3604 = vst [vmem:[%s7991_s3 + $0xf0] sm:$0xff] %v3283_v58  ;;  %v3284_v21 = vmax.f32 %v1683_v25, 0.0  ;;  %v1685_v62 = vadd.f32 %v1684_v48, %v1332_v19  ;;  %v1334_v34 = vadd.f32 %v1333_v23, %v5980_v52  ;;  %v1686_v17 = vpop.f32.mrf.mxu1  ;;  %v251_v23 = vld [vmem:[%s7989_s1 + $0x760] sm:$0xff]  ;;  %v6036_v58 = vpop.permute.xlu1 %990  ;;  %v256_v25 = vld [vmem:[%s7989_s1 + $0x788] sm:$0xff] }
 0x125   :  { %v1337_v47 = vpop.f32.mrf.mxu0  ;;  %1576 = vmatmul.mubr.bf16.gmra.mxu0 %v5999_v28  ;;  %8394 = vst [vmem:[#allocation107_spill] sm:$0xff] %v6036_v58  ;;  %v260_v19 = vld [vmem:[%s7989_s1 + $0x7a8] sm:$0xff]  ;;  %v6065_v28 = vpop.permute.xlu0 %995 }
 0x126   :  { %3605 = vst [vmem:[%s7991_s3 + $0xf8] sm:$0xff] %v3284_v21  ;;  %v3288_v53 = vmax.f32 %v1685_v62, 0.0  ;;  %v1687_v20 = vadd.f32 %v1686_v17, %v1334_v34  ;;  %v1690_v4 = vpop.f32.mrf.mxu1  ;;  %1929 = vmatmul.mubr.bf16.gmra.mxu1 %v6001_v18  ;;  %v1338_v7 = vadd.f32 %v1337_v47, %v6009_v22  ;;  %1585 = vmatprep.mubr.bf16.mxu0 %v6007_v3  ;;  %v258_v17 = vld [vmem:[%s7989_s1 + $0x798] sm:$0xff]  ;;  %8398 = vst [vmem:[#allocation111_spill] sm:$0xff] %v6065_v28 }
 0x127   :  { %v1339_v51 = vpop.f32.mrf.mxu0  ;;  %1938 = vmatprep.mubr.bf16.mxu1 %v6011_v61  ;;  %v262_v47 = vld [vmem:[%s7989_s1 + $0x7b8] sm:$0xff]  ;;  %v6055_v3 = vpack.c.bf16 %v251_v23, %v247_v63  ;;  %v6057_v18 = vpack.c.bf16 %v253_v2, %v249_v60 }
 0x128   :  { %3609 = vst [vmem:[%s7991_s3 + $0x118] sm:$0xff] %v3288_v53  ;;  %v3289_v48 = vmax.f32 %v1687_v20, 0.0  ;;  %v1691_v21 = vadd.f32 %v1690_v4, %v1338_v7  ;;  %v1340_v62 = vadd.f32 %v1339_v51, %v6009_v22  ;;  %v1692_v34 = vpop.f32.mrf.mxu1  ;;  %v6063_v51 = vpack.c.bf16 %v260_v19, %v256_v25 }
 0x129   :  { %v1341_v61 = vpop.f32.mrf.mxu0  ;;  %8395 = vst [vmem:[#allocation108_spill] sm:$0xff] %v6055_v3  ;;  %8396 = vst [vmem:[#allocation109_spill] sm:$0xff] %v6057_v18  ;;  %v6067_v52 = vpack.c.bf16 %v262_v47, %v258_v17  ;;  %v261_v17 = vld [vmem:[%s7989_s1 + $0x7b0] sm:$0xff] }
 0x12a   :  { %3610 = vst [vmem:[%s7991_s3 + $0x120] sm:$0xff] %v3289_v48  ;;  %v3293_v53 = vmax.f32 %v1691_v21, 0.0  ;;  %v1693_v20 = vadd.f32 %v1692_v34, %v1340_v62  ;;  %v1342_v4 = vadd.f32 %v1341_v61, %v6036_v58  ;;  %v1694_v7 = vpop.f32.mrf.mxu1  ;;  %8397 = vst [vmem:[#allocation110_spill] sm:$0xff] %v6063_v51  ;;  %v255_v61 = vld [vmem:[%s7989_s1 + $0x780] sm:$0xff]  ;;  %v257_v34 = vld [vmem:[%s7989_s1 + $0x790] sm:$0xff] }
 0x12b   :  { %v1343_v22 = vpop.f32.mrf.mxu0  ;;  %8399 = vst [vmem:[#allocation112_spill] sm:$0xff] %v6067_v52 }
 0x12c   :  { %3614 = vst [vmem:[%s7991_s3 + $0x140] sm:$0xff] %v3293_v53  ;;  %v3294_v63 = vmax.f32 %v1693_v20, 0.0  ;;  %v1695_v23 = vadd.f32 %v1694_v7, %v1342_v4  ;;  %v1344_v60 = vadd.f32 %v1343_v22, %v6036_v58  ;;  %v1696_v2 = vpop.f32.mrf.mxu1  ;;  %v259_v22 = vld [vmem:[%s7989_s1 + $0x7a0] sm:$0xff]  ;;  %v6092_v53 = vpop.permute.xlu1 %1000  ;;  %v264_v20 = vld [vmem:[%s7989_s1 + $0x7c8] sm:$0xff] }
 0x12d   :  { %v1347_v48 = vpop.f32.mrf.mxu0  ;;  %1586 = vmatmul.mubr.bf16.gmra.mxu0 %v6055_v3  ;;  %v268_v4 = vld [vmem:[%s7989_s1 + $0x7e8] sm:$0xff]  ;;  %v6121_v3 = vpop.permute.xlu0 %1005 }
 0x12e   :  { %3615 = vst [vmem:[%s7991_s3 + $0x148] sm:$0xff] %v3294_v63  ;;  %v3298_v25 = vmax.f32 %v1695_v23, 0.0  ;;  %v1697_v19 = vadd.f32 %v1696_v2, %v1344_v60  ;;  %v1700_v21 = vpop.f32.mrf.mxu1  ;;  %1939 = vmatmul.mubr.bf16.gmra.mxu1 %v6057_v18  ;;  %v1348_v62 = vadd.f32 %v1347_v48, %v6065_v28  ;;  %1595 = vmatprep.mubr.bf16.mxu0 %v6063_v51  ;;  %v266_v2 = vld [vmem:[%s7989_s1 + $0x7d8] sm:$0xff] }
 0x12f   :  { %v1349_v47 = vpop.f32.mrf.mxu0  ;;  %1948 = vmatprep.mubr.bf16.mxu1 %v6067_v52  ;;  %v270_v48 = vld [vmem:[%s7989_s1 + $0x7f8] sm:$0xff]  ;;  %v6111_v51 = vpack.c.bf16 %v259_v22, %v255_v61  ;;  %v6113_v18 = vpack.c.bf16 %v261_v17, %v257_v34 }
 0x130   :  { %3619 = vst [vmem:[%s7991_s3 + $0x168] sm:$0xff] %v3298_v25  ;;  %v3299_v7 = vmax.f32 %v1697_v19, 0.0  ;;  %v1701_v63 = vadd.f32 %v1700_v21, %v1348_v62  ;;  %v1350_v23 = vadd.f32 %v1349_v47, %v6065_v28  ;;  %v1702_v60 = vpop.f32.mrf.mxu1  ;;  %v6119_v47 = vpack.c.bf16 %v268_v4, %v264_v20 }
 0x131   :  { %v1351_v52 = vpop.f32.mrf.mxu0  ;;  %8400 = vst [vmem:[#allocation113_spill] sm:$0xff] %v6113_v18  ;;  %v6123_v58 = vpack.c.bf16 %v270_v48, %v266_v2  ;;  %v6142_v2 = vpop.permute.xlu1 %1010  ;;  %v265_v48 = vld [vmem:[%s7989_s1 + $0x7d0] sm:$0xff] }
 0x132   :  { %3620 = vst [vmem:[%s7991_s3 + $0x170] sm:$0xff] %v3299_v7  ;;  %v3303_v25 = vmax.f32 %v1701_v63, 0.0  ;;  %v1703_v19 = vadd.f32 %v1702_v60, %v1350_v23  ;;  %v1352_v21 = vadd.f32 %v1351_v52, %v6092_v53  ;;  %v1704_v62 = vpop.f32.mrf.mxu1  ;;  %8401 = vst [vmem:[#allocation114_spill] sm:$0xff] %v6119_v47  ;;  %v267_v23 = vld [vmem:[%s7989_s1 + $0x7e0] sm:$0xff] }
 0x133   :  { %v1353_v28 = vpop.f32.mrf.mxu0  ;;  %8402 = vst [vmem:[#allocation115_spill] sm:$0xff] %v6123_v58 }
 0x134   :  { %3624 = vst [vmem:[%s7991_s3 + $0x190] sm:$0xff] %v3303_v25  ;;  %v3304_v61 = vmax.f32 %v1703_v19, 0.0  ;;  %v1705_v22 = vadd.f32 %v1704_v62, %v1352_v21  ;;  %v1354_v34 = vadd.f32 %v1353_v28, %v6092_v53  ;;  %v1706_v17 = vpop.f32.mrf.mxu1  ;;  %v263_v28 = vld [vmem:[%s7989_s1 + $0x7c0] sm:$0xff]  ;;  %v269_v25 = vld [vmem:[%s7989_s1 + $0x7f0] sm:$0xff] }
 0x135   :  { %v1357_v7 = vpop.f32.mrf.mxu0  ;;  %1596 = vmatmul.mubr.bf16.gmra.mxu0 %v6111_v51 }
 0x136   :  { %3625 = vst [vmem:[%s7991_s3 + $0x198] sm:$0xff] %v3304_v61  ;;  %v3308_v52 = vmax.f32 %v1705_v22, 0.0  ;;  %v1707_v20 = vadd.f32 %v1706_v17, %v1354_v34  ;;  %v1710_v4 = vpop.f32.mrf.mxu1  ;;  %1949 = vmatmul.mubr.bf16.gmra.mxu1 %v6113_v18  ;;  %v1358_v63 = vadd.f32 %v1357_v7, %v6121_v3  ;;  %1605 = vmatprep.mubr.bf16.mxu0 %v6119_v47 }
 0x137   :  { %v1359_v60 = vpop.f32.mrf.mxu0  ;;  %1958 = vmatprep.mubr.bf16.mxu1 %v6123_v58  ;;  %v6155_v34 = vpack.c.bf16 %v267_v23, %v263_v28  ;;  %v6161_v18 = vpack.c.bf16 %v269_v25, %v265_v48 }
 0x138   :  { %3629 = vst [vmem:[%s7991_s3 + $0x1b8] sm:$0xff] %v3308_v52  ;;  %v3309_v19 = vmax.f32 %v1707_v20, 0.0  ;;  %v1711_v21 = vadd.f32 %v1710_v4, %v1358_v63  ;;  %v1360_v62 = vadd.f32 %v1359_v60, %v6121_v3  ;;  %v1712_v61 = vpop.f32.mrf.mxu1  ;;  %v6163_v20 = vpop.permute.xlu0 %1015 }
 0x139   :  { %v1361_v22 = vpop.f32.mrf.mxu0  ;;  %8403 = vst [vmem:[#allocation116_spill] sm:$0xff] %v6161_v18  ;;  %8404 = vst [vmem:[#allocation117_spill] sm:$0xff] %v6163_v20 }
 0x13a   :  { %3630 = vst [vmem:[%s7991_s3 + $0x1c0] sm:$0xff] %v3309_v19  ;;  %v3313_v17 = vmax.f32 %v1711_v21, 0.0  ;;  %v1713_v7 = vadd.f32 %v1712_v61, %v1360_v62  ;;  %v1362_v58 = vadd.f32 %v1361_v22, %v6142_v2  ;;  %v1714_v47 = vpop.f32.mrf.mxu1  ;;  %v345_v62 = vld [vmem:[%s7988_s0 + $0x250] sm:$0xff]  ;;  %v350_v61 = vld [vmem:[%s7988_s0 + $0x278] sm:$0xff] }
 0x13b   :  { %v1363_v52 = vpop.f32.mrf.mxu0 }
 0x13c   :  { %3634 = vst [vmem:[%s7991_s3 + $0x1e0] sm:$0xff] %v3313_v17  ;;  %v3314_v4 = vmax.f32 %v1713_v7, 0.0  ;;  %v1715_v63 = vadd.f32 %v1714_v47, %v1362_v58  ;;  %v1364_v28 = vadd.f32 %v1363_v52, %v6142_v2  ;;  %v1716_v23 = vpop.f32.mrf.mxu1  ;;  %v6176_v47 = vpop.permute.xlu1 %1020 }
 0x13d   :  { %v1367_v60 = vpop.f32.mrf.mxu0  ;;  %1606 = vmatmul.mubr.bf16.gmra.mxu0 %v6155_v34 }
 0x13e   :  { %3635 = vst [vmem:[%s7991_s3 + $0x1e8] sm:$0xff] %v3314_v4  ;;  %v3318_v48 = vmax.f32 %v1715_v63, 0.0  ;;  %v1717_v25 = vadd.f32 %v1716_v23, %v1364_v28  ;;  %v1720_v19 = vpop.f32.mrf.mxu1  ;;  %1959 = vmatmul.mubr.bf16.gmra.mxu1 %v6161_v18  ;;  %v1368_v21 = vadd.f32 %v1367_v60, %v6163_v20  ;;  %2001 = vmatprep.mubr.bf16.mxu0 %v4236_v26  ;;  %v505_v4 = vld [vmem:[%s7988_s0 + $0x750] sm:$0xff]  ;;  %v510_v63 = vld [vmem:[%s7988_s0 + $0x778] sm:$0xff]  ;;  %v335_v26 = vld [vmem:[%s7988_s0 + $0x200] sm:$0xff] }
 0x13f   :  { %v1369_v58 = vpop.f32.mrf.mxu0  ;;  %2354 = vmatprep.mubr.bf16.mxu1 %v4238_v27  ;;  %v838_v27 = vpack.c.bf16 %v510_v63, %v505_v4  ;;  %v340_v18 = vld [vmem:[%s7988_s0 + $0x228] sm:$0xff] }
 0x140   :  { %3639 = vst [vmem:[%s7991_s3 + $0x208] sm:$0xff] %v3318_v48  ;;  %v3319_v22 = vmax.f32 %v1717_v25, 0.0  ;;  %v1721_v17 = vadd.f32 %v1720_v19, %v1368_v21  ;;  %v1370_v7 = vadd.f32 %v1369_v58, %v6163_v20  ;;  %v1722_v52 = vpop.f32.mrf.mxu1  ;;  %v758_v19 = vpack.c.bf16 %v350_v61, %v345_v62  ;;  %v6199_v58 = vpop.permute.xlu0 %1025 }
 0x141   :  { %v1371_v28 = vpop.f32.mrf.mxu0 }
 0x142   :  { %3640 = vst [vmem:[%s7991_s3 + $0x210] sm:$0xff] %v3319_v22  ;;  %v3323_v23 = vmax.f32 %v1721_v17, 0.0  ;;  %v1723_v60 = vadd.f32 %v1722_v52, %v1370_v7  ;;  %v1372_v48 = vadd.f32 %v1371_v28, %v6176_v47  ;;  %v1724_v25 = vpop.f32.mrf.mxu1  ;;  %v495_v7 = vld [vmem:[%s7988_s0 + $0x700] sm:$0xff]  ;;  %v500_v52 = vld [vmem:[%s7988_s0 + $0x728] sm:$0xff] }
 0x143   :  { %v1373_v21 = vpop.f32.mrf.mxu0 }
 0x144   :  { %3644 = vst [vmem:[%s7991_s3 + $0x230] sm:$0xff] %v3323_v23  ;;  %v3324_v22 = vmax.f32 %v1723_v60, 0.0  ;;  %v1725_v17 = vadd.f32 %v1724_v25, %v1372_v48  ;;  %v1374_v62 = vadd.f32 %v1373_v21, %v6176_v47  ;;  %v1726_v61 = vpop.f32.mrf.mxu1  ;;  %v753_v48 = vpack.c.bf16 %v340_v18, %v335_v26  ;;  %v6223_v21 = vpop.permute.xlu1 %1030  ;;  %v325_v26 = vld [vmem:[%s7988_s0 + $0x1b0] sm:$0xff] }
 0x145   :  { %v1377_v4 = vpop.f32.mrf.mxu0  ;;  %2002 = vmatmul.mubr.bf16.vlgmr.msra.gmra.mxu0 %v4371_v29  ;;  %v833_v29 = vpack.c.bf16 %v500_v52, %v495_v7  ;;  %v490_v7 = vld [vmem:[%s7988_s0 + $0x6d8] sm:$0xff] }
 0x146   :  { %3645 = vst [vmem:[%s7991_s3 + $0x238] sm:$0xff] %v3324_v22  ;;  %v3328_v63 = vmax.f32 %v1725_v17, 0.0  ;;  %v1727_v28 = vadd.f32 %v1726_v61, %v1374_v62  ;;  %v1730_v23 = vpop.f32.mrf.mxu1  ;;  %2355 = vmatmul.mubr.bf16.vlgmr.msra.gmra.mxu1 %v4382_v33  ;;  %v1378_v60 = vadd.f32 %v1377_v4, %v6199_v58  ;;  %2676 = vmatpush1.bf16.msra.mxu0 %v758_v19  ;;  %v485_v19 = vld [vmem:[%s7988_s0 + $0x6b0] sm:$0xff] }
 0x147   :  { %v1379_v25 = vpop.f32.mrf.mxu0  ;;  %2965 = vmatpush1.bf16.msra.mxu1 %v838_v27  ;;  %2011 = vmatprep.mubr.bf16.mxu0 %v4390_v38  ;;  %v330_v27 = vld [vmem:[%s7988_s0 + $0x1d8] sm:$0xff] }
 0x148   :  { %3649 = vst [vmem:[%s7991_s3 + $0x258] sm:$0xff] %v3328_v63  ;;  %v3329_v22 = vmax.f32 %v1727_v28, 0.0  ;;  %v1731_v17 = vadd.f32 %v1730_v23, %v1378_v60  ;;  %v1380_v62 = vadd.f32 %v1379_v25, %v6199_v58  ;;  %v1732_v61 = vpop.f32.mrf.mxu1  ;;  %2364 = vmatprep.mubr.bf16.mxu1 %v4401_v42  ;;  %2677 = vmatprep.subr.bf16.mxu0 %v8332_v14  ;;  %v6249_v60 = vpop.permute.xlu0 %1035 }
 0x149   :  { %v1381_v18 = vpop.f32.mrf.mxu0  ;;  %2966 = vmatprep.subr.bf16.mxu1 %v8332_v14  ;;  %8405 = vst [vmem:[#allocation118_spill] sm:$0xff] %v6249_v60  ;;  %v748_v25 = vpack.c.bf16 %v330_v27, %v325_v26  ;;  %v475_v26 = vld [vmem:[%s7988_s0 + $0x660] sm:$0xff]  ;;  %v480_v27 = vld [vmem:[%s7988_s0 + $0x688] sm:$0xff] }
 0x14a   :  { %3650 = vst [vmem:[%s7991_s3 + $0x260] sm:$0xff] %v3329_v22  ;;  %v3333_v52 = vmax.f32 %v1731_v17, 0.0  ;;  %v1733_v4 = vadd.f32 %v1732_v61, %v1380_v62  ;;  %v1382_v63 = vadd.f32 %v1381_v18, %v6223_v21  ;;  %v1734_v28 = vpop.f32.mrf.mxu1  ;;  %2678 = vmatpush1.bf16.msra.mxu0 %v753_v48  ;;  %v828_v62 = vpack.c.bf16 %v490_v7, %v485_v19  ;;  %v315_v48 = vld [vmem:[%s7988_s0 + $0x160] sm:$0xff] }
 0x14b   :  { %v1383_v23 = vpop.f32.mrf.mxu0  ;;  %2967 = vmatpush1.bf16.msra.mxu1 %v833_v29  ;;  %2679 = vmatprep.subr.bf16.mxu0 %v8332_v14  ;;  %v320_v29 = vld [vmem:[%s7988_s0 + $0x188] sm:$0xff] }
 0x14c   :  { %3654 = vst [vmem:[%s7991_s3 + $0x280] sm:$0xff] %v3333_v52  ;;  %v3334_v42 = vmax.f32 %v1733_v4, 0.0  ;;  %v1735_v38 = vadd.f32 %v1734_v28, %v1382_v63  ;;  %v1384_v22 = vadd.f32 %v1383_v23, %v6223_v21  ;;  %v1736_v17 = vpop.f32.mrf.mxu1  ;;  %2968 = vmatprep.subr.bf16.mxu1 %v8332_v14  ;;  %v6276_v63 = vpop.permute.xlu1 %1040  ;;  %v743_v28 = vpack.c.bf16 %v320_v29, %v315_v48  ;;  %v465_v29 = vld [vmem:[%s7988_s0 + $0x610] sm:$0xff] }
 0x14d   :  { %v1387_v61 = vpop.f32.mrf.mxu0  ;;  %2012 = vmatmul.mubr.bf16.gmra.mxu0 %v4455_v1 }
 0x14e   :  { %3655 = vst [vmem:[%s7991_s3 + $0x288] sm:$0xff] %v3334_v42  ;;  %v3338_v18 = vmax.f32 %v1735_v38, 0.0  ;;  %v1737_v19 = vadd.f32 %v1736_v17, %v1384_v22  ;;  %v1740_v7 = vpop.f32.mrf.mxu1  ;;  %2365 = vmatmul.mubr.bf16.gmra.mxu1 %v4466_v5  ;;  %v1388_v52 = vadd.f32 %v1387_v61, %v6249_v60  ;;  %2021 = vmatprep.mubr.bf16.mxu0 %v4468_v6  ;;  %v305_v61 = vld [vmem:[%s7988_s0 + $0x110] sm:$0xff] }
 0x14f   :  { %v1389_v4 = vpop.f32.mrf.mxu0  ;;  %2374 = vmatprep.mubr.bf16.mxu1 %v4476_v9  ;;  %2680 = vmatpush1.bf16.msra.mxu0 %v748_v25  ;;  %v823_v17 = vpack.c.bf16 %v480_v27, %v475_v26  ;;  %v310_v25 = vld [vmem:[%s7988_s0 + $0x138] sm:$0xff] }
 0x150   :  { %3659 = vst [vmem:[%s7991_s3 + $0x2a8] sm:$0xff] %v3338_v18  ;;  %v3339_v38 = vmax.f32 %v1737_v19, 0.0  ;;  %v1741_v42 = vadd.f32 %v1740_v7, %v1388_v52  ;;  %v1390_v23 = vadd.f32 %v1389_v4, %v6249_v60  ;;  %v1742_v22 = vpop.f32.mrf.mxu1  ;;  %2969 = vmatpush1.bf16.msra.mxu1 %v828_v62  ;;  %2681 = vmatprep.subr.bf16.mxu0 %v8332_v14  ;;  %v470_v62 = vld [vmem:[%s7988_s0 + $0x638] sm:$0xff]  ;;  %v6301_v52 = vpop.permute.xlu0 %1045 }
 0x151   :  { %v1391_v48 = vpop.f32.mrf.mxu0  ;;  %2970 = vmatprep.subr.bf16.mxu1 %v8332_v14  ;;  %v738_v4 = vpack.c.bf16 %v310_v25, %v305_v61 }
 0x152   :  { %3660 = vst [vmem:[%s7991_s3 + $0x2b0] sm:$0xff] %v3339_v38  ;;  %v3343_v26 = vmax.f32 %v1741_v42, 0.0  ;;  %v1743_v27 = vadd.f32 %v1742_v22, %v1390_v23  ;;  %v1392_v18 = vadd.f32 %v1391_v48, %v6276_v63  ;;  %v1744_v19 = vpop.f32.mrf.mxu1  ;;  %v818_v38 = vpack.c.bf16 %v470_v62, %v465_v29  ;;  %v295_v42 = vld [vmem:[%s7988_s0 + $0xc0] sm:$0xff] }
 0x153   :  { %v1393_v7 = vpop.f32.mrf.mxu0  ;;  %2682 = vmatpush1.bf16.msra.mxu0 %v743_v28  ;;  %v300_v28 = vld [vmem:[%s7988_s0 + $0xe8] sm:$0xff]  ;;  %v455_v22 = vld [vmem:[%s7988_s0 + $0x5c0] sm:$0xff] }
 0x154   :  { %3664 = vst [vmem:[%s7991_s3 + $0x2d0] sm:$0xff] %v3343_v26  ;;  %v3344_v9 = vmax.f32 %v1743_v27, 0.0  ;;  %v1745_v6 = vadd.f32 %v1744_v19, %v1392_v18  ;;  %v1394_v5 = vadd.f32 %v1393_v7, %v6276_v63  ;;  %v1746_v60 = vpop.f32.mrf.mxu1  ;;  %2971 = vmatpush1.bf16.msra.mxu1 %v823_v17  ;;  %2683 = vmatprep.subr.bf16.mxu0 %v8332_v14  ;;  %v460_v17 = vld [vmem:[%s7988_s0 + $0x5e8] sm:$0xff]  ;;  %v6328_v26 = vpop.permute.xlu1 %1050  ;;  %v285_v19 = vld [vmem:[%s7988_s0 + $0x70] sm:$0xff]  ;;  %v290_v7 = vld [vmem:[%s7988_s0 + $0x98] sm:$0xff] }
 0x155   :  { %v1397_v23 = vpop.f32.mrf.mxu0  ;;  %2022 = vmatmul.mubr.bf16.gmra.mxu0 %v4533_v40  ;;  %2972 = vmatprep.subr.bf16.mxu1 %v8332_v14  ;;  %v733_v27 = vpack.c.bf16 %v300_v28, %v295_v42  ;;  %v813_v18 = vpack.c.bf16 %v460_v17, %v455_v22  ;;  %v445_v42 = vld [vmem:[%s7988_s0 + $0x570] sm:$0xff] }
 0x156   :  { %3665 = vst [vmem:[%s7991_s3 + $0x2d8] sm:$0xff] %v3344_v9  ;;  %v3348_v61 = vmax.f32 %v1745_v6, 0.0  ;;  %v1747_v25 = vadd.f32 %v1746_v60, %v1394_v5  ;;  %v1750_v48 = vpop.f32.mrf.mxu1  ;;  %2375 = vmatmul.mubr.bf16.gmra.mxu1 %v4544_v45  ;;  %v1398_v29 = vadd.f32 %v1397_v23, %v6301_v52  ;;  %2031 = vmatprep.mubr.bf16.mxu0 %v4546_v46 }
 0x157   :  { %v1399_v62 = vpop.f32.mrf.mxu0  ;;  %2384 = vmatprep.mubr.bf16.mxu1 %v4551_v49  ;;  %2684 = vmatpush1.bf16.msra.mxu0 %v738_v4 }
 0x158   :  { %3669 = vst [vmem:[%s7991_s3 + $0x2f8] sm:$0xff] %v3348_v61  ;;  %v3349_v6 = vmax.f32 %v1747_v25, 0.0  ;;  %v1751_v5 = vadd.f32 %v1750_v48, %v1398_v29  ;;  %v1400_v9 = vadd.f32 %v1399_v62, %v6301_v52  ;;  %v1752_v60 = vpop.f32.mrf.mxu1  ;;  %2973 = vmatpush1.bf16.msra.mxu1 %v818_v38  ;;  %2685 = vmatprep.subr.bf16.mxu0 %v8332_v14  ;;  %v450_v38 = vld [vmem:[%s7988_s0 + $0x598] sm:$0xff]  ;;  %v6353_v25 = vpop.permute.xlu0 %1055 }
 0x159   :  { %v1401_v4 = vpop.f32.mrf.mxu0  ;;  %2974 = vmatprep.subr.bf16.mxu1 %v8332_v14  ;;  %v728_v48 = vpack.c.bf16 %v290_v7, %v285_v19 }
 0x15a   :  { %3670 = vst [vmem:[%s7991_s3 + $0x300] sm:$0xff] %v3349_v6  ;;  %v3353_v28 = vmax.f32 %v1751_v5, 0.0  ;;  %v1753_v23 = vadd.f32 %v1752_v60, %v1400_v9  ;;  %v1402_v22 = vadd.f32 %v1401_v4, %v6328_v26  ;;  %v1754_v17 = vpop.f32.mrf.mxu1  ;;  %v808_v6 = vpack.c.bf16 %v450_v38, %v445_v42  ;;  %v275_v5 = vld [vmem:[%s7988_s0 + $0x20] sm:$0xff] }
 0x15b   :  { %v1403_v61 = vpop.f32.mrf.mxu0  ;;  %2686 = vmatpush1.bf16.msra.mxu0 %v733_v27  ;;  %v280_v27 = vld [vmem:[%s7988_s0 + $0x48] sm:$0xff]  ;;  %v435_v60 = vld [vmem:[%s7988_s0 + $0x520] sm:$0xff] }
 0x15c   :  { %3674 = vst [vmem:[%s7991_s3 + $0x320] sm:$0xff] %v3353_v28  ;;  %v3354_v29 = vmax.f32 %v1753_v23, 0.0  ;;  %v1755_v62 = vadd.f32 %v1754_v17, %v1402_v22  ;;  %v1404_v49 = vadd.f32 %v1403_v61, %v6328_v26  ;;  %v1756_v46 = vpop.f32.mrf.mxu1  ;;  %2975 = vmatpush1.bf16.msra.mxu1 %v813_v18  ;;  %2687 = vmatprep.subr.bf16.mxu0 %v8332_v14  ;;  %v440_v18 = vld [vmem:[%s7988_s0 + $0x548] sm:$0xff]  ;;  %v6380_v28 = vpop.permute.xlu1 %1060 }
 0x15d   :  { %v1407_v9 = vpop.f32.mrf.mxu0  ;;  %2032 = vmatmul.mubr.bf16.gmra.mxu0 %v4593_v0  ;;  %2976 = vmatprep.subr.bf16.mxu1 %v8332_v14  ;;  %v723_v23 = vpack.c.bf16 %v280_v27, %v275_v5  ;;  %v803_v61 = vpack.c.bf16 %v440_v18, %v435_v60  ;;  %v585_v5 = vld [vmem:[%s7988_s0 + $0x9d0] sm:$0xff] }
 0x15e   :  { %3675 = vst [vmem:[%s7991_s3 + $0x328] sm:$0xff] %v3354_v29  ;;  %v3358_v19 = vmax.f32 %v1755_v62, 0.0  ;;  %v1757_v7 = vadd.f32 %v1756_v46, %v1404_v49  ;;  %v1760_v4 = vpop.f32.mrf.mxu1  ;;  %2385 = vmatmul.mubr.bf16.gmra.mxu1 %v4604_v8  ;;  %v1408_v42 = vadd.f32 %v1407_v9, %v6353_v25  ;;  %2041 = vmatprep.mubr.bf16.mxu0 %v4606_v10  ;;  %v425_v29 = vld [vmem:[%s7988_s0 + $0x4d0] sm:$0xff] }
 0x15f   :  { %v1409_v38 = vpop.f32.mrf.mxu0  ;;  %2394 = vmatprep.mubr.bf16.mxu1 %v4617_v15  ;;  %2688 = vmatpush1.bf16.msra.mxu0 %v728_v48  ;;  %v430_v48 = vld [vmem:[%s7988_s0 + $0x4f8] sm:$0xff] }
 0x160   :  { %3679 = vst [vmem:[%s7991_s3 + $0x348] sm:$0xff] %v3358_v19  ;;  %v3359_v22 = vmax.f32 %v1757_v7, 0.0  ;;  %v1761_v46 = vadd.f32 %v1760_v4, %v1408_v42  ;;  %v1410_v49 = vadd.f32 %v1409_v38, %v6353_v25  ;;  %v1762_v17 = vpop.f32.mrf.mxu1  ;;  %2977 = vmatpush1.bf16.msra.mxu1 %v808_v6  ;;  %2689 = vmatprep.subr.bf16.mxu0 %v8332_v14  ;;  %v590_v6 = vld [vmem:[%s7988_s0 + $0x9f8] sm:$0xff]  ;;  %v6405_v7 = vpop.permute.xlu0 %1065 }
 0x161   :  { %v1411_v62 = vpop.f32.mrf.mxu0  ;;  %2978 = vmatprep.subr.bf16.mxu1 %v8332_v14  ;;  %v798_v4 = vpack.c.bf16 %v430_v48, %v425_v29 }
 0x162   :  { %3680 = vst [vmem:[%s7991_s3 + $0x350] sm:$0xff] %v3359_v22  ;;  %v3363_v27 = vmax.f32 %v1761_v46, 0.0  ;;  %v1763_v9 = vadd.f32 %v1762_v17, %v1410_v49  ;;  %v1412_v60 = vadd.f32 %v1411_v62, %v6380_v28  ;;  %v1764_v18 = vpop.f32.mrf.mxu1  ;;  %v878_v22 = vpack.c.bf16 %v590_v6, %v585_v5  ;;  %v415_v46 = vld [vmem:[%s7988_s0 + $0x480] sm:$0xff] }
 0x163   :  { %v1413_v19 = vpop.f32.mrf.mxu0  ;;  %2690 = vmatpush1.bf16.msra.mxu0 %v723_v23  ;;  %v420_v23 = vld [vmem:[%s7988_s0 + $0x4a8] sm:$0xff]  ;;  %v575_v17 = vld [vmem:[%s7988_s0 + $0x980] sm:$0xff] }
 0x164   :  { %3684 = vst [vmem:[%s7991_s3 + $0x370] sm:$0xff] %v3363_v27  ;;  %v3364_v42 = vmax.f32 %v1763_v9, 0.0  ;;  %v1765_v38 = vadd.f32 %v1764_v18, %v1412_v60  ;;  %v1414_v15 = vadd.f32 %v1413_v19, %v6380_v28  ;;  %v1766_v10 = vpop.f32.mrf.mxu1  ;;  %2979 = vmatpush1.bf16.msra.mxu1 %v803_v61  ;;  %2691 = vmatprep.subr.bf16.mxu0 %v8332_v14  ;;  %v580_v61 = vld [vmem:[%s7988_s0 + $0x9a8] sm:$0xff]  ;;  %v6432_v27 = vpop.permute.xlu1 %1070 }
 0x165   :  { %v1417_v49 = vpop.f32.mrf.mxu0  ;;  %2042 = vmatmul.mubr.bf16.gmra.mxu0 %v4659_v35  ;;  %2980 = vmatprep.subr.bf16.mxu1 %v8332_v14  ;;  %v793_v9 = vpack.c.bf16 %v420_v23, %v415_v46  ;;  %v873_v19 = vpack.c.bf16 %v580_v61, %v575_v17 }
 0x166   :  { %3685 = vst [vmem:[%s7991_s3 + $0x378] sm:$0xff] %v3364_v42  ;;  %v3368_v29 = vmax.f32 %v1765_v38, 0.0  ;;  %v1767_v48 = vadd.f32 %v1766_v10, %v1414_v15  ;;  %v1770_v62 = vpop.f32.mrf.mxu1  ;;  %2395 = vmatmul.mubr.bf16.gmra.mxu1 %v4664_v37  ;;  %v1418_v5 = vadd.f32 %v1417_v49, %v6405_v7  ;;  %2051 = vmatprep.mubr.bf16.mxu0 %v4666_v39 }
 0x167   :  { %v1419_v6 = vpop.f32.mrf.mxu0  ;;  %2404 = vmatprep.mubr.bf16.mxu1 %v4674_v44  ;;  %2692 = vmatpush2.bf16.msra.mxu0 %v798_v4 }
 0x168   :  { %3689 = vst [vmem:[%s7991_s3 + $0x398] sm:$0xff] %v3368_v29  ;;  %v3369_v60 = vmax.f32 %v1767_v48, 0.0  ;;  %v1771_v10 = vadd.f32 %v1770_v62, %v1418_v5  ;;  %v1420_v15 = vadd.f32 %v1419_v6, %v6405_v7  ;;  %v1772_v18 = vpop.f32.mrf.mxu1  ;;  %2981 = vmatpush2.bf16.msra.mxu1 %v878_v22  ;;  %2693 = vmatprep.subr.bf16.mxu0 %v8332_v14  ;;  %v6445_v29 = vpop.permute.xlu0 %1075  ;;  %v405_v62 = vld [vmem:[%s7988_s0 + $0x430] sm:$0xff]  ;;  %v410_v5 = vld [vmem:[%s7988_s0 + $0x458] sm:$0xff] }
 0x169   :  { %v1421_v42 = vpop.f32.mrf.mxu0  ;;  %2982 = vmatprep.subr.bf16.mxu1 %v8332_v14 }
 0x16a   :  { %3690 = vst [vmem:[%s7991_s3 + $0x3a0] sm:$0xff] %v3369_v60  ;;  %v3373_v4 = vmax.f32 %v1771_v10, 0.0  ;;  %v1773_v38 = vadd.f32 %v1772_v18, %v1420_v15  ;;  %v1422_v46 = vadd.f32 %v1421_v42, %v6432_v27  ;;  %v1774_v23 = vpop.f32.mrf.mxu1  ;;  %v570_v42 = vld [vmem:[%s7988_s0 + $0x958] sm:$0xff] }
 0x16b   :  { %v1423_v49 = vpop.f32.mrf.mxu0  ;;  %2694 = vmatpush2.bf16.msra.mxu0 %v793_v9  ;;  %v788_v9 = vpack.c.bf16 %v410_v5, %v405_v62 }
 0x16c   :  { %3694 = vst [vmem:[%s7991_s3 + $0x3c0] sm:$0xff] %v3373_v4  ;;  %v3374_v22 = vmax.f32 %v1773_v38, 0.0  ;;  %v1775_v17 = vadd.f32 %v1774_v23, %v1422_v46  ;;  %v1424_v61 = vadd.f32 %v1423_v49, %v6432_v27  ;;  %v1776_v48 = vpop.f32.mrf.mxu1  ;;  %2983 = vmatpush2.bf16.msra.mxu1 %v873_v19  ;;  %2695 = vmatprep.subr.bf16.mxu0 %v8332_v14  ;;  %v565_v19 = vld [vmem:[%s7988_s0 + $0x930] sm:$0xff]  ;;  %v6472_v38 = vpop.permute.xlu1 %1080 }
 0x16d   :  { %v1427_v6 = vpop.f32.mrf.mxu0  ;;  %2052 = vmatmul.mubr.bf16.gmra.mxu0 %v4728_v11  ;;  %2984 = vmatprep.subr.bf16.mxu1 %v8332_v14  ;;  %v868_v46 = vpack.c.bf16 %v570_v42, %v565_v19 }
 0x16e   :  { %3695 = vst [vmem:[%s7991_s3 + $0x3c8] sm:$0xff] %v3374_v22  ;;  %v3378_v60 = vmax.f32 %v1775_v17, 0.0  ;;  %v1777_v10 = vadd.f32 %v1776_v48, %v1424_v61  ;;  %v1780_v15 = vpop.f32.mrf.mxu1  ;;  %2405 = vmatmul.mubr.bf16.gmra.mxu1 %v4730_v12  ;;  %v1428_v18 = vadd.f32 %v1427_v6, %v6445_v29  ;;  %2061 = vmatprep.mubr.bf16.mxu0 %v4732_v13 }
 0x16f   :  { %v1429_v4 = vpop.f32.mrf.mxu0  ;;  %2414 = vmatprep.mubr.bf16.mxu1 %v4737_v16  ;;  %2696 = vmatpush2.bf16.msra.mxu0 %v788_v9 }
 0x170   :  { %3699 = vst [vmem:[%s7991_s3 + $0x3e8] sm:$0xff] %v3378_v60  ;;  %v3379_v23 = vmax.f32 %v1777_v10, 0.0  ;;  %v1781_v49 = vadd.f32 %v1780_v15, %v1428_v18  ;;  %v1430_v22 = vadd.f32 %v1429_v4, %v6445_v29  ;;  %v1782_v17 = vpop.f32.mrf.mxu1  ;;  %2697 = vmatprep.subr.bf16.mxu0 %v8332_v14  ;;  %2985 = vmatpush2.bf16.msra.mxu1 %v868_v46  ;;  %v6485_v60 = vpop.permute.xlu0 %1085 }
 0x171   :  { %v1431_v61 = vpop.f32.mrf.mxu0  ;;  %2986 = vmatprep.subr.bf16.mxu1 %v8332_v14 }
 0x172   :  { %3700 = vst [vmem:[%s7991_s3 + $0x3f0] sm:$0xff] %v3379_v23  ;;  %v3383_v48 = vmax.f32 %v1781_v49, 0.0  ;;  %v1783_v62 = vadd.f32 %v1782_v17, %v1430_v22  ;;  %v1432_v5 = vadd.f32 %v1431_v61, %v6472_v38  ;;  %v1784_v6 = vpop.f32.mrf.mxu1  ;;  %v6498_v17 = vpop.permute.xlu1 %1090 }
 0x173   :  { %v1433_v9 = vpop.f32.mrf.mxu0 }
 0x174   :  { %3704 = vst [vmem:[%s7991_s3 + $0x410] sm:$0xff] %v3383_v48  ;;  %v3384_v10 = vmax.f32 %v1783_v62, 0.0  ;;  %v1785_v15 = vadd.f32 %v1784_v6, %v1432_v5  ;;  %v1434_v18 = vadd.f32 %v1433_v9, %v6472_v38  ;;  %v1786_v19 = vpop.f32.mrf.mxu1 }
 0x175   :  { %v1437_v42 = vpop.f32.mrf.mxu0  ;;  %2062 = vmatmul.mubr.bf16.gmra.mxu0 %v4797_v54 }
 0x176   :  { %3705 = vst [vmem:[%s7991_s3 + $0x418] sm:$0xff] %v3384_v10  ;;  %v3388_v4 = vmax.f32 %v1785_v15, 0.0  ;;  %v1787_v46 = vadd.f32 %v1786_v19, %v1434_v18  ;;  %v1790_v23 = vpop.f32.mrf.mxu1  ;;  %2415 = vmatmul.mubr.bf16.gmra.mxu1 %v4802_v56  ;;  %v1438_v49 = vadd.f32 %v1437_v42, %v6485_v60  ;;  %2071 = vmatprep.mubr.bf16.mxu0 %v4804_v57  ;;  %v6509_v42 = vpop.permute.xlu0 %1095 }
 0x177   :  { %v1439_v22 = vpop.f32.mrf.mxu0  ;;  %2424 = vmatprep.mubr.bf16.mxu1 %v4809_v59 }
 0x178   :  { %3709 = vst [vmem:[%s7991_s3 + $0x438] sm:$0xff] %v3388_v4  ;;  %v3389_v61 = vmax.f32 %v1787_v46, 0.0  ;;  %v1791_v48 = vadd.f32 %v1790_v23, %v1438_v49  ;;  %v1440_v62 = vadd.f32 %v1439_v22, %v6485_v60  ;;  %v1792_v5 = vpop.f32.mrf.mxu1  ;;  %v395_v22 = vld [vmem:[%s7988_s0 + $0x3e0] sm:$0xff] }
 0x179   :  { %v1441_v6 = vpop.f32.mrf.mxu0 }
 0x17a   :  { %3710 = vst [vmem:[%s7991_s3 + $0x440] sm:$0xff] %v3389_v61  ;;  %v3393_v9 = vmax.f32 %v1791_v48, 0.0  ;;  %v1793_v10 = vadd.f32 %v1792_v5, %v1440_v62  ;;  %v1442_v15 = vadd.f32 %v1441_v6, %v6498_v17  ;;  %v1794_v18 = vpop.f32.mrf.mxu1  ;;  %v400_v61 = vld [vmem:[%s7988_s0 + $0x408] sm:$0xff] }
 0x17b   :  { %v1443_v19 = vpop.f32.mrf.mxu0  ;;  %v783_v62 = vpack.c.bf16 %v400_v61, %v395_v22  ;;  %v6534_v22 = vpop.permute.xlu1 %1100 }
 0x17c   :  { %3714 = vst [vmem:[%s7991_s3 + $0x460] sm:$0xff] %v3393_v9  ;;  %v3394_v4 = vmax.f32 %v1793_v10, 0.0  ;;  %v1795_v46 = vadd.f32 %v1794_v18, %v1442_v15  ;;  %v1444_v23 = vadd.f32 %v1443_v19, %v6498_v17  ;;  %v1796_v49 = vpop.f32.mrf.mxu1  ;;  %v555_v15 = vld [vmem:[%s7988_s0 + $0x8e0] sm:$0xff]  ;;  %v560_v18 = vld [vmem:[%s7988_s0 + $0x908] sm:$0xff] }
 0x17d   :  { %v1447_v48 = vpop.f32.mrf.mxu0  ;;  %2072 = vmatmul.mubr.bf16.gmra.mxu0 %v4869_v36 }
 0x17e   :  { %3715 = vst [vmem:[%s7991_s3 + $0x468] sm:$0xff] %v3394_v4  ;;  %v3398_v5 = vmax.f32 %v1795_v46, 0.0  ;;  %v1797_v6 = vadd.f32 %v1796_v49, %v1444_v23  ;;  %v1800_v9 = vpop.f32.mrf.mxu1  ;;  %2425 = vmatmul.mubr.bf16.gmra.mxu1 %v4871_v41  ;;  %v1448_v10 = vadd.f32 %v1447_v48, %v6509_v42  ;;  %2081 = vmatprep.mubr.bf16.mxu0 %v4873_v43 }
 0x17f   :  { %v1449_v19 = vpop.f32.mrf.mxu0  ;;  %2434 = vmatprep.mubr.bf16.mxu1 %v4881_v50  ;;  %2698 = vmatpush2.bf16.msra.mxu0 %v783_v62  ;;  %v863_v4 = vpack.c.bf16 %v560_v18, %v555_v15 }
 0x180   :  { %3719 = vst [vmem:[%s7991_s3 + $0x488] sm:$0xff] %v3398_v5  ;;  %v3399_v46 = vmax.f32 %v1797_v6, 0.0  ;;  %v1801_v23 = vadd.f32 %v1800_v9, %v1448_v10  ;;  %v1450_v49 = vadd.f32 %v1449_v19, %v6509_v42  ;;  %v1802_v61 = vpop.f32.mrf.mxu1  ;;  %2699 = vmatprep.subr.bf16.mxu0 %v8332_v14  ;;  %v6547_v6 = vpop.permute.xlu0 %1105 }
 0x181   :  { %v1451_v48 = vpop.f32.mrf.mxu0  ;;  %2987 = vmatpush2.bf16.msra.mxu1 %v863_v4  ;;  %8406 = vst [vmem:[#allocation119_spill] sm:$0xff] %v6547_v6 }
 0x182   :  { %3720 = vst [vmem:[%s7991_s3 + $0x490] sm:$0xff] %v3399_v46  ;;  %v3403_v50 = vmax.f32 %v1801_v23, 0.0  ;;  %v1803_v62 = vadd.f32 %v1802_v61, %v1450_v49  ;;  %v1452_v15 = vadd.f32 %v1451_v48, %v6534_v22  ;;  %v1804_v18 = vpop.f32.mrf.mxu1  ;;  %2988 = vmatprep.subr.bf16.mxu1 %v8332_v14 }
 0x183   :  { %v1453_v5 = vpop.f32.mrf.mxu0 }
 0x184   :  { %3724 = vst [vmem:[%s7991_s3 + $0x4b0] sm:$0xff] %v3403_v50  ;;  %v3404_v9 = vmax.f32 %v1803_v62, 0.0  ;;  %v1805_v10 = vadd.f32 %v1804_v18, %v1452_v15  ;;  %v1454_v19 = vadd.f32 %v1453_v5, %v6534_v22  ;;  %v1806_v4 = vpop.f32.mrf.mxu1  ;;  %v6560_v62 = vpop.permute.xlu1 %1110 }
 0x185   :  { %v1457_v46 = vpop.f32.mrf.mxu0  ;;  %2082 = vmatmul.mubr.bf16.gmra.mxu0 %v4941_v24  ;;  %8407 = vst [vmem:[#allocation120_spill] sm:$0xff] %v6560_v62 }
 0x186   :  { %3725 = vst [vmem:[%s7991_s3 + $0x4b8] sm:$0xff] %v3404_v9  ;;  %v3408_v23 = vmax.f32 %v1805_v10, 0.0  ;;  %v1807_v49 = vadd.f32 %v1806_v4, %v1454_v19  ;;  %v1810_v61 = vpop.f32.mrf.mxu1  ;;  %2435 = vmatmul.mubr.bf16.gmra.mxu1 %v4943_v30  ;;  %v1458_v48 = vadd.f32 %v1457_v46, %v6547_v6  ;;  %2091 = vmatprep.mubr.bf16.mxu0 %v4945_v31  ;;  %v6571_v30 = vpop.permute.xlu0 %1115 }
 0x187   :  { %v1459_v50 = vpop.f32.mrf.mxu0  ;;  %2444 = vmatprep.mubr.bf16.mxu1 %v4947_v32  ;;  %8408 = vst [vmem:[#allocation121_spill] sm:$0xff] %v6571_v30 }
 0x188   :  { %3729 = vst [vmem:[%s7991_s3 + $0x4d8] sm:$0xff] %v3408_v23  ;;  %v3409_v15 = vmax.f32 %v1807_v49, 0.0  ;;  %v1811_v18 = vadd.f32 %v1810_v61, %v1458_v48  ;;  %v1460_v5 = vadd.f32 %v1459_v50, %v6547_v6  ;;  %v1812_v9 = vpop.f32.mrf.mxu1  ;;  %v385_v50 = vld [vmem:[%s7988_s0 + $0x390] sm:$0xff] }
 0x189   :  { %v1461_v10 = vpop.f32.mrf.mxu0 }
 0x18a   :  { %3730 = vst [vmem:[%s7991_s3 + $0x4e0] sm:$0xff] %v3409_v15  ;;  %v3413_v19 = vmax.f32 %v1811_v18, 0.0  ;;  %v1813_v4 = vadd.f32 %v1812_v9, %v1460_v5  ;;  %v1462_v46 = vadd.f32 %v1461_v10, %v6560_v62  ;;  %v1814_v31 = vpop.f32.mrf.mxu1  ;;  %v390_v15 = vld [vmem:[%s7988_s0 + $0x3b8] sm:$0xff]  ;;  %v8409_v5 = vld [vmem:[#allocation18_spill] sm:$0xff] }
 0x18b   :  { %v1463_v32 = vpop.f32.mrf.mxu0  ;;  %v778_v9 = vpack.c.bf16 %v390_v15, %v385_v50  ;;  %v550_v50 = vld [vmem:[%s7988_s0 + $0x8b8] sm:$0xff] }
 0x18c   :  { %3734 = vst [vmem:[%s7991_s3 + $0x500] sm:$0xff] %v3413_v19  ;;  %v3414_v23 = vmax.f32 %v1813_v4, 0.0  ;;  %v1815_v49 = vadd.f32 %v1814_v31, %v1462_v46  ;;  %v1464_v61 = vadd.f32 %v1463_v32, %v6560_v62  ;;  %v1816_v48 = vpop.f32.mrf.mxu1  ;;  %v8410_v19 = vld [vmem:[#allocation19_spill] sm:$0xff]  ;;  %v8411_v46 = vld [vmem:[#allocation20_spill] sm:$0xff] }
 0x18d   :  { %v1467_v18 = vpop.f32.mrf.mxu0  ;;  %2092 = vmatmul.mubr.bf16.gmra.mxu0 %v8409_v5  ;;  %v545_v62 = vld [vmem:[%s7988_s0 + $0x890] sm:$0xff]  ;;  %v6596_v5 = vpop.permute.xlu1 %1120 }
 0x18e   :  { %3735 = vst [vmem:[%s7991_s3 + $0x508] sm:$0xff] %v3414_v23  ;;  %v3418_v31 = vmax.f32 %v1815_v49, 0.0  ;;  %v1817_v10 = vadd.f32 %v1816_v48, %v1464_v61  ;;  %v1820_v32 = vpop.f32.mrf.mxu1  ;;  %2445 = vmatmul.mubr.bf16.gmra.mxu1 %v8410_v19  ;;  %v1468_v4 = vadd.f32 %v1467_v18, %v6571_v30  ;;  %2101 = vmatprep.mubr.bf16.mxu0 %v8411_v46  ;;  %8412 = vst [vmem:[#allocation122_spill] sm:$0xff] %v6596_v5  ;;  %v8413_v23 = vld [vmem:[#allocation21_spill] sm:$0xff] }
 0x18f   :  { %v1469_v15 = vpop.f32.mrf.mxu0  ;;  %2454 = vmatprep.mubr.bf16.mxu1 %v8413_v23  ;;  %2700 = vmatpush2.bf16.msra.mxu0 %v778_v9  ;;  %v858_v49 = vpack.c.bf16 %v550_v50, %v545_v62 }
 0x190   :  { %3739 = vst [vmem:[%s7991_s3 + $0x528] sm:$0xff] %v3418_v31  ;;  %v3419_v61 = vmax.f32 %v1817_v10, 0.0  ;;  %v1821_v48 = vadd.f32 %v1820_v32, %v1468_v4  ;;  %v1470_v18 = vadd.f32 %v1469_v15, %v6571_v30  ;;  %v1822_v46 = vpop.f32.mrf.mxu1  ;;  %2701 = vmatprep.subr.bf16.mxu0 %v8332_v14  ;;  %v6609_v10 = vpop.permute.xlu0 %1125  ;;  %v8416_v30 = vld [vmem:[#allocation23_spill] sm:$0xff] }
 0x191   :  { %v1471_v19 = vpop.f32.mrf.mxu0  ;;  %2989 = vmatpush2.bf16.msra.mxu1 %v858_v49  ;;  %8414 = vst [vmem:[#allocation123_spill] sm:$0xff] %v6609_v10 }
 0x192   :  { %3740 = vst [vmem:[%s7991_s3 + $0x530] sm:$0xff] %v3419_v61  ;;  %v3423_v23 = vmax.f32 %v1821_v48, 0.0  ;;  %v1823_v9 = vadd.f32 %v1822_v46, %v1470_v18  ;;  %v1472_v62 = vadd.f32 %v1471_v19, %v6596_v5  ;;  %v1824_v50 = vpop.f32.mrf.mxu1  ;;  %2990 = vmatprep.subr.bf16.mxu1 %v8332_v14  ;;  %v8415_v48 = vld [vmem:[#allocation22_spill] sm:$0xff] }
 0x193   :  { %v1473_v31 = vpop.f32.mrf.mxu0 }
 0x194   :  { %3744 = vst [vmem:[%s7991_s3 + $0x550] sm:$0xff] %v3423_v23  ;;  %v3424_v32 = vmax.f32 %v1823_v9, 0.0  ;;  %v1825_v4 = vadd.f32 %v1824_v50, %v1472_v62  ;;  %v1474_v15 = vadd.f32 %v1473_v31, %v6596_v5  ;;  %v1826_v49 = vpop.f32.mrf.mxu1  ;;  %v8417_v23 = vld [vmem:[#allocation24_spill] sm:$0xff]  ;;  %v6622_v62 = vpop.permute.xlu1 %1130  ;;  %v8419_v50 = vld [vmem:[#allocation25_spill] sm:$0xff] }
 0x195   :  { %v1477_v61 = vpop.f32.mrf.mxu0  ;;  %2102 = vmatmul.mubr.bf16.gmra.mxu0 %v8415_v48  ;;  %8418 = vst [vmem:[#allocation124_spill] sm:$0xff] %v6622_v62  ;;  %v6633_v5 = vpop.permute.xlu0 %1135 }
 0x196   :  { %3745 = vst [vmem:[%s7991_s3 + $0x558] sm:$0xff] %v3424_v32  ;;  %v3428_v19 = vmax.f32 %v1825_v4, 0.0  ;;  %v1827_v46 = vadd.f32 %v1826_v49, %v1474_v15  ;;  %v1830_v18 = vpop.f32.mrf.mxu1  ;;  %2455 = vmatmul.mubr.bf16.gmra.mxu1 %v8416_v30  ;;  %v1478_v6 = vadd.f32 %v1477_v61, %v6609_v10  ;;  %2111 = vmatprep.mubr.bf16.mxu0 %v8417_v23  ;;  %8420 = vst [vmem:[#allocation125_spill] sm:$0xff] %v6633_v5 }
 0x197   :  { %v1479_v9 = vpop.f32.mrf.mxu0  ;;  %2464 = vmatprep.mubr.bf16.mxu1 %v8419_v50 }
 0x198   :  { %3749 = vst [vmem:[%s7991_s3 + $0x578] sm:$0xff] %v3428_v19  ;;  %v3429_v31 = vmax.f32 %v1827_v46, 0.0  ;;  %v1831_v32 = vadd.f32 %v1830_v18, %v1478_v6  ;;  %v1480_v4 = vadd.f32 %v1479_v9, %v6609_v10  ;;  %v1832_v15 = vpop.f32.mrf.mxu1  ;;  %v375_v9 = vld [vmem:[%s7988_s0 + $0x340] sm:$0xff] }
 0x199   :  { %v1481_v49 = vpop.f32.mrf.mxu0 }
 0x19a   :  { %3750 = vst [vmem:[%s7991_s3 + $0x580] sm:$0xff] %v3429_v31  ;;  %v3433_v61 = vmax.f32 %v1831_v32, 0.0  ;;  %v1833_v23 = vadd.f32 %v1832_v15, %v1480_v4  ;;  %v1482_v30 = vadd.f32 %v1481_v49, %v6622_v62  ;;  %v1834_v48 = vpop.f32.mrf.mxu1  ;;  %v380_v31 = vld [vmem:[%s7988_s0 + $0x368] sm:$0xff]  ;;  %v8421_v4 = vld [vmem:[#allocation26_spill] sm:$0xff] }
 0x19b   :  { %v1483_v50 = vpop.f32.mrf.mxu0  ;;  %v773_v15 = vpack.c.bf16 %v380_v31, %v375_v9  ;;  %v540_v9 = vld [vmem:[%s7988_s0 + $0x868] sm:$0xff] }
 0x19c   :  { %3754 = vst [vmem:[%s7991_s3 + $0x5a0] sm:$0xff] %v3433_v61  ;;  %v3434_v6 = vmax.f32 %v1833_v23, 0.0  ;;  %v1835_v19 = vadd.f32 %v1834_v48, %v1482_v30  ;;  %v1484_v46 = vadd.f32 %v1483_v50, %v6622_v62  ;;  %v1836_v18 = vpop.f32.mrf.mxu1  ;;  %v8422_v50 = vld [vmem:[#allocation27_spill] sm:$0xff]  ;;  %v8423_v61 = vld [vmem:[#allocation28_spill] sm:$0xff]  ;;  %v535_v62 = vld [vmem:[%s7988_s0 + $0x840] sm:$0xff] }
 0x19d   :  { %v1487_v32 = vpop.f32.mrf.mxu0  ;;  %2112 = vmatmul.mubr.bf16.gmra.mxu0 %v8421_v4  ;;  %v6658_v4 = vpop.permute.xlu1 %1140 }
 0x19e   :  { %3755 = vst [vmem:[%s7991_s3 + $0x5a8] sm:$0xff] %v3434_v6  ;;  %v3438_v30 = vmax.f32 %v1835_v19, 0.0  ;;  %v1837_v48 = vadd.f32 %v1836_v18, %v1484_v46  ;;  %v1840_v23 = vpop.f32.mrf.mxu1  ;;  %2465 = vmatmul.mubr.bf16.gmra.mxu1 %v8422_v50  ;;  %v1488_v49 = vadd.f32 %v1487_v32, %v6633_v5  ;;  %2121 = vmatprep.mubr.bf16.mxu0 %v8423_v61  ;;  %8424 = vst [vmem:[#allocation126_spill] sm:$0xff] %v6658_v4  ;;  %v8425_v6 = vld [vmem:[#allocation29_spill] sm:$0xff] }
 0x19f   :  { %v1489_v31 = vpop.f32.mrf.mxu0  ;;  %2474 = vmatprep.mubr.bf16.mxu1 %v8425_v6  ;;  %2702 = vmatpush2.bf16.msra.mxu0 %v773_v15  ;;  %v853_v19 = vpack.c.bf16 %v540_v9, %v535_v62 }
 0x1a0   :  { %3759 = vst [vmem:[%s7991_s3 + $0x5c8] sm:$0xff] %v3438_v30  ;;  %v3439_v46 = vmax.f32 %v1837_v48, 0.0  ;;  %v1841_v18 = vadd.f32 %v1840_v23, %v1488_v49  ;;  %v1490_v32 = vadd.f32 %v1489_v31, %v6633_v5  ;;  %v1842_v61 = vpop.f32.mrf.mxu1  ;;  %2703 = vmatprep.subr.bf16.mxu0 %v8332_v14  ;;  %v6671_v48 = vpop.permute.xlu0 %1145  ;;  %v8428_v5 = vld [vmem:[#allocation31_spill] sm:$0xff] }
 0x1a1   :  { %v1491_v50 = vpop.f32.mrf.mxu0  ;;  %2991 = vmatpush2.bf16.msra.mxu1 %v853_v19  ;;  %8426 = vst [vmem:[#allocation127_spill] sm:$0xff] %v6671_v48 }
 0x1a2   :  { %3760 = vst [vmem:[%s7991_s3 + $0x5d0] sm:$0xff] %v3439_v46  ;;  %v3443_v6 = vmax.f32 %v1841_v18, 0.0  ;;  %v1843_v15 = vadd.f32 %v1842_v61, %v1490_v32  ;;  %v1492_v62 = vadd.f32 %v1491_v50, %v6658_v4  ;;  %v1844_v9 = vpop.f32.mrf.mxu1  ;;  %2992 = vmatprep.subr.bf16.mxu1 %v8332_v14  ;;  %v8427_v18 = vld [vmem:[#allocation30_spill] sm:$0xff] }
 0x1a3   :  { %v1493_v30 = vpop.f32.mrf.mxu0 }
 0x1a4   :  { %3764 = vst [vmem:[%s7991_s3 + $0x5f0] sm:$0xff] %v3443_v6  ;;  %v3444_v23 = vmax.f32 %v1843_v15, 0.0  ;;  %v1845_v49 = vadd.f32 %v1844_v9, %v1492_v62  ;;  %v1494_v31 = vadd.f32 %v1493_v30, %v6658_v4  ;;  %v1846_v19 = vpop.f32.mrf.mxu1  ;;  %v8429_v6 = vld [vmem:[#allocation32_spill] sm:$0xff]  ;;  %v6684_v62 = vpop.permute.xlu1 %1150  ;;  %v8431_v9 = vld [vmem:[#allocation33_spill] sm:$0xff] }
 0x1a5   :  { %v1497_v46 = vpop.f32.mrf.mxu0  ;;  %2122 = vmatmul.mubr.bf16.gmra.mxu0 %v8427_v18  ;;  %8430 = vst [vmem:[#allocation128_spill] sm:$0xff] %v6684_v62  ;;  %v6695_v4 = vpop.permute.xlu0 %1155 }
 0x1a6   :  { %3765 = vst [vmem:[%s7991_s3 + $0x5f8] sm:$0xff] %v3444_v23  ;;  %v3448_v50 = vmax.f32 %v1845_v49, 0.0  ;;  %v1847_v61 = vadd.f32 %v1846_v19, %v1494_v31  ;;  %v1850_v32 = vpop.f32.mrf.mxu1  ;;  %2475 = vmatmul.mubr.bf16.gmra.mxu1 %v8428_v5  ;;  %v1498_v10 = vadd.f32 %v1497_v46, %v6671_v48  ;;  %2131 = vmatprep.mubr.bf16.mxu0 %v8429_v6  ;;  %8432 = vst [vmem:[#allocation129_spill] sm:$0xff] %v6695_v4 }
 0x1a7   :  { %v1499_v15 = vpop.f32.mrf.mxu0  ;;  %2484 = vmatprep.mubr.bf16.mxu1 %v8431_v9 }
 0x1a8   :  { %3769 = vst [vmem:[%s7991_s3 + $0x618] sm:$0xff] %v3448_v50  ;;  %v3449_v30 = vmax.f32 %v1847_v61, 0.0  ;;  %v1851_v23 = vadd.f32 %v1850_v32, %v1498_v10  ;;  %v1500_v49 = vadd.f32 %v1499_v15, %v6671_v48  ;;  %v1852_v31 = vpop.f32.mrf.mxu1  ;;  %v365_v15 = vld [vmem:[%s7988_s0 + $0x2f0] sm:$0xff] }
 0x1a9   :  { %v1501_v19 = vpop.f32.mrf.mxu0 }
 0x1aa   :  { %3770 = vst [vmem:[%s7991_s3 + $0x620] sm:$0xff] %v3449_v30  ;;  %v3453_v46 = vmax.f32 %v1851_v23, 0.0  ;;  %v1853_v6 = vadd.f32 %v1852_v31, %v1500_v49  ;;  %v1502_v5 = vadd.f32 %v1501_v19, %v6684_v62  ;;  %v1854_v18 = vpop.f32.mrf.mxu1  ;;  %v370_v30 = vld [vmem:[%s7988_s0 + $0x318] sm:$0xff]  ;;  %v8433_v49 = vld [vmem:[#allocation34_spill] sm:$0xff] }
 0x1ab   :  { %v1503_v9 = vpop.f32.mrf.mxu0  ;;  %v768_v31 = vpack.c.bf16 %v370_v30, %v365_v15  ;;  %v530_v15 = vld [vmem:[%s7988_s0 + $0x818] sm:$0xff] }
 0x1ac   :  { %3774 = vst [vmem:[%s7991_s3 + $0x640] sm:$0xff] %v3453_v46  ;;  %v3454_v10 = vmax.f32 %v1853_v6, 0.0  ;;  %v1855_v50 = vadd.f32 %v1854_v18, %v1502_v5  ;;  %v1504_v61 = vadd.f32 %v1503_v9, %v6684_v62  ;;  %v1856_v32 = vpop.f32.mrf.mxu1  ;;  %v8434_v9 = vld [vmem:[#allocation35_spill] sm:$0xff]  ;;  %v8435_v46 = vld [vmem:[#allocation36_spill] sm:$0xff] }
 0x1ad   :  { %v1507_v23 = vpop.f32.mrf.mxu0  ;;  %2132 = vmatmul.mubr.bf16.gmra.mxu0 %v8433_v49  ;;  %v525_v62 = vld [vmem:[%s7988_s0 + $0x7f0] sm:$0xff]  ;;  %v6720_v49 = vpop.permute.xlu1 %1160 }
 0x1ae   :  { %3775 = vst [vmem:[%s7991_s3 + $0x648] sm:$0xff] %v3454_v10  ;;  %v3458_v5 = vmax.f32 %v1855_v50, 0.0  ;;  %v1857_v18 = vadd.f32 %v1856_v32, %v1504_v61  ;;  %v1860_v6 = vpop.f32.mrf.mxu1  ;;  %2485 = vmatmul.mubr.bf16.gmra.mxu1 %v8434_v9  ;;  %v1508_v19 = vadd.f32 %v1507_v23, %v6695_v4  ;;  %2141 = vmatprep.mubr.bf16.mxu0 %v8435_v46  ;;  %8436 = vst [vmem:[#allocation130_spill] sm:$0xff] %v6720_v49  ;;  %v8437_v10 = vld [vmem:[#allocation37_spill] sm:$0xff] }
 0x1af   :  { %v1509_v30 = vpop.f32.mrf.mxu0  ;;  %2494 = vmatprep.mubr.bf16.mxu1 %v8437_v10  ;;  %2704 = vmatpush2.bf16.msra.mxu0 %v768_v31  ;;  %v848_v50 = vpack.c.bf16 %v530_v15, %v525_v62 }
 0x1b0   :  { %3779 = vst [vmem:[%s7991_s3 + $0x668] sm:$0xff] %v3458_v5  ;;  %v3459_v61 = vmax.f32 %v1857_v18, 0.0  ;;  %v1861_v32 = vadd.f32 %v1860_v6, %v1508_v19  ;;  %v1510_v23 = vadd.f32 %v1509_v30, %v6695_v4  ;;  %v1862_v46 = vpop.f32.mrf.mxu1  ;;  %2705 = vmatprep.subr.bf16.mxu0 %v8332_v14  ;;  %v6733_v18 = vpop.permute.xlu0 %1165 }
 0x1b1   :  { %v1511_v9 = vpop.f32.mrf.mxu0  ;;  %2993 = vmatpush2.bf16.msra.mxu1 %v848_v50  ;;  %8438 = vst [vmem:[#allocation131_spill] sm:$0xff] %v6733_v18 }
 0x1b2   :  { %3780 = vst [vmem:[%s7991_s3 + $0x670] sm:$0xff] %v3459_v61  ;;  %v3463_v10 = vmax.f32 %v1861_v32, 0.0  ;;  %v1863_v31 = vadd.f32 %v1862_v46, %v1510_v23  ;;  %v1512_v62 = vadd.f32 %v1511_v9, %v6720_v49  ;;  %v1864_v15 = vpop.f32.mrf.mxu1  ;;  %2994 = vmatprep.subr.bf16.mxu1 %v8332_v14  ;;  %v8439_v32 = vld [vmem:[#allocation38_spill] sm:$0xff]  ;;  %v8440_v23 = vld [vmem:[#allocation39_spill] sm:$0xff] }
 0x1b3   :  { %v1513_v5 = vpop.f32.mrf.mxu0 }
 0x1b4   :  { %3784 = vst [vmem:[%s7991_s3 + $0x690] sm:$0xff] %v3463_v10  ;;  %v3464_v6 = vmax.f32 %v1863_v31, 0.0  ;;  %v1865_v19 = vadd.f32 %v1864_v15, %v1512_v62  ;;  %v1514_v30 = vadd.f32 %v1513_v5, %v6720_v49  ;;  %v1866_v50 = vpop.f32.mrf.mxu1  ;;  %v8441_v10 = vld [vmem:[#allocation40_spill] sm:$0xff]  ;;  %v6746_v62 = vpop.permute.xlu1 %1170  ;;  %v8443_v15 = vld [vmem:[#allocation41_spill] sm:$0xff] }
 0x1b5   :  { %v1517_v61 = vpop.f32.mrf.mxu0  ;;  %2142 = vmatmul.mubr.bf16.gmra.mxu0 %v8439_v32  ;;  %8442 = vst [vmem:[#allocation132_spill] sm:$0xff] %v6746_v62  ;;  %v6757_v49 = vpop.permute.xlu0 %1175 }
 0x1b6   :  { %3785 = vst [vmem:[%s7991_s3 + $0x698] sm:$0xff] %v3464_v6  ;;  %v3468_v14 = vmax.f32 %v1865_v19, 0.0  ;;  %v1867_v9 = vadd.f32 %v1866_v50, %v1514_v30  ;;  %v1870_v46 = vpop.f32.mrf.mxu1  ;;  %2495 = vmatmul.mubr.bf16.gmra.mxu1 %v8440_v23  ;;  %v1518_v4 = vadd.f32 %v1517_v61, %v6733_v18  ;;  %2151 = vmatprep.mubr.bf16.mxu0 %v8441_v10 }
 0x1b7   :  { %v1519_v31 = vpop.f32.mrf.mxu0  ;;  %2504 = vmatprep.mubr.bf16.mxu1 %v8443_v15 }
 0x1b8   :  { %3789 = vst [vmem:[%s7991_s3 + $0x6b8] sm:$0xff] %v3468_v14  ;;  %v3469_v5 = vmax.f32 %v1867_v9, 0.0  ;;  %v1871_v6 = vadd.f32 %v1870_v46, %v1518_v4  ;;  %v1520_v19 = vadd.f32 %v1519_v31, %v6733_v18  ;;  %v1872_v30 = vpop.f32.mrf.mxu1  ;;  %v355_v31 = vld [vmem:[%s7988_s0 + $0x2a0] sm:$0xff] }
 0x1b9   :  { %v1521_v50 = vpop.f32.mrf.mxu0 }
 0x1ba   :  { %3790 = vst [vmem:[%s7991_s3 + $0x6c0] sm:$0xff] %v3469_v5  ;;  %v3473_v61 = vmax.f32 %v1871_v6, 0.0  ;;  %v1873_v10 = vadd.f32 %v1872_v30, %v1520_v19  ;;  %v1522_v23 = vadd.f32 %v1521_v50, %v6746_v62  ;;  %v1874_v32 = vpop.f32.mrf.mxu1  ;;  %v360_v5 = vld [vmem:[%s7988_s0 + $0x2c8] sm:$0xff]  ;;  %v8444_v19 = vld [vmem:[#allocation42_spill] sm:$0xff] }
 0x1bb   :  { %v1523_v15 = vpop.f32.mrf.mxu0  ;;  %v763_v30 = vpack.c.bf16 %v360_v5, %v355_v31  ;;  %v520_v31 = vld [vmem:[%s7988_s0 + $0x7c8] sm:$0xff] }
 0x1bc   :  { %3794 = vst [vmem:[%s7991_s3 + $0x6e0] sm:$0xff] %v3473_v61  ;;  %v3474_v4 = vmax.f32 %v1873_v10, 0.0  ;;  %v1875_v14 = vadd.f32 %v1874_v32, %v1522_v23  ;;  %v1524_v9 = vadd.f32 %v1523_v15, %v6746_v62  ;;  %v1876_v46 = vpop.f32.mrf.mxu1  ;;  %v8445_v15 = vld [vmem:[#allocation43_spill] sm:$0xff]  ;;  %v8446_v61 = vld [vmem:[#allocation44_spill] sm:$0xff]  ;;  %v515_v62 = vld [vmem:[%s7988_s0 + $0x7a0] sm:$0xff] }
 0x1bd   :  { %v1527_v6 = vpop.f32.mrf.mxu0  ;;  %2152 = vmatmul.mubr.bf16.gmra.mxu0 %v8444_v19  ;;  %v6782_v19 = vpop.permute.xlu1 %1180 }
 0x1be   :  { %3795 = vst [vmem:[%s7991_s3 + $0x6e8] sm:$0xff] %v3474_v4  ;;  %v3478_v32 = vmax.f32 %v1875_v14, 0.0  ;;  %v1877_v23 = vadd.f32 %v1876_v46, %v1524_v9  ;;  %v1880_v10 = vpop.f32.mrf.mxu1  ;;  %2505 = vmatmul.mubr.bf16.gmra.mxu1 %v8445_v15  ;;  %v1528_v50 = vadd.f32 %v1527_v6, %v6757_v49  ;;  %2161 = vmatprep.mubr.bf16.mxu0 %v8446_v61  ;;  %8447 = vst [vmem:[#allocation133_spill] sm:$0xff] %v6782_v19  ;;  %v8448_v4 = vld [vmem:[#allocation45_spill] sm:$0xff] }
 0x1bf   :  { %v1529_v5 = vpop.f32.mrf.mxu0  ;;  %2514 = vmatprep.mubr.bf16.mxu1 %v8448_v4  ;;  %2706 = vmatpush2.bf16.msra.mxu0 %v763_v30  ;;  %v843_v14 = vpack.c.bf16 %v520_v31, %v515_v62  ;;  %v6793_v4 = vpop.permute.xlu0 %1185 }
 0x1c0   :  { %3799 = vst [vmem:[%s7991_s3 + $0x708] sm:$0xff] %v3478_v32  ;;  %v3479_v9 = vmax.f32 %v1877_v23, 0.0  ;;  %v1881_v46 = vadd.f32 %v1880_v10, %v1528_v50  ;;  %v1530_v6 = vadd.f32 %v1529_v5, %v6757_v49  ;;  %v1882_v61 = vpop.f32.mrf.mxu1  ;;  %8449 = vst [vmem:[#allocation134_spill] sm:$0xff] %v6793_v4 }
 0x1c1   :  { %v1531_v15 = vpop.f32.mrf.mxu0  ;;  %2995 = vmatpush2.bf16.msra.mxu1 %v843_v14  ;;  %v8450_v14 = vld [vmem:[#allocation46_spill] sm:$0xff] }
 0x1c2   :  { %3800 = vst [vmem:[%s7991_s3 + $0x710] sm:$0xff] %v3479_v9  ;;  %v3483_v18 = vmax.f32 %v1881_v46, 0.0  ;;  %v1883_v48 = vadd.f32 %v1882_v61, %v1530_v6  ;;  %v1532_v30 = vadd.f32 %v1531_v15, %v6782_v19  ;;  %v1884_v62 = vpop.f32.mrf.mxu1  ;;  %v8451_v46 = vld [vmem:[#allocation47_spill] sm:$0xff] }
 0x1c3   :  { %v1533_v31 = vpop.f32.mrf.mxu0 }
 0x1c4   :  { %3804 = vst [vmem:[%s7991_s3 + $0x730] sm:$0xff] %v3483_v18  ;;  %v3484_v32 = vmax.f32 %v1883_v48, 0.0  ;;  %v1885_v23 = vadd.f32 %v1884_v62, %v1532_v30  ;;  %v1534_v10 = vadd.f32 %v1533_v31, %v6782_v19  ;;  %v1886_v50 = vpop.f32.mrf.mxu1  ;;  %v8452_v18 = vld [vmem:[#allocation48_spill] sm:$0xff]  ;;  %v6806_v30 = vpop.permute.xlu1 %1190  ;;  %v8454_v62 = vld [vmem:[#allocation49_spill] sm:$0xff] }
 0x1c5   :  { %v1537_v5 = vpop.f32.mrf.mxu0  ;;  %2162 = vmatmul.mubr.bf16.gmra.mxu0 %v8450_v14  ;;  %8453 = vst [vmem:[#allocation135_spill] sm:$0xff] %v6806_v30  ;;  %v6817_v19 = vpop.permute.xlu0 %1195 }
 0x1c6   :  { %3805 = vst [vmem:[%s7991_s3 + $0x738] sm:$0xff] %v3484_v32  ;;  %v3488_v15 = vmax.f32 %v1885_v23, 0.0  ;;  %v1887_v61 = vadd.f32 %v1886_v50, %v1534_v10  ;;  %v1890_v9 = vpop.f32.mrf.mxu1  ;;  %2515 = vmatmul.mubr.bf16.gmra.mxu1 %v8451_v46  ;;  %v1538_v6 = vadd.f32 %v1537_v5, %v6793_v4  ;;  %2171 = vmatprep.mubr.bf16.mxu0 %v8452_v18  ;;  %8455 = vst [vmem:[#allocation136_spill] sm:$0xff] %v6817_v19 }
 0x1c7   :  { %v1539_v48 = vpop.f32.mrf.mxu0  ;;  %2524 = vmatprep.mubr.bf16.mxu1 %v8454_v62 }
 0x1c8   :  { %3809 = vst [vmem:[%s7991_s3 + $0x758] sm:$0xff] %v3488_v15  ;;  %v3489_v31 = vmax.f32 %v1887_v61, 0.0  ;;  %v1891_v32 = vadd.f32 %v1890_v9, %v1538_v6  ;;  %v1540_v23 = vadd.f32 %v1539_v48, %v6793_v4  ;;  %v1892_v10 = vpop.f32.mrf.mxu1  ;;  %v8456_v4 = vld [vmem:[#allocation50_spill] sm:$0xff] }
 0x1c9   :  { %v1541_v50 = vpop.f32.mrf.mxu0 }
 0x1ca   :  { %3810 = vst [vmem:[%s7991_s3 + $0x760] sm:$0xff] %v3489_v31  ;;  %v3493_v5 = vmax.f32 %v1891_v32, 0.0  ;;  %v1893_v18 = vadd.f32 %v1892_v10, %v1540_v23  ;;  %v1542_v46 = vadd.f32 %v1541_v50, %v6806_v30  ;;  %v1894_v14 = vpop.f32.mrf.mxu1  ;;  %v8457_v10 = vld [vmem:[#allocation51_spill] sm:$0xff] }
 0x1cb   :  { %v1543_v62 = vpop.f32.mrf.mxu0 }
 0x1cc   :  { %3814 = vst [vmem:[%s7991_s3 + $0x780] sm:$0xff] %v3493_v5  ;;  %v3494_v15 = vmax.f32 %v1893_v18, 0.0  ;;  %v1895_v61 = vadd.f32 %v1894_v14, %v1542_v46  ;;  %v1544_v9 = vadd.f32 %v1543_v62, %v6806_v30  ;;  %v1896_v6 = vpop.f32.mrf.mxu1  ;;  %v8458_v5 = vld [vmem:[#allocation52_spill] sm:$0xff]  ;;  %v6830_v46 = vpop.permute.xlu1 %1200  ;;  %v8460_v18 = vld [vmem:[#allocation53_spill] sm:$0xff] }
 0x1cd   :  { %v1547_v48 = vpop.f32.mrf.mxu0  ;;  %2172 = vmatmul.mubr.bf16.gmra.mxu0 %v8456_v4  ;;  %8459 = vst [vmem:[#allocation137_spill] sm:$0xff] %v6830_v46  ;;  %v6841_v30 = vpop.permute.xlu0 %1205 }
 0x1ce   :  { %3815 = vst [vmem:[%s7991_s3 + $0x788] sm:$0xff] %v3494_v15  ;;  %v3498_v31 = vmax.f32 %v1895_v61, 0.0  ;;  %v1897_v32 = vadd.f32 %v1896_v6, %v1544_v9  ;;  %v1900_v23 = vpop.f32.mrf.mxu1  ;;  %2525 = vmatmul.mubr.bf16.gmra.mxu1 %v8457_v10  ;;  %v1548_v50 = vadd.f32 %v1547_v48, %v6817_v19  ;;  %2181 = vmatprep.mubr.bf16.mxu0 %v8458_v5  ;;  %8461 = vst [vmem:[#allocation138_spill] sm:$0xff] %v6841_v30 }
 0x1cf   :  { %v1549_v14 = vpop.f32.mrf.mxu0  ;;  %2534 = vmatprep.mubr.bf16.mxu1 %v8460_v18 }
 0x1d0   :  { %3819 = vst [vmem:[%s7991_s3 + $0x7a8] sm:$0xff] %v3498_v31  ;;  %v3499_v62 = vmax.f32 %v1897_v32, 0.0  ;;  %v1901_v15 = vadd.f32 %v1900_v23, %v1548_v50  ;;  %v1550_v61 = vadd.f32 %v1549_v14, %v6817_v19  ;;  %v1902_v9 = vpop.f32.mrf.mxu1  ;;  %v8462_v19 = vld [vmem:[#allocation54_spill] sm:$0xff] }
 0x1d1   :  { %v1551_v6 = vpop.f32.mrf.mxu0 }
 0x1d2   :  { %3820 = vst [vmem:[%s7991_s3 + $0x7b0] sm:$0xff] %v3499_v62  ;;  %v3503_v48 = vmax.f32 %v1901_v15, 0.0  ;;  %v1903_v5 = vadd.f32 %v1902_v9, %v1550_v61  ;;  %v1552_v10 = vadd.f32 %v1551_v6, %v6830_v46  ;;  %v1904_v4 = vpop.f32.mrf.mxu1  ;;  %v8463_v9 = vld [vmem:[#allocation55_spill] sm:$0xff] }
 0x1d3   :  { %v1553_v18 = vpop.f32.mrf.mxu0 }
 0x1d4   :  { %3824 = vst [vmem:[%s7991_s3 + $0x7d0] sm:$0xff] %v3503_v48  ;;  %v3504_v31 = vmax.f32 %v1903_v5, 0.0  ;;  %v1905_v32 = vadd.f32 %v1904_v4, %v1552_v10  ;;  %v1554_v23 = vadd.f32 %v1553_v18, %v6830_v46  ;;  %v1906_v50 = vpop.f32.mrf.mxu1  ;;  %v8464_v48 = vld [vmem:[#allocation56_spill] sm:$0xff]  ;;  %v6854_v10 = vpop.permute.xlu1 %1210  ;;  %v8466_v5 = vld [vmem:[#allocation57_spill] sm:$0xff] }
 0x1d5   :  { %v1557_v14 = vpop.f32.mrf.mxu0  ;;  %2182 = vmatmul.mubr.bf16.gmra.mxu0 %v8462_v19  ;;  %8465 = vst [vmem:[#allocation139_spill] sm:$0xff] %v6854_v10  ;;  %v6865_v46 = vpop.permute.xlu0 %1215 }
 0x1d6   :  { %3825 = vst [vmem:[%s7991_s3 + $0x7d8] sm:$0xff] %v3504_v31  ;;  %v3508_v62 = vmax.f32 %v1905_v32, 0.0  ;;  %v1907_v15 = vadd.f32 %v1906_v50, %v1554_v23  ;;  %v1910_v61 = vpop.f32.mrf.mxu1  ;;  %2535 = vmatmul.mubr.bf16.gmra.mxu1 %v8463_v9  ;;  %v1558_v6 = vadd.f32 %v1557_v14, %v6841_v30  ;;  %2191 = vmatprep.mubr.bf16.mxu0 %v8464_v48  ;;  %8467 = vst [vmem:[#allocation140_spill] sm:$0xff] %v6865_v46 }
 0x1d7   :  { %v1559_v4 = vpop.f32.mrf.mxu0  ;;  %2544 = vmatprep.mubr.bf16.mxu1 %v8466_v5 }
 0x1d8   :  { %3829 = vst [vmem:[%s7991_s3 + $0x7f8] sm:$0xff] %v3508_v62  ;;  %v3509_v18 = vmax.f32 %v1907_v15, 0.0  ;;  %v1911_v31 = vadd.f32 %v1910_v61, %v1558_v6  ;;  %v1560_v32 = vadd.f32 %v1559_v4, %v6841_v30  ;;  %v1912_v23 = vpop.f32.mrf.mxu1  ;;  %v8468_v30 = vld [vmem:[#allocation58_spill] sm:$0xff] }
 0x1d9   :  { %v1561_v50 = vpop.f32.mrf.mxu0 }
 0x1da   :  { %3830 = vst [vmem:[%s7991_s3 + $0x800] sm:$0xff] %v3509_v18  ;;  %v3513_v14 = vmax.f32 %v1911_v31, 0.0  ;;  %v1913_v48 = vadd.f32 %v1912_v23, %v1560_v32  ;;  %v1562_v9 = vadd.f32 %v1561_v50, %v6854_v10  ;;  %v1914_v19 = vpop.f32.mrf.mxu1  ;;  %v8469_v23 = vld [vmem:[#allocation59_spill] sm:$0xff] }
 0x1db   :  { %v1563_v5 = vpop.f32.mrf.mxu0 }
 0x1dc   :  { %3834 = vst [vmem:[%s7991_s3 + $0x820] sm:$0xff] %v3513_v14  ;;  %v3514_v62 = vmax.f32 %v1913_v48, 0.0  ;;  %v1915_v15 = vadd.f32 %v1914_v19, %v1562_v9  ;;  %v1564_v61 = vadd.f32 %v1563_v5, %v6854_v10  ;;  %v1916_v6 = vpop.f32.mrf.mxu1  ;;  %v8470_v14 = vld [vmem:[#allocation60_spill] sm:$0xff]  ;;  %v6878_v9 = vpop.permute.xlu1 %1220  ;;  %v8472_v48 = vld [vmem:[#allocation61_spill] sm:$0xff] }
 0x1dd   :  { %v1567_v4 = vpop.f32.mrf.mxu0  ;;  %2192 = vmatmul.mubr.bf16.gmra.mxu0 %v8468_v30  ;;  %8471 = vst [vmem:[#allocation141_spill] sm:$0xff] %v6878_v9  ;;  %v6889_v10 = vpop.permute.xlu0 %1225 }
 0x1de   :  { %3835 = vst [vmem:[%s7991_s3 + $0x828] sm:$0xff] %v3514_v62  ;;  %v3518_v18 = vmax.f32 %v1915_v15, 0.0  ;;  %v1917_v31 = vadd.f32 %v1916_v6, %v1564_v61  ;;  %v1920_v32 = vpop.f32.mrf.mxu1  ;;  %2545 = vmatmul.mubr.bf16.gmra.mxu1 %v8469_v23  ;;  %v1568_v50 = vadd.f32 %v1567_v4, %v6865_v46  ;;  %2201 = vmatprep.mubr.bf16.mxu0 %v8470_v14  ;;  %8473 = vst [vmem:[#allocation142_spill] sm:$0xff] %v6889_v10 }
 0x1df   :  { %v1569_v19 = vpop.f32.mrf.mxu0  ;;  %2554 = vmatprep.mubr.bf16.mxu1 %v8472_v48 }
 0x1e0   :  { %3839 = vst [vmem:[%s7991_s3 + $0x848] sm:$0xff] %v3518_v18  ;;  %v3519_v5 = vmax.f32 %v1917_v31, 0.0  ;;  %v1921_v62 = vadd.f32 %v1920_v32, %v1568_v50  ;;  %v1570_v15 = vadd.f32 %v1569_v19, %v6865_v46  ;;  %v1922_v61 = vpop.f32.mrf.mxu1  ;;  %v8474_v46 = vld [vmem:[#allocation62_spill] sm:$0xff] }
 0x1e1   :  { %v1571_v6 = vpop.f32.mrf.mxu0 }
 0x1e2   :  { %3840 = vst [vmem:[%s7991_s3 + $0x850] sm:$0xff] %v3519_v5  ;;  %v3523_v4 = vmax.f32 %v1921_v62, 0.0  ;;  %v1923_v14 = vadd.f32 %v1922_v61, %v1570_v15  ;;  %v1572_v23 = vadd.f32 %v1571_v6, %v6878_v9  ;;  %v1924_v30 = vpop.f32.mrf.mxu1  ;;  %v8475_v61 = vld [vmem:[#allocation63_spill] sm:$0xff] }
 0x1e3   :  { %v1573_v48 = vpop.f32.mrf.mxu0 }
 0x1e4   :  { %3844 = vst [vmem:[%s7991_s3 + $0x870] sm:$0xff] %v3523_v4  ;;  %v3524_v18 = vmax.f32 %v1923_v14, 0.0  ;;  %v1925_v31 = vadd.f32 %v1924_v30, %v1572_v23  ;;  %v1574_v32 = vadd.f32 %v1573_v48, %v6878_v9  ;;  %v1926_v50 = vpop.f32.mrf.mxu1  ;;  %v8476_v4 = vld [vmem:[#allocation64_spill] sm:$0xff]  ;;  %v6902_v23 = vpop.permute.xlu1 %1230  ;;  %v8478_v14 = vld [vmem:[#allocation65_spill] sm:$0xff] }
 0x1e5   :  { %v1577_v19 = vpop.f32.mrf.mxu0  ;;  %2202 = vmatmul.mubr.bf16.gmra.mxu0 %v8474_v46  ;;  %8477 = vst [vmem:[#allocation143_spill] sm:$0xff] %v6902_v23  ;;  %v6913_v9 = vpop.permute.xlu0 %1235 }
 0x1e6   :  { %3845 = vst [vmem:[%s7991_s3 + $0x878] sm:$0xff] %v3524_v18  ;;  %v3528_v5 = vmax.f32 %v1925_v31, 0.0  ;;  %v1927_v62 = vadd.f32 %v1926_v50, %v1574_v32  ;;  %v1930_v15 = vpop.f32.mrf.mxu1  ;;  %2555 = vmatmul.mubr.bf16.gmra.mxu1 %v8475_v61  ;;  %v1578_v6 = vadd.f32 %v1577_v19, %v6889_v10  ;;  %2211 = vmatprep.mubr.bf16.mxu0 %v8476_v4  ;;  %8479 = vst [vmem:[#allocation144_spill] sm:$0xff] %v6913_v9 }
 0x1e7   :  { %v1579_v30 = vpop.f32.mrf.mxu0  ;;  %2564 = vmatprep.mubr.bf16.mxu1 %v8478_v14 }
 0x1e8   :  { %3849 = vst [vmem:[%s7991_s3 + $0x898] sm:$0xff] %v3528_v5  ;;  %v3529_v48 = vmax.f32 %v1927_v62, 0.0  ;;  %v1931_v18 = vadd.f32 %v1930_v15, %v1578_v6  ;;  %v1580_v31 = vadd.f32 %v1579_v30, %v6889_v10  ;;  %v1932_v32 = vpop.f32.mrf.mxu1  ;;  %v8480_v10 = vld [vmem:[#allocation66_spill] sm:$0xff] }
 0x1e9   :  { %v1581_v50 = vpop.f32.mrf.mxu0 }
 0x1ea   :  { %3850 = vst [vmem:[%s7991_s3 + $0x8a0] sm:$0xff] %v3529_v48  ;;  %v3533_v19 = vmax.f32 %v1931_v18, 0.0  ;;  %v1933_v4 = vadd.f32 %v1932_v32, %v1580_v31  ;;  %v1582_v61 = vadd.f32 %v1581_v50, %v6902_v23  ;;  %v1934_v46 = vpop.f32.mrf.mxu1  ;;  %v8481_v32 = vld [vmem:[#allocation67_spill] sm:$0xff] }
 0x1eb   :  { %v1583_v14 = vpop.f32.mrf.mxu0 }
 0x1ec   :  { %3854 = vst [vmem:[%s7991_s3 + $0x8c0] sm:$0xff] %v3533_v19  ;;  %v3534_v5 = vmax.f32 %v1933_v4, 0.0  ;;  %v1935_v62 = vadd.f32 %v1934_v46, %v1582_v61  ;;  %v1584_v15 = vadd.f32 %v1583_v14, %v6902_v23  ;;  %v1936_v6 = vpop.f32.mrf.mxu1  ;;  %v8482_v19 = vld [vmem:[#allocation68_spill] sm:$0xff]  ;;  %v6926_v61 = vpop.permute.xlu1 %1240  ;;  %v8484_v4 = vld [vmem:[#allocation69_spill] sm:$0xff] }
 0x1ed   :  { %v1587_v30 = vpop.f32.mrf.mxu0  ;;  %2212 = vmatmul.mubr.bf16.gmra.mxu0 %v8480_v10  ;;  %8483 = vst [vmem:[#allocation145_spill] sm:$0xff] %v6926_v61  ;;  %v6937_v23 = vpop.permute.xlu0 %1245 }
 0x1ee   :  { %3855 = vst [vmem:[%s7991_s3 + $0x8c8] sm:$0xff] %v3534_v5  ;;  %v3538_v48 = vmax.f32 %v1935_v62, 0.0  ;;  %v1937_v18 = vadd.f32 %v1936_v6, %v1584_v15  ;;  %v1940_v31 = vpop.f32.mrf.mxu1  ;;  %2565 = vmatmul.mubr.bf16.gmra.mxu1 %v8481_v32  ;;  %v1588_v50 = vadd.f32 %v1587_v30, %v6913_v9  ;;  %2221 = vmatprep.mubr.bf16.mxu0 %v8482_v19  ;;  %8485 = vst [vmem:[#allocation146_spill] sm:$0xff] %v6937_v23 }
 0x1ef   :  { %v1589_v46 = vpop.f32.mrf.mxu0  ;;  %2574 = vmatprep.mubr.bf16.mxu1 %v8484_v4 }
 0x1f0   :  { %3859 = vst [vmem:[%s7991_s3 + $0x8e8] sm:$0xff] %v3538_v48  ;;  %v3539_v14 = vmax.f32 %v1937_v18, 0.0  ;;  %v1941_v5 = vadd.f32 %v1940_v31, %v1588_v50  ;;  %v1590_v62 = vadd.f32 %v1589_v46, %v6913_v9  ;;  %v1942_v15 = vpop.f32.mrf.mxu1  ;;  %v8486_v9 = vld [vmem:[#allocation70_spill] sm:$0xff] }
 0x1f1   :  { %v1591_v6 = vpop.f32.mrf.mxu0 }
 0x1f2   :  { %3860 = vst [vmem:[%s7991_s3 + $0x8f0] sm:$0xff] %v3539_v14  ;;  %v3543_v30 = vmax.f32 %v1941_v5, 0.0  ;;  %v1943_v19 = vadd.f32 %v1942_v15, %v1590_v62  ;;  %v1592_v32 = vadd.f32 %v1591_v6, %v6926_v61  ;;  %v1944_v10 = vpop.f32.mrf.mxu1  ;;  %v8487_v15 = vld [vmem:[#allocation71_spill] sm:$0xff] }
 0x1f3   :  { %v1593_v4 = vpop.f32.mrf.mxu0 }
 0x1f4   :  { %3864 = vst [vmem:[%s7991_s3 + $0x910] sm:$0xff] %v3543_v30  ;;  %v3544_v48 = vmax.f32 %v1943_v19, 0.0  ;;  %v1945_v18 = vadd.f32 %v1944_v10, %v1592_v32  ;;  %v1594_v31 = vadd.f32 %v1593_v4, %v6926_v61  ;;  %v1946_v50 = vpop.f32.mrf.mxu1  ;;  %v8488_v30 = vld [vmem:[#allocation72_spill] sm:$0xff]  ;;  %v6950_v32 = vpop.permute.xlu1 %1250  ;;  %v8490_v19 = vld [vmem:[#allocation73_spill] sm:$0xff] }
 0x1f5   :  { %v1597_v46 = vpop.f32.mrf.mxu0  ;;  %2222 = vmatmul.mubr.bf16.gmra.mxu0 %v8486_v9  ;;  %8489 = vst [vmem:[#allocation147_spill] sm:$0xff] %v6950_v32  ;;  %v6961_v61 = vpop.permute.xlu0 %1255 }
 0x1f6   :  { %3865 = vst [vmem:[%s7991_s3 + $0x918] sm:$0xff] %v3544_v48  ;;  %v3548_v14 = vmax.f32 %v1945_v18, 0.0  ;;  %v1947_v5 = vadd.f32 %v1946_v50, %v1594_v31  ;;  %v1950_v62 = vpop.f32.mrf.mxu1  ;;  %2575 = vmatmul.mubr.bf16.gmra.mxu1 %v8487_v15  ;;  %v1598_v6 = vadd.f32 %v1597_v46, %v6937_v23  ;;  %2231 = vmatprep.mubr.bf16.mxu0 %v8488_v30  ;;  %8491 = vst [vmem:[#allocation148_spill] sm:$0xff] %v6961_v61 }
 0x1f7   :  { %v1599_v10 = vpop.f32.mrf.mxu0  ;;  %2584 = vmatprep.mubr.bf16.mxu1 %v8490_v19 }
 0x1f8   :  { %3869 = vst [vmem:[%s7991_s3 + $0x938] sm:$0xff] %v3548_v14  ;;  %v3549_v4 = vmax.f32 %v1947_v5, 0.0  ;;  %v1951_v48 = vadd.f32 %v1950_v62, %v1598_v6  ;;  %v1600_v18 = vadd.f32 %v1599_v10, %v6937_v23  ;;  %v1952_v31 = vpop.f32.mrf.mxu1  ;;  %v8492_v23 = vld [vmem:[#allocation74_spill] sm:$0xff] }
 0x1f9   :  { %v1601_v50 = vpop.f32.mrf.mxu0 }
 0x1fa   :  { %3870 = vst [vmem:[%s7991_s3 + $0x940] sm:$0xff] %v3549_v4  ;;  %v3553_v46 = vmax.f32 %v1951_v48, 0.0  ;;  %v1953_v30 = vadd.f32 %v1952_v31, %v1600_v18  ;;  %v1602_v15 = vadd.f32 %v1601_v50, %v6950_v32  ;;  %v1954_v9 = vpop.f32.mrf.mxu1  ;;  %v8493_v31 = vld [vmem:[#allocation75_spill] sm:$0xff] }
 0x1fb   :  { %v1603_v19 = vpop.f32.mrf.mxu0 }
 0x1fc   :  { %3874 = vst [vmem:[%s7991_s3 + $0x960] sm:$0xff] %v3553_v46  ;;  %v3554_v14 = vmax.f32 %v1953_v30, 0.0  ;;  %v1955_v5 = vadd.f32 %v1954_v9, %v1602_v15  ;;  %v1604_v62 = vadd.f32 %v1603_v19, %v6950_v32  ;;  %v1956_v6 = vpop.f32.mrf.mxu1  ;;  %v8494_v46 = vld [vmem:[#allocation76_spill] sm:$0xff]  ;;  %v6974_v15 = vpop.permute.xlu1 %1260  ;;  %v8495_v30 = vld [vmem:[#allocation77_spill] sm:$0xff] }
 0x1fd   :  { %v1607_v10 = vpop.f32.mrf.mxu0  ;;  %2232 = vmatmul.mubr.bf16.gmra.mxu0 %v8492_v23  ;;  %v8498_v32 = vld [vmem:[#allocation80_spill] sm:$0xff] }
 0x1fe   :  { %3875 = vst [vmem:[%s7991_s3 + $0x968] sm:$0xff] %v3554_v14  ;;  %v3558_v4 = vmax.f32 %v1955_v5, 0.0  ;;  %v1957_v48 = vadd.f32 %v1956_v6, %v1604_v62  ;;  %v1960_v18 = vpop.f32.mrf.mxu1  ;;  %2585 = vmatmul.mubr.bf16.gmra.mxu1 %v8493_v31  ;;  %v1608_v50 = vadd.f32 %v1607_v10, %v6961_v61  ;;  %2241 = vmatprep.mubr.bf16.mxu0 %v8494_v46 }
 0x1ff   :  { %v1609_v9 = vpop.f32.mrf.mxu0  ;;  %2594 = vmatprep.mubr.bf16.mxu1 %v8495_v30 }
 0x200   :  { %3879 = vst [vmem:[%s7991_s3 + $0x988] sm:$0xff] %v3558_v4  ;;  %v3559_v19 = vmax.f32 %v1957_v48, 0.0  ;;  %v1961_v14 = vadd.f32 %v1960_v18, %v1608_v50  ;;  %v1610_v5 = vadd.f32 %v1609_v9, %v6961_v61  ;;  %v1962_v62 = vpop.f32.mrf.mxu1  ;;  %v8496_v61 = vld [vmem:[#allocation79_spill] sm:$0xff] }
 0x201   :  { %v1611_v6 = vpop.f32.mrf.mxu0 }
 0x202   :  { %3880 = vst [vmem:[%s7991_s3 + $0x990] sm:$0xff] %v3559_v19  ;;  %v3563_v10 = vmax.f32 %v1961_v14, 0.0  ;;  %v1963_v46 = vadd.f32 %v1962_v62, %v1610_v5  ;;  %v1612_v31 = vadd.f32 %v1611_v6, %v6974_v15  ;;  %v1964_v23 = vpop.f32.mrf.mxu1  ;;  %v8497_v5 = vld [vmem:[#allocation78_spill] sm:$0xff] }
 0x203   :  { %v1613_v30 = vpop.f32.mrf.mxu0 }
 0x204   :  { %3884 = vst [vmem:[%s7991_s3 + $0x9b0] sm:$0xff] %v3563_v10  ;;  %v3564_v4 = vmax.f32 %v1963_v46, 0.0  ;;  %v1965_v48 = vadd.f32 %v1964_v23, %v1612_v31  ;;  %v1614_v18 = vadd.f32 %v1613_v30, %v6974_v15  ;;  %v1966_v50 = vpop.f32.mrf.mxu1  ;;  %v8499_v10 = vld [vmem:[#allocation81_spill] sm:$0xff]  ;;  %v8500_v31 = vld [vmem:[#allocation82_spill] sm:$0xff] }
 0x205   :  { %v2003_v9 = vpop.f32.mrf.mxu0  ;;  %2242 = vmatmul.mubr.bf16.gmra.mxu0 %v8496_v61  ;;  %v8503_v61 = vld [vmem:[#allocation86_spill] sm:$0xff] }
 0x206   :  { %3885 = vst [vmem:[%s7991_s3 + $0x9b8] sm:$0xff] %v3564_v4  ;;  %v3568_v19 = vmax.f32 %v1965_v48, 0.0  ;;  %v1967_v14 = vadd.f32 %v1966_v50, %v1614_v18  ;;  %v2004_v62 = vadd.f32 %v2003_v9, %v8497_v5  ;;  %v2356_v6 = vpop.f32.mrf.mxu1  ;;  %2595 = vmatmul.mubr.bf16.gmra.mxu1 %v8498_v32  ;;  %2251 = vmatprep.mubr.bf16.mxu0 %v8499_v10 }
 0x207   :  { %v2005_v23 = vpop.f32.mrf.mxu0  ;;  %2604 = vmatprep.mubr.bf16.mxu1 %v8500_v31 }
 0x208   :  { %3889 = vst [vmem:[%s7991_s3 + $0x9d8] sm:$0xff] %v3568_v19  ;;  %v3569_v46 = vmax.f32 %v1967_v14, 0.0  ;;  %v2357_v30 = vadd.f32 %v2356_v6, %v2004_v62  ;;  %v2006_v4 = vadd.f32 %v2005_v23, %v8497_v5  ;;  %v2358_v48 = vpop.f32.mrf.mxu1  ;;  %v8501_v5 = vld [vmem:[#allocation85_spill] sm:$0xff] }
 0x209   :  { %v2007_v18 = vpop.f32.mrf.mxu0 }
 0x20a   :  { %3890 = vst [vmem:[%s7991_s3 + $0x9e0] sm:$0xff] %v3569_v46  ;;  %v3255_v50 = vmax.f32 %v2357_v30, 0.0  ;;  %v2359_v9 = vadd.f32 %v2358_v48, %v2006_v4  ;;  %v2008_v10 = vadd.f32 %v2007_v18, %v5818_v55  ;;  %v2360_v32 = vpop.f32.mrf.mxu1  ;;  %v8502_v4 = vld [vmem:[#allocation84_spill] sm:$0xff] }
 0x20b   :  { %v2009_v31 = vpop.f32.mrf.mxu0 }
 0x20c   :  { %3575 = vst [vmem:[%s7991_s3 + $0x10] sm:$0xff] %v3255_v50  ;;  %v3256_v19 = vmax.f32 %v2359_v9, 0.0  ;;  %v2361_v14 = vadd.f32 %v2360_v32, %v2008_v10  ;;  %v2010_v62 = vadd.f32 %v2009_v31, %v5818_v55  ;;  %v2362_v6 = vpop.f32.mrf.mxu1  ;;  %v8504_v50 = vld [vmem:[#allocation87_spill] sm:$0xff]  ;;  %v8505_v10 = vld [vmem:[#allocation88_spill] sm:$0xff] }
 0x20d   :  { %v2013_v23 = vpop.f32.mrf.mxu0  ;;  %2252 = vmatmul.mubr.bf16.gmra.mxu0 %v8501_v5  ;;  %v8509_v55 = vld [vmem:[#allocation91_spill] sm:$0xff] }
 0x20e   :  { %3576 = vst [vmem:[%s7991_s3 + $0x18] sm:$0xff] %v3256_v19  ;;  %v3260_v46 = vmax.f32 %v2361_v14, 0.0  ;;  %v2363_v30 = vadd.f32 %v2362_v6, %v2010_v62  ;;  %v2014_v48 = vadd.f32 %v2013_v23, %v8502_v4  ;;  %v2366_v18 = vpop.f32.mrf.mxu1  ;;  %2605 = vmatmul.mubr.bf16.gmra.mxu1 %v8503_v61  ;;  %2261 = vmatprep.mubr.bf16.mxu0 %v8504_v50  ;;  %v8506_v50 = vld [vmem:[#allocation89_spill] sm:$0xff] }
 0x20f   :  { %v2015_v32 = vpop.f32.mrf.mxu0  ;;  %2614 = vmatprep.mubr.bf16.mxu1 %v8505_v10 }
 0x210   :  { %3581 = vst [vmem:[%s7991_s3 + $0x38] sm:$0xff] %v3260_v46  ;;  %v3261_v31 = vmax.f32 %v2363_v30, 0.0  ;;  %v2367_v9 = vadd.f32 %v2366_v18, %v2014_v48  ;;  %v2016_v19 = vadd.f32 %v2015_v32, %v8502_v4  ;;  %v2368_v14 = vpop.f32.mrf.mxu1  ;;  %v8507_v4 = vld [vmem:[#allocation90_spill] sm:$0xff] }
 0x211   :  { %v2017_v62 = vpop.f32.mrf.mxu0 }
 0x212   :  { %3582 = vst [vmem:[%s7991_s3 + $0x40] sm:$0xff] %v3261_v31  ;;  %v3265_v6 = vmax.f32 %v2367_v9, 0.0  ;;  %v2369_v23 = vadd.f32 %v2368_v14, %v2016_v19  ;;  %v2018_v61 = vadd.f32 %v2017_v62, %v8506_v50  ;;  %v2370_v5 = vpop.f32.mrf.mxu1  ;;  %v8508_v19 = vld [vmem:[#allocation93_spill] sm:$0xff] }
 0x213   :  { %v2019_v10 = vpop.f32.mrf.mxu0 }
 0x214   :  { %3586 = vst [vmem:[%s7991_s3 + $0x60] sm:$0xff] %v3265_v6  ;;  %v3266_v46 = vmax.f32 %v2369_v23, 0.0  ;;  %v2371_v30 = vadd.f32 %v2370_v5, %v2018_v61  ;;  %v2020_v48 = vadd.f32 %v2019_v10, %v8506_v50  ;;  %v2372_v18 = vpop.f32.mrf.mxu1  ;;  %v8510_v6 = vld [vmem:[#allocation92_spill] sm:$0xff]  ;;  %v8511_v5 = vld [vmem:[#allocation94_spill] sm:$0xff]  ;;  %v8515_v50 = vld [vmem:[#allocation97_spill] sm:$0xff] }
 0x215   :  { %v2023_v32 = vpop.f32.mrf.mxu0  ;;  %2262 = vmatmul.mubr.bf16.gmra.mxu0 %v8507_v4 }
 0x216   :  { %3587 = vst [vmem:[%s7991_s3 + $0x68] sm:$0xff] %v3266_v46  ;;  %v3270_v31 = vmax.f32 %v2371_v30, 0.0  ;;  %v2373_v9 = vadd.f32 %v2372_v18, %v2020_v48  ;;  %v2024_v14 = vadd.f32 %v2023_v32, %v8508_v19  ;;  %v2376_v62 = vpop.f32.mrf.mxu1  ;;  %2615 = vmatmul.mubr.bf16.gmra.mxu1 %v8509_v55  ;;  %2271 = vmatprep.mubr.bf16.mxu0 %v8510_v6  ;;  %v8512_v6 = vld [vmem:[#allocation95_spill] sm:$0xff] }
 0x217   :  { %v2025_v61 = vpop.f32.mrf.mxu0  ;;  %2624 = vmatprep.mubr.bf16.mxu1 %v8511_v5 }
 0x218   :  { %3591 = vst [vmem:[%s7991_s3 + $0x88] sm:$0xff] %v3270_v31  ;;  %v3271_v10 = vmax.f32 %v2373_v9, 0.0  ;;  %v2377_v23 = vadd.f32 %v2376_v62, %v2024_v14  ;;  %v2026_v46 = vadd.f32 %v2025_v61, %v8508_v19  ;;  %v2378_v30 = vpop.f32.mrf.mxu1  ;;  %v8513_v19 = vld [vmem:[#allocation96_spill] sm:$0xff] }
 0x219   :  { %v2027_v48 = vpop.f32.mrf.mxu0 }
 0x21a   :  { %3592 = vst [vmem:[%s7991_s3 + $0x90] sm:$0xff] %v3271_v10  ;;  %v3275_v18 = vmax.f32 %v2377_v23, 0.0  ;;  %v2379_v32 = vadd.f32 %v2378_v30, %v2026_v46  ;;  %v2028_v55 = vadd.f32 %v2027_v48, %v8512_v6  ;;  %v2380_v4 = vpop.f32.mrf.mxu1  ;;  %v8514_v46 = vld [vmem:[#allocation99_spill] sm:$0xff] }
 0x21b   :  { %v2029_v5 = vpop.f32.mrf.mxu0 }
 0x21c   :  { %3596 = vst [vmem:[%s7991_s3 + $0xb0] sm:$0xff] %v3275_v18  ;;  %v3276_v31 = vmax.f32 %v2379_v32, 0.0  ;;  %v2381_v9 = vadd.f32 %v2380_v4, %v2028_v55  ;;  %v2030_v14 = vadd.f32 %v2029_v5, %v8512_v6  ;;  %v2382_v62 = vpop.f32.mrf.mxu1  ;;  %v8516_v18 = vld [vmem:[#allocation98_spill] sm:$0xff]  ;;  %v8517_v4 = vld [vmem:[#allocation100_spill] sm:$0xff]  ;;  %v8521_v6 = vld [vmem:[#allocation103_spill] sm:$0xff] }
 0x21d   :  { %v2033_v61 = vpop.f32.mrf.mxu0  ;;  %2272 = vmatmul.mubr.bf16.gmra.mxu0 %v8513_v19 }
 0x21e   :  { %3597 = vst [vmem:[%s7991_s3 + $0xb8] sm:$0xff] %v3276_v31  ;;  %v3280_v10 = vmax.f32 %v2381_v9, 0.0  ;;  %v2383_v23 = vadd.f32 %v2382_v62, %v2030_v14  ;;  %v2034_v30 = vadd.f32 %v2033_v61, %v8514_v46  ;;  %v2386_v48 = vpop.f32.mrf.mxu1  ;;  %2625 = vmatmul.mubr.bf16.gmra.mxu1 %v8515_v50  ;;  %2281 = vmatprep.mubr.bf16.mxu0 %v8516_v18  ;;  %v8518_v18 = vld [vmem:[#allocation101_spill] sm:$0xff] }
 0x21f   :  { %v2035_v55 = vpop.f32.mrf.mxu0  ;;  %2634 = vmatprep.mubr.bf16.mxu1 %v8517_v4 }
 0x220   :  { %3601 = vst [vmem:[%s7991_s3 + $0xd8] sm:$0xff] %v3280_v10  ;;  %v3281_v5 = vmax.f32 %v2383_v23, 0.0  ;;  %v2387_v32 = vadd.f32 %v2386_v48, %v2034_v30  ;;  %v2036_v31 = vadd.f32 %v2035_v55, %v8514_v46  ;;  %v2388_v9 = vpop.f32.mrf.mxu1  ;;  %v8519_v46 = vld [vmem:[#allocation102_spill] sm:$0xff] }
 0x221   :  { %v2037_v14 = vpop.f32.mrf.mxu0 }
 0x222   :  { %3602 = vst [vmem:[%s7991_s3 + $0xe0] sm:$0xff] %v3281_v5  ;;  %v3285_v62 = vmax.f32 %v2387_v32, 0.0  ;;  %v2389_v61 = vadd.f32 %v2388_v9, %v2036_v31  ;;  %v2038_v50 = vadd.f32 %v2037_v14, %v8518_v18  ;;  %v2390_v19 = vpop.f32.mrf.mxu1  ;;  %v8520_v31 = vld [vmem:[#allocation105_spill] sm:$0xff] }
 0x223   :  { %v2039_v4 = vpop.f32.mrf.mxu0 }
 0x224   :  { %3606 = vst [vmem:[%s7991_s3 + $0x100] sm:$0xff] %v3285_v62  ;;  %v3286_v10 = vmax.f32 %v2389_v61, 0.0  ;;  %v2391_v23 = vadd.f32 %v2390_v19, %v2038_v50  ;;  %v2040_v30 = vadd.f32 %v2039_v4, %v8518_v18  ;;  %v2392_v48 = vpop.f32.mrf.mxu1  ;;  %v8522_v62 = vld [vmem:[#allocation104_spill] sm:$0xff]  ;;  %v8523_v19 = vld [vmem:[#allocation106_spill] sm:$0xff]  ;;  %v8527_v18 = vld [vmem:[#allocation109_spill] sm:$0xff] }
 0x225   :  { %v2043_v55 = vpop.f32.mrf.mxu0  ;;  %2282 = vmatmul.mubr.bf16.gmra.mxu0 %v8519_v46 }
 0x226   :  { %3607 = vst [vmem:[%s7991_s3 + $0x108] sm:$0xff] %v3286_v10  ;;  %v3290_v5 = vmax.f32 %v2391_v23, 0.0  ;;  %v2393_v32 = vadd.f32 %v2392_v48, %v2040_v30  ;;  %v2044_v9 = vadd.f32 %v2043_v55, %v8520_v31  ;;  %v2396_v14 = vpop.f32.mrf.mxu1  ;;  %2635 = vmatmul.mubr.bf16.gmra.mxu1 %v8521_v6  ;;  %2291 = vmatprep.mubr.bf16.mxu0 %v8522_v62  ;;  %v8524_v62 = vld [vmem:[#allocation107_spill] sm:$0xff] }
 0x227   :  { %v2045_v50 = vpop.f32.mrf.mxu0  ;;  %2644 = vmatprep.mubr.bf16.mxu1 %v8523_v19 }
 0x228   :  { %3611 = vst [vmem:[%s7991_s3 + $0x128] sm:$0xff] %v3290_v5  ;;  %v3291_v4 = vmax.f32 %v2393_v32, 0.0  ;;  %v2397_v61 = vadd.f32 %v2396_v14, %v2044_v9  ;;  %v2046_v10 = vadd.f32 %v2045_v50, %v8520_v31  ;;  %v2398_v23 = vpop.f32.mrf.mxu1  ;;  %v8525_v31 = vld [vmem:[#allocation108_spill] sm:$0xff] }
 0x229   :  { %v2047_v30 = vpop.f32.mrf.mxu0 }
 0x22a   :  { %3612 = vst [vmem:[%s7991_s3 + $0x130] sm:$0xff] %v3291_v4  ;;  %v3295_v48 = vmax.f32 %v2397_v61, 0.0  ;;  %v2399_v55 = vadd.f32 %v2398_v23, %v2046_v10  ;;  %v2048_v6 = vadd.f32 %v2047_v30, %v8524_v62  ;;  %v2400_v46 = vpop.f32.mrf.mxu1  ;;  %v8526_v10 = vld [vmem:[#allocation111_spill] sm:$0xff] }
 0x22b   :  { %v2049_v19 = vpop.f32.mrf.mxu0 }
 0x22c   :  { %3616 = vst [vmem:[%s7991_s3 + $0x150] sm:$0xff] %v3295_v48  ;;  %v3296_v5 = vmax.f32 %v2399_v55, 0.0  ;;  %v2401_v32 = vadd.f32 %v2400_v46, %v2048_v6  ;;  %v2050_v9 = vadd.f32 %v2049_v19, %v8524_v62  ;;  %v2402_v14 = vpop.f32.mrf.mxu1  ;;  %v8528_v48 = vld [vmem:[#allocation110_spill] sm:$0xff]  ;;  %v8529_v46 = vld [vmem:[#allocation112_spill] sm:$0xff] }
 0x22d   :  { %v2053_v50 = vpop.f32.mrf.mxu0  ;;  %2292 = vmatmul.mubr.bf16.gmra.mxu0 %v8525_v31 }
 0x22e   :  { %3617 = vst [vmem:[%s7991_s3 + $0x158] sm:$0xff] %v3296_v5  ;;  %v3300_v4 = vmax.f32 %v2401_v32, 0.0  ;;  %v2403_v61 = vadd.f32 %v2402_v14, %v2050_v9  ;;  %v2054_v23 = vadd.f32 %v2053_v50, %v8526_v10  ;;  %v2406_v30 = vpop.f32.mrf.mxu1  ;;  %2645 = vmatmul.mubr.bf16.gmra.mxu1 %v8527_v18  ;;  %2301 = vmatprep.mubr.bf16.mxu0 %v8528_v48 }
 0x22f   :  { %v2055_v6 = vpop.f32.mrf.mxu0  ;;  %2654 = vmatprep.mubr.bf16.mxu1 %v8529_v46 }
 0x230   :  { %3621 = vst [vmem:[%s7991_s3 + $0x178] sm:$0xff] %v3300_v4  ;;  %v3301_v19 = vmax.f32 %v2403_v61, 0.0  ;;  %v2407_v55 = vadd.f32 %v2406_v30, %v2054_v23  ;;  %v2056_v5 = vadd.f32 %v2055_v6, %v8526_v10  ;;  %v2408_v32 = vpop.f32.mrf.mxu1 }
 0x231   :  { %v2057_v9 = vpop.f32.mrf.mxu0 }
 0x232   :  { %3622 = vst [vmem:[%s7991_s3 + $0x180] sm:$0xff] %v3301_v19  ;;  %v3305_v14 = vmax.f32 %v2407_v55, 0.0  ;;  %v2409_v50 = vadd.f32 %v2408_v32, %v2056_v5  ;;  %v2058_v48 = vadd.f32 %v2057_v9, %v6092_v53  ;;  %v2410_v18 = vpop.f32.mrf.mxu1  ;;  %v8530_v9 = vld [vmem:[#allocation113_spill] sm:$0xff] }
 0x233   :  { %v2059_v46 = vpop.f32.mrf.mxu0 }
 0x234   :  { %3626 = vst [vmem:[%s7991_s3 + $0x1a0] sm:$0xff] %v3305_v14  ;;  %v3306_v4 = vmax.f32 %v2409_v50, 0.0  ;;  %v2411_v61 = vadd.f32 %v2410_v18, %v2058_v48  ;;  %v2060_v23 = vadd.f32 %v2059_v46, %v6092_v53  ;;  %v2412_v30 = vpop.f32.mrf.mxu1  ;;  %v8531_v14 = vld [vmem:[#allocation114_spill] sm:$0xff]  ;;  %v8532_v48 = vld [vmem:[#allocation115_spill] sm:$0xff] }
 0x235   :  { %v2063_v6 = vpop.f32.mrf.mxu0  ;;  %2302 = vmatmul.mubr.bf16.gmra.mxu0 %v6111_v51 }
 0x236   :  { %3627 = vst [vmem:[%s7991_s3 + $0x1a8] sm:$0xff] %v3306_v4  ;;  %v3310_v19 = vmax.f32 %v2411_v61, 0.0  ;;  %v2413_v55 = vadd.f32 %v2412_v30, %v2060_v23  ;;  %v2064_v5 = vadd.f32 %v2063_v6, %v6121_v3  ;;  %v2416_v32 = vpop.f32.mrf.mxu1  ;;  %2655 = vmatmul.mubr.bf16.gmra.mxu1 %v8530_v9  ;;  %2311 = vmatprep.mubr.bf16.mxu0 %v8531_v14 }
 0x237   :  { %v2065_v18 = vpop.f32.mrf.mxu0  ;;  %2664 = vmatprep.mubr.bf16.mxu1 %v8532_v48 }
 0x238   :  { %3631 = vst [vmem:[%s7991_s3 + $0x1c8] sm:$0xff] %v3310_v19  ;;  %v3311_v46 = vmax.f32 %v2413_v55, 0.0  ;;  %v2417_v50 = vadd.f32 %v2416_v32, %v2064_v5  ;;  %v2066_v4 = vadd.f32 %v2065_v18, %v6121_v3  ;;  %v2418_v61 = vpop.f32.mrf.mxu1 }
 0x239   :  { %v2067_v23 = vpop.f32.mrf.mxu0 }
 0x23a   :  { %3632 = vst [vmem:[%s7991_s3 + $0x1d0] sm:$0xff] %v3311_v46  ;;  %v3315_v30 = vmax.f32 %v2417_v50, 0.0  ;;  %v2419_v6 = vadd.f32 %v2418_v61, %v2066_v4  ;;  %v2068_v14 = vadd.f32 %v2067_v23, %v6142_v2  ;;  %v2420_v9 = vpop.f32.mrf.mxu1  ;;  %v8533_v23 = vld [vmem:[#allocation116_spill] sm:$0xff] }
 0x23b   :  { %v2069_v48 = vpop.f32.mrf.mxu0 }
 0x23c   :  { %3636 = vst [vmem:[%s7991_s3 + $0x1f0] sm:$0xff] %v3315_v30  ;;  %v3316_v19 = vmax.f32 %v2419_v6, 0.0  ;;  %v2421_v55 = vadd.f32 %v2420_v9, %v2068_v14  ;;  %v2070_v5 = vadd.f32 %v2069_v48, %v6142_v2  ;;  %v2422_v32 = vpop.f32.mrf.mxu1  ;;  %v8534_v30 = vld [vmem:[#allocation2_spill] sm:$0xff]  ;;  %v8535_v14 = vld [vmem:[#allocation3_spill] sm:$0xff] }
 0x23d   :  { %v2073_v18 = vpop.f32.mrf.mxu0  ;;  %2312 = vmatmul.mubr.bf16.gmra.mxu0 %v6155_v34 }
 0x23e   :  { %3637 = vst [vmem:[%s7991_s3 + $0x1f8] sm:$0xff] %v3316_v19  ;;  %v3320_v46 = vmax.f32 %v2421_v55, 0.0  ;;  %v2423_v50 = vadd.f32 %v2422_v32, %v2070_v5  ;;  %v2074_v4 = vadd.f32 %v2073_v18, %v6163_v20  ;;  %v2426_v61 = vpop.f32.mrf.mxu1  ;;  %2665 = vmatmul.mubr.bf16.gmra.mxu1 %v8533_v23  ;;  %2707 = vmatprep.mubr.bf16.mxu0 %v8534_v30 }
 0x23f   :  { %v2075_v9 = vpop.f32.mrf.mxu0  ;;  %2996 = vmatprep.mubr.bf16.mxu1 %v8535_v14 }
 0x240   :  { %3641 = vst [vmem:[%s7991_s3 + $0x218] sm:$0xff] %v3320_v46  ;;  %v3321_v48 = vmax.f32 %v2423_v50, 0.0  ;;  %v2427_v6 = vadd.f32 %v2426_v61, %v2074_v4  ;;  %v2076_v19 = vadd.f32 %v2075_v9, %v6163_v20  ;;  %v2428_v55 = vpop.f32.mrf.mxu1  ;;  %v8536_v20 = vld [vmem:[#allocation4_spill] sm:$0xff] }
 0x241   :  { %v2077_v5 = vpop.f32.mrf.mxu0 }
 0x242   :  { %3642 = vst [vmem:[%s7991_s3 + $0x220] sm:$0xff] %v3321_v48  ;;  %v3325_v32 = vmax.f32 %v2427_v6, 0.0  ;;  %v2429_v18 = vadd.f32 %v2428_v55, %v2076_v19  ;;  %v2078_v30 = vadd.f32 %v2077_v5, %v6176_v47  ;;  %v2430_v23 = vpop.f32.mrf.mxu1  ;;  %v8537_v5 = vld [vmem:[#allocation5_spill] sm:$0xff] }
 0x243   :  { %v2079_v14 = vpop.f32.mrf.mxu0 }
 0x244   :  { %3646 = vst [vmem:[%s7991_s3 + $0x240] sm:$0xff] %v3325_v32  ;;  %v3326_v46 = vmax.f32 %v2429_v18, 0.0  ;;  %v2431_v50 = vadd.f32 %v2430_v23, %v2078_v30  ;;  %v2080_v4 = vadd.f32 %v2079_v14, %v6176_v47  ;;  %v2432_v61 = vpop.f32.mrf.mxu1  ;;  %v8538_v32 = vld [vmem:[#allocation6_spill] sm:$0xff] }
 0x245   :  { %v2083_v9 = vpop.f32.mrf.mxu0  ;;  %2708 = vmatmul.mubr.bf16.vlgmr.msra.gmra.mxu0 %v8536_v20 }
 0x246   :  { %3647 = vst [vmem:[%s7991_s3 + $0x248] sm:$0xff] %v3326_v46  ;;  %v3330_v48 = vmax.f32 %v2431_v50, 0.0  ;;  %v2433_v6 = vadd.f32 %v2432_v61, %v2080_v4  ;;  %v2084_v19 = vadd.f32 %v2083_v9, %v6199_v58  ;;  %v2436_v55 = vpop.f32.mrf.mxu1  ;;  %2997 = vmatmul.mubr.bf16.vlgmr.msra.gmra.mxu1 %v4382_v33  ;;  %2715 = vmatprep.mubr.bf16.mxu0 %v8537_v5 }
 0x247   :  { %v2085_v23 = vpop.f32.mrf.mxu0  ;;  %3004 = vmatprep.mubr.bf16.mxu1 %v8538_v32 }
 0x248   :  { %3651 = vst [vmem:[%s7991_s3 + $0x268] sm:$0xff] %v3330_v48  ;;  %v3331_v20 = vmax.f32 %v2433_v6, 0.0  ;;  %v2437_v18 = vadd.f32 %v2436_v55, %v2084_v19  ;;  %v2086_v30 = vadd.f32 %v2085_v23, %v6199_v58  ;;  %v2438_v14 = vpop.f32.mrf.mxu1 }
 0x249   :  { %v2087_v46 = vpop.f32.mrf.mxu0 }
 0x24a   :  { %3652 = vst [vmem:[%s7991_s3 + $0x270] sm:$0xff] %v3331_v20  ;;  %v3335_v33 = vmax.f32 %v2437_v18, 0.0  ;;  %v2439_v50 = vadd.f32 %v2438_v14, %v2086_v30  ;;  %v2088_v4 = vadd.f32 %v2087_v46, %v6223_v21  ;;  %v2440_v61 = vpop.f32.mrf.mxu1  ;;  %v8539_v20 = vld [vmem:[#allocation118_spill] sm:$0xff]  ;;  %v8540_v14 = vld [vmem:[#allocation7_spill] sm:$0xff]  ;;  %v8541_v46 = vld [vmem:[#allocation8_spill] sm:$0xff] }
 0x24b   :  { %v2089_v9 = vpop.f32.mrf.mxu0 }
 0x24c   :  { %3656 = vst [vmem:[%s7991_s3 + $0x290] sm:$0xff] %v3335_v33  ;;  %v3336_v48 = vmax.f32 %v2439_v50, 0.0  ;;  %v2441_v6 = vadd.f32 %v2440_v61, %v2088_v4  ;;  %v2090_v19 = vadd.f32 %v2089_v9, %v6223_v21  ;;  %v2442_v55 = vpop.f32.mrf.mxu1  ;;  %v8542_v50 = vld [vmem:[#allocation9_spill] sm:$0xff] }
 0x24d   :  { %v2093_v5 = vpop.f32.mrf.mxu0  ;;  %2716 = vmatmul.mubr.bf16.gmra.mxu0 %v4455_v1 }
 0x24e   :  { %3657 = vst [vmem:[%s7991_s3 + $0x298] sm:$0xff] %v3336_v48  ;;  %v3340_v23 = vmax.f32 %v2441_v6, 0.0  ;;  %v2443_v32 = vadd.f32 %v2442_v55, %v2090_v19  ;;  %v2094_v18 = vadd.f32 %v2093_v5, %v8539_v20  ;;  %v2446_v30 = vpop.f32.mrf.mxu1  ;;  %3005 = vmatmul.mubr.bf16.gmra.mxu1 %v8540_v14  ;;  %2723 = vmatprep.mubr.bf16.mxu0 %v8541_v46 }
 0x24f   :  { %v2095_v33 = vpop.f32.mrf.mxu0  ;;  %3012 = vmatprep.mubr.bf16.mxu1 %v8542_v50 }
 0x250   :  { %3661 = vst [vmem:[%s7991_s3 + $0x2b8] sm:$0xff] %v3340_v23  ;;  %v3341_v1 = vmax.f32 %v2443_v32, 0.0  ;;  %v2447_v4 = vadd.f32 %v2446_v30, %v2094_v18  ;;  %v2096_v61 = vadd.f32 %v2095_v33, %v8539_v20  ;;  %v2448_v9 = vpop.f32.mrf.mxu1 }
 0x251   :  { %v2097_v48 = vpop.f32.mrf.mxu0 }
 0x252   :  { %3662 = vst [vmem:[%s7991_s3 + $0x2c0] sm:$0xff] %v3341_v1  ;;  %v3345_v6 = vmax.f32 %v2447_v4, 0.0  ;;  %v2449_v19 = vadd.f32 %v2448_v9, %v2096_v61  ;;  %v2098_v55 = vadd.f32 %v2097_v48, %v6276_v63  ;;  %v2450_v5 = vpop.f32.mrf.mxu1  ;;  %v8543_v61 = vld [vmem:[#allocation10_spill] sm:$0xff]  ;;  %v8544_v48 = vld [vmem:[#allocation11_spill] sm:$0xff] }
 0x253   :  { %v2099_v14 = vpop.f32.mrf.mxu0 }
 0x254   :  { %3666 = vst [vmem:[%s7991_s3 + $0x2e0] sm:$0xff] %v3345_v6  ;;  %v3346_v23 = vmax.f32 %v2449_v19, 0.0  ;;  %v2451_v32 = vadd.f32 %v2450_v5, %v2098_v55  ;;  %v2100_v18 = vadd.f32 %v2099_v14, %v6276_v63  ;;  %v2452_v30 = vpop.f32.mrf.mxu1 }
 0x255   :  { %v2103_v46 = vpop.f32.mrf.mxu0  ;;  %2724 = vmatmul.mubr.bf16.gmra.mxu0 %v4533_v40 }
 0x256   :  { %3667 = vst [vmem:[%s7991_s3 + $0x2e8] sm:$0xff] %v3346_v23  ;;  %v3350_v33 = vmax.f32 %v2451_v32, 0.0  ;;  %v2453_v50 = vadd.f32 %v2452_v30, %v2100_v18  ;;  %v2104_v1 = vadd.f32 %v2103_v46, %v6301_v52  ;;  %v2456_v4 = vpop.f32.mrf.mxu1  ;;  %3013 = vmatmul.mubr.bf16.gmra.mxu1 %v4544_v45  ;;  %2731 = vmatprep.mubr.bf16.mxu0 %v8543_v61 }
 0x257   :  { %v2105_v9 = vpop.f32.mrf.mxu0  ;;  %3020 = vmatprep.mubr.bf16.mxu1 %v8544_v48 }
 0x258   :  { %3671 = vst [vmem:[%s7991_s3 + $0x308] sm:$0xff] %v3350_v33  ;;  %v3351_v40 = vmax.f32 %v2453_v50, 0.0  ;;  %v2457_v6 = vadd.f32 %v2456_v4, %v2104_v1  ;;  %v2106_v19 = vadd.f32 %v2105_v9, %v6301_v52  ;;  %v2458_v55 = vpop.f32.mrf.mxu1 }
 0x259   :  { %v2107_v5 = vpop.f32.mrf.mxu0 }
 0x25a   :  { %3672 = vst [vmem:[%s7991_s3 + $0x310] sm:$0xff] %v3351_v40  ;;  %v3355_v45 = vmax.f32 %v2457_v6, 0.0  ;;  %v2459_v14 = vadd.f32 %v2458_v55, %v2106_v19  ;;  %v2108_v23 = vadd.f32 %v2107_v5, %v6328_v26  ;;  %v2460_v32 = vpop.f32.mrf.mxu1  ;;  %v8545_v40 = vld [vmem:[#allocation12_spill] sm:$0xff]  ;;  %v8546_v19 = vld [vmem:[#allocation13_spill] sm:$0xff] }
 0x25b   :  { %v2109_v18 = vpop.f32.mrf.mxu0 }
 0x25c   :  { %3676 = vst [vmem:[%s7991_s3 + $0x330] sm:$0xff] %v3355_v45  ;;  %v3356_v30 = vmax.f32 %v2459_v14, 0.0  ;;  %v2461_v46 = vadd.f32 %v2460_v32, %v2108_v23  ;;  %v2110_v33 = vadd.f32 %v2109_v18, %v6328_v26  ;;  %v2462_v50 = vpop.f32.mrf.mxu1 }
 0x25d   :  { %v2113_v1 = vpop.f32.mrf.mxu0  ;;  %2732 = vmatmul.mubr.bf16.gmra.mxu0 %v4593_v0 }
 0x25e   :  { %3677 = vst [vmem:[%s7991_s3 + $0x338] sm:$0xff] %v3356_v30  ;;  %v3360_v4 = vmax.f32 %v2461_v46, 0.0  ;;  %v2463_v61 = vadd.f32 %v2462_v50, %v2110_v33  ;;  %v2114_v9 = vadd.f32 %v2113_v1, %v6353_v25  ;;  %v2466_v48 = vpop.f32.mrf.mxu1  ;;  %3021 = vmatmul.mubr.bf16.gmra.mxu1 %v4604_v8  ;;  %2739 = vmatprep.mubr.bf16.mxu0 %v8545_v40 }
 0x25f   :  { %v2115_v6 = vpop.f32.mrf.mxu0  ;;  %3028 = vmatprep.mubr.bf16.mxu1 %v8546_v19 }
 0x260   :  { %3681 = vst [vmem:[%s7991_s3 + $0x358] sm:$0xff] %v3360_v4  ;;  %v3361_v0 = vmax.f32 %v2463_v61, 0.0  ;;  %v2467_v55 = vadd.f32 %v2466_v48, %v2114_v9  ;;  %v2116_v5 = vadd.f32 %v2115_v6, %v6353_v25  ;;  %v2468_v45 = vpop.f32.mrf.mxu1 }
 0x261   :  { %v2117_v14 = vpop.f32.mrf.mxu0 }
 0x262   :  { %3682 = vst [vmem:[%s7991_s3 + $0x360] sm:$0xff] %v3361_v0  ;;  %v3365_v8 = vmax.f32 %v2467_v55, 0.0  ;;  %v2469_v23 = vadd.f32 %v2468_v45, %v2116_v5  ;;  %v2118_v32 = vadd.f32 %v2117_v14, %v6380_v28  ;;  %v2470_v18 = vpop.f32.mrf.mxu1 }
 0x263   :  { %v2119_v30 = vpop.f32.mrf.mxu0 }
 0x264   :  { %3686 = vst [vmem:[%s7991_s3 + $0x380] sm:$0xff] %v3365_v8  ;;  %v3366_v46 = vmax.f32 %v2469_v23, 0.0  ;;  %v2471_v33 = vadd.f32 %v2470_v18, %v2118_v32  ;;  %v2120_v50 = vadd.f32 %v2119_v30, %v6380_v28  ;;  %v2472_v1 = vpop.f32.mrf.mxu1 }
 0x265   :  { %v2123_v4 = vpop.f32.mrf.mxu0  ;;  %2740 = vmatmul.mubr.bf16.gmra.mxu0 %v4659_v35 }
 0x266   :  { %3687 = vst [vmem:[%s7991_s3 + $0x388] sm:$0xff] %v3366_v46  ;;  %v3370_v61 = vmax.f32 %v2471_v33, 0.0  ;;  %v2473_v9 = vadd.f32 %v2472_v1, %v2120_v50  ;;  %v2124_v48 = vadd.f32 %v2123_v4, %v6405_v7  ;;  %v2476_v40 = vpop.f32.mrf.mxu1  ;;  %3029 = vmatmul.mubr.bf16.gmra.mxu1 %v4664_v37  ;;  %2747 = vmatprep.mubr.bf16.mxu0 %v4666_v39 }
 0x267   :  { %v2125_v6 = vpop.f32.mrf.mxu0  ;;  %3036 = vmatprep.mubr.bf16.mxu1 %v4674_v44 }
 0x268   :  { %3691 = vst [vmem:[%s7991_s3 + $0x3a8] sm:$0xff] %v3370_v61  ;;  %v3371_v35 = vmax.f32 %v2473_v9, 0.0  ;;  %v2477_v19 = vadd.f32 %v2476_v40, %v2124_v48  ;;  %v2126_v0 = vadd.f32 %v2125_v6, %v6405_v7  ;;  %v2478_v55 = vpop.f32.mrf.mxu1 }
 0x269   :  { %v2127_v5 = vpop.f32.mrf.mxu0 }
 0x26a   :  { %3692 = vst [vmem:[%s7991_s3 + $0x3b0] sm:$0xff] %v3371_v35  ;;  %v3375_v37 = vmax.f32 %v2477_v19, 0.0  ;;  %v2479_v45 = vadd.f32 %v2478_v55, %v2126_v0  ;;  %v2128_v39 = vadd.f32 %v2127_v5, %v6432_v27  ;;  %v2480_v14 = vpop.f32.mrf.mxu1 }
 0x26b   :  { %v2129_v44 = vpop.f32.mrf.mxu0 }
 0x26c   :  { %3696 = vst [vmem:[%s7991_s3 + $0x3d0] sm:$0xff] %v3375_v37  ;;  %v3376_v8 = vmax.f32 %v2479_v45, 0.0  ;;  %v2481_v23 = vadd.f32 %v2480_v14, %v2128_v39  ;;  %v2130_v32 = vadd.f32 %v2129_v44, %v6432_v27  ;;  %v2482_v18 = vpop.f32.mrf.mxu1 }
 0x26d   :  { %v2133_v30 = vpop.f32.mrf.mxu0  ;;  %2748 = vmatmul.mubr.bf16.gmra.mxu0 %v4728_v11 }
 0x26e   :  { %3697 = vst [vmem:[%s7991_s3 + $0x3d8] sm:$0xff] %v3376_v8  ;;  %v3380_v46 = vmax.f32 %v2481_v23, 0.0  ;;  %v2483_v33 = vadd.f32 %v2482_v18, %v2130_v32  ;;  %v2134_v50 = vadd.f32 %v2133_v30, %v6445_v29  ;;  %v2486_v1 = vpop.f32.mrf.mxu1  ;;  %3037 = vmatmul.mubr.bf16.gmra.mxu1 %v4730_v12  ;;  %2755 = vmatprep.mubr.bf16.mxu0 %v4732_v13 }
 0x26f   :  { %v2135_v4 = vpop.f32.mrf.mxu0  ;;  %3044 = vmatprep.mubr.bf16.mxu1 %v4737_v16 }
 0x270   :  { %3701 = vst [vmem:[%s7991_s3 + $0x3f8] sm:$0xff] %v3380_v46  ;;  %v3381_v11 = vmax.f32 %v2483_v33, 0.0  ;;  %v2487_v61 = vadd.f32 %v2486_v1, %v2134_v50  ;;  %v2136_v9 = vadd.f32 %v2135_v4, %v6445_v29  ;;  %v2488_v48 = vpop.f32.mrf.mxu1 }
 0x271   :  { %v2137_v40 = vpop.f32.mrf.mxu0 }
 0x272   :  { %3702 = vst [vmem:[%s7991_s3 + $0x400] sm:$0xff] %v3381_v11  ;;  %v3385_v12 = vmax.f32 %v2487_v61, 0.0  ;;  %v2489_v6 = vadd.f32 %v2488_v48, %v2136_v9  ;;  %v2138_v13 = vadd.f32 %v2137_v40, %v6472_v38  ;;  %v2490_v35 = vpop.f32.mrf.mxu1 }
 0x273   :  { %v2139_v16 = vpop.f32.mrf.mxu0 }
 0x274   :  { %3706 = vst [vmem:[%s7991_s3 + $0x420] sm:$0xff] %v3385_v12  ;;  %v3386_v19 = vmax.f32 %v2489_v6, 0.0  ;;  %v2491_v0 = vadd.f32 %v2490_v35, %v2138_v13  ;;  %v2140_v55 = vadd.f32 %v2139_v16, %v6472_v38  ;;  %v2492_v5 = vpop.f32.mrf.mxu1  ;;  %v8547_v13 = vld [vmem:[#allocation14_spill] sm:$0xff] }
 0x275   :  { %v2143_v37 = vpop.f32.mrf.mxu0  ;;  %2756 = vmatmul.mubr.bf16.gmra.mxu0 %v4797_v54 }
 0x276   :  { %3707 = vst [vmem:[%s7991_s3 + $0x428] sm:$0xff] %v3386_v19  ;;  %v3390_v45 = vmax.f32 %v2491_v0, 0.0  ;;  %v2493_v39 = vadd.f32 %v2492_v5, %v2140_v55  ;;  %v2144_v14 = vadd.f32 %v2143_v37, %v6485_v60  ;;  %v2496_v44 = vpop.f32.mrf.mxu1  ;;  %3045 = vmatmul.mubr.bf16.gmra.mxu1 %v4802_v56  ;;  %2763 = vmatprep.mubr.bf16.mxu0 %v4804_v57 }
 0x277   :  { %v2145_v8 = vpop.f32.mrf.mxu0  ;;  %3052 = vmatprep.mubr.bf16.mxu1 %v4809_v59 }
 0x278   :  { %3711 = vst [vmem:[%s7991_s3 + $0x448] sm:$0xff] %v3390_v45  ;;  %v3391_v54 = vmax.f32 %v2493_v39, 0.0  ;;  %v2497_v23 = vadd.f32 %v2496_v44, %v2144_v14  ;;  %v2146_v32 = vadd.f32 %v2145_v8, %v6485_v60  ;;  %v2498_v18 = vpop.f32.mrf.mxu1 }
 0x279   :  { %v2147_v30 = vpop.f32.mrf.mxu0 }
 0x27a   :  { %3712 = vst [vmem:[%s7991_s3 + $0x450] sm:$0xff] %v3391_v54  ;;  %v3395_v56 = vmax.f32 %v2497_v23, 0.0  ;;  %v2499_v46 = vadd.f32 %v2498_v18, %v2146_v32  ;;  %v2148_v57 = vadd.f32 %v2147_v30, %v6498_v17  ;;  %v2500_v33 = vpop.f32.mrf.mxu1  ;;  %v8548_v32 = vld [vmem:[#allocation119_spill] sm:$0xff] }
 0x27b   :  { %v2149_v59 = vpop.f32.mrf.mxu0 }
 0x27c   :  { %3716 = vst [vmem:[%s7991_s3 + $0x470] sm:$0xff] %v3395_v56  ;;  %v3396_v50 = vmax.f32 %v2499_v46, 0.0  ;;  %v2501_v1 = vadd.f32 %v2500_v33, %v2148_v57  ;;  %v2150_v4 = vadd.f32 %v2149_v59, %v6498_v17  ;;  %v2502_v11 = vpop.f32.mrf.mxu1  ;;  %v8549_v56 = vld [vmem:[#allocation15_spill] sm:$0xff]  ;;  %v8550_v46 = vld [vmem:[#allocation16_spill] sm:$0xff]  ;;  %v8551_v33 = vld [vmem:[#allocation17_spill] sm:$0xff] }
 0x27d   :  { %v2153_v61 = vpop.f32.mrf.mxu0  ;;  %2764 = vmatmul.mubr.bf16.gmra.mxu0 %v4869_v36 }
 0x27e   :  { %3717 = vst [vmem:[%s7991_s3 + $0x478] sm:$0xff] %v3396_v50  ;;  %v3400_v9 = vmax.f32 %v2501_v1, 0.0  ;;  %v2503_v48 = vadd.f32 %v2502_v11, %v2150_v4  ;;  %v2154_v40 = vadd.f32 %v2153_v61, %v6509_v42  ;;  %v2506_v12 = vpop.f32.mrf.mxu1  ;;  %3053 = vmatmul.mubr.bf16.gmra.mxu1 %v4871_v41  ;;  %2771 = vmatprep.mubr.bf16.mxu0 %v4873_v43 }
 0x27f   :  { %v2155_v6 = vpop.f32.mrf.mxu0  ;;  %3060 = vmatprep.mubr.bf16.mxu1 %v8547_v13 }
 0x280   :  { %3721 = vst [vmem:[%s7991_s3 + $0x498] sm:$0xff] %v3400_v9  ;;  %v3401_v36 = vmax.f32 %v2503_v48, 0.0  ;;  %v2507_v35 = vadd.f32 %v2506_v12, %v2154_v40  ;;  %v2156_v16 = vadd.f32 %v2155_v6, %v6509_v42  ;;  %v2508_v19 = vpop.f32.mrf.mxu1  ;;  %v8552_v9 = vld [vmem:[#allocation120_spill] sm:$0xff] }
 0x281   :  { %v2157_v0 = vpop.f32.mrf.mxu0 }
 0x282   :  { %3722 = vst [vmem:[%s7991_s3 + $0x4a0] sm:$0xff] %v3401_v36  ;;  %v3405_v41 = vmax.f32 %v2507_v35, 0.0  ;;  %v2509_v55 = vadd.f32 %v2508_v19, %v2156_v16  ;;  %v2158_v43 = vadd.f32 %v2157_v0, %v6534_v22  ;;  %v2510_v5 = vpop.f32.mrf.mxu1  ;;  %v8553_v19 = vld [vmem:[#allocation18_spill] sm:$0xff] }
 0x283   :  { %v2159_v37 = vpop.f32.mrf.mxu0 }
 0x284   :  { %3726 = vst [vmem:[%s7991_s3 + $0x4c0] sm:$0xff] %v3405_v41  ;;  %v3406_v45 = vmax.f32 %v2509_v55, 0.0  ;;  %v2511_v39 = vadd.f32 %v2510_v5, %v2158_v43  ;;  %v2160_v14 = vadd.f32 %v2159_v37, %v6534_v22  ;;  %v2512_v44 = vpop.f32.mrf.mxu1  ;;  %v8554_v55 = vld [vmem:[#allocation121_spill] sm:$0xff]  ;;  %v8555_v37 = vld [vmem:[#allocation19_spill] sm:$0xff] }
 0x285   :  { %v2163_v8 = vpop.f32.mrf.mxu0  ;;  %2772 = vmatmul.mubr.bf16.gmra.mxu0 %v4941_v24 }
 0x286   :  { %3727 = vst [vmem:[%s7991_s3 + $0x4c8] sm:$0xff] %v3406_v45  ;;  %v3410_v54 = vmax.f32 %v2511_v39, 0.0  ;;  %v2513_v23 = vadd.f32 %v2512_v44, %v2160_v14  ;;  %v2164_v18 = vadd.f32 %v2163_v8, %v8548_v32  ;;  %v2516_v30 = vpop.f32.mrf.mxu1  ;;  %3061 = vmatmul.mubr.bf16.gmra.mxu1 %v8549_v56  ;;  %2779 = vmatprep.mubr.bf16.mxu0 %v8550_v46  ;;  %v8556_v45 = vld [vmem:[#allocation20_spill] sm:$0xff]  ;;  %v8557_v14 = vld [vmem:[#allocation21_spill] sm:$0xff]  ;;  %v8558_v46 = vld [vmem:[#allocation122_spill] sm:$0xff] }
 0x287   :  { %v2165_v57 = vpop.f32.mrf.mxu0  ;;  %3068 = vmatprep.mubr.bf16.mxu1 %v8551_v33 }
 0x288   :  { %3731 = vst [vmem:[%s7991_s3 + $0x4e8] sm:$0xff] %v3410_v54  ;;  %v3411_v24 = vmax.f32 %v2513_v23, 0.0  ;;  %v2517_v59 = vadd.f32 %v2516_v30, %v2164_v18  ;;  %v2166_v50 = vadd.f32 %v2165_v57, %v8548_v32  ;;  %v2518_v1 = vpop.f32.mrf.mxu1 }
 0x289   :  { %v2167_v4 = vpop.f32.mrf.mxu0 }
 0x28a   :  { %3732 = vst [vmem:[%s7991_s3 + $0x4f0] sm:$0xff] %v3411_v24  ;;  %v3415_v11 = vmax.f32 %v2517_v59, 0.0  ;;  %v2519_v61 = vadd.f32 %v2518_v1, %v2166_v50  ;;  %v2168_v48 = vadd.f32 %v2167_v4, %v8552_v9  ;;  %v2520_v40 = vpop.f32.mrf.mxu1 }
 0x28b   :  { %v2169_v12 = vpop.f32.mrf.mxu0 }
 0x28c   :  { %3736 = vst [vmem:[%s7991_s3 + $0x510] sm:$0xff] %v3415_v11  ;;  %v3416_v6 = vmax.f32 %v2519_v61, 0.0  ;;  %v2521_v13 = vadd.f32 %v2520_v40, %v2168_v48  ;;  %v2170_v36 = vadd.f32 %v2169_v12, %v8552_v9  ;;  %v2522_v35 = vpop.f32.mrf.mxu1  ;;  %v8559_v61 = vld [vmem:[#allocation22_spill] sm:$0xff]  ;;  %v8560_v12 = vld [vmem:[#allocation123_spill] sm:$0xff] }
 0x28d   :  { %v2173_v16 = vpop.f32.mrf.mxu0  ;;  %2780 = vmatmul.mubr.bf16.gmra.mxu0 %v8553_v19  ;;  %v8563_v19 = vld [vmem:[#allocation25_spill] sm:$0xff] }
 0x28e   :  { %3737 = vst [vmem:[%s7991_s3 + $0x518] sm:$0xff] %v3416_v6  ;;  %v3420_v0 = vmax.f32 %v2521_v13, 0.0  ;;  %v2523_v41 = vadd.f32 %v2522_v35, %v2170_v36  ;;  %v2174_v43 = vadd.f32 %v2173_v16, %v8554_v55  ;;  %v2526_v5 = vpop.f32.mrf.mxu1  ;;  %3069 = vmatmul.mubr.bf16.gmra.mxu1 %v8555_v37  ;;  %2787 = vmatprep.mubr.bf16.mxu0 %v8556_v45  ;;  %v8561_v36 = vld [vmem:[#allocation23_spill] sm:$0xff]  ;;  %v8562_v35 = vld [vmem:[#allocation24_spill] sm:$0xff] }
 0x28f   :  { %v2175_v39 = vpop.f32.mrf.mxu0  ;;  %3076 = vmatprep.mubr.bf16.mxu1 %v8557_v14  ;;  %v8564_v14 = vld [vmem:[#allocation124_spill] sm:$0xff] }
 0x290   :  { %3741 = vst [vmem:[%s7991_s3 + $0x538] sm:$0xff] %v3420_v0  ;;  %v3421_v44 = vmax.f32 %v2523_v41, 0.0  ;;  %v2527_v8 = vadd.f32 %v2526_v5, %v2174_v43  ;;  %v2176_v54 = vadd.f32 %v2175_v39, %v8554_v55  ;;  %v2528_v23 = vpop.f32.mrf.mxu1 }
 0x291   :  { %v2177_v18 = vpop.f32.mrf.mxu0 }
 0x292   :  { %3742 = vst [vmem:[%s7991_s3 + $0x540] sm:$0xff] %v3421_v44  ;;  %v3425_v30 = vmax.f32 %v2527_v8, 0.0  ;;  %v2529_v56 = vadd.f32 %v2528_v23, %v2176_v54  ;;  %v2178_v57 = vadd.f32 %v2177_v18, %v8558_v46  ;;  %v2530_v33 = vpop.f32.mrf.mxu1 }
 0x293   :  { %v2179_v24 = vpop.f32.mrf.mxu0 }
 0x294   :  { %3746 = vst [vmem:[%s7991_s3 + $0x560] sm:$0xff] %v3425_v30  ;;  %v3426_v59 = vmax.f32 %v2529_v56, 0.0  ;;  %v2531_v50 = vadd.f32 %v2530_v33, %v2178_v57  ;;  %v2180_v1 = vadd.f32 %v2179_v24, %v8558_v46  ;;  %v2532_v4 = vpop.f32.mrf.mxu1  ;;  %v8565_v33 = vld [vmem:[#allocation26_spill] sm:$0xff] }
 0x295   :  { %v2183_v11 = vpop.f32.mrf.mxu0  ;;  %2788 = vmatmul.mubr.bf16.gmra.mxu0 %v8559_v61  ;;  %v8568_v61 = vld [vmem:[#allocation28_spill] sm:$0xff] }
 0x296   :  { %3747 = vst [vmem:[%s7991_s3 + $0x568] sm:$0xff] %v3426_v59  ;;  %v3430_v48 = vmax.f32 %v2531_v50, 0.0  ;;  %v2533_v40 = vadd.f32 %v2532_v4, %v2180_v1  ;;  %v2184_v6 = vadd.f32 %v2183_v11, %v8560_v12  ;;  %v2536_v13 = vpop.f32.mrf.mxu1  ;;  %3077 = vmatmul.mubr.bf16.gmra.mxu1 %v8561_v36  ;;  %2795 = vmatprep.mubr.bf16.mxu0 %v8562_v35  ;;  %v8566_v50 = vld [vmem:[#allocation125_spill] sm:$0xff]  ;;  %v8567_v11 = vld [vmem:[#allocation27_spill] sm:$0xff] }
 0x297   :  { %v2185_v16 = vpop.f32.mrf.mxu0  ;;  %3084 = vmatprep.mubr.bf16.mxu1 %v8563_v19 }
 0x298   :  { %3751 = vst [vmem:[%s7991_s3 + $0x588] sm:$0xff] %v3430_v48  ;;  %v3431_v0 = vmax.f32 %v2533_v40, 0.0  ;;  %v2537_v41 = vadd.f32 %v2536_v13, %v2184_v6  ;;  %v2186_v43 = vadd.f32 %v2185_v16, %v8560_v12  ;;  %v2538_v5 = vpop.f32.mrf.mxu1  ;;  %v8569_v40 = vld [vmem:[#allocation29_spill] sm:$0xff] }
 0x299   :  { %v2187_v37 = vpop.f32.mrf.mxu0 }
 0x29a   :  { %3752 = vst [vmem:[%s7991_s3 + $0x590] sm:$0xff] %v3431_v0  ;;  %v3435_v45 = vmax.f32 %v2537_v41, 0.0  ;;  %v2539_v39 = vadd.f32 %v2538_v5, %v2186_v43  ;;  %v2188_v44 = vadd.f32 %v2187_v37, %v8564_v14  ;;  %v2540_v8 = vpop.f32.mrf.mxu1  ;;  %v8570_v41 = vld [vmem:[#allocation126_spill] sm:$0xff] }
 0x29b   :  { %v2189_v54 = vpop.f32.mrf.mxu0 }
 0x29c   :  { %3756 = vst [vmem:[%s7991_s3 + $0x5b0] sm:$0xff] %v3435_v45  ;;  %v3436_v23 = vmax.f32 %v2539_v39, 0.0  ;;  %v2541_v18 = vadd.f32 %v2540_v8, %v2188_v44  ;;  %v2190_v30 = vadd.f32 %v2189_v54, %v8564_v14  ;;  %v2542_v56 = vpop.f32.mrf.mxu1 }
 0x29d   :  { %v2193_v57 = vpop.f32.mrf.mxu0  ;;  %2796 = vmatmul.mubr.bf16.gmra.mxu0 %v8565_v33 }
 0x29e   :  { %3757 = vst [vmem:[%s7991_s3 + $0x5b8] sm:$0xff] %v3436_v23  ;;  %v3440_v24 = vmax.f32 %v2541_v18, 0.0  ;;  %v2543_v59 = vadd.f32 %v2542_v56, %v2190_v30  ;;  %v2194_v1 = vadd.f32 %v2193_v57, %v8566_v50  ;;  %v2546_v4 = vpop.f32.mrf.mxu1  ;;  %3085 = vmatmul.mubr.bf16.gmra.mxu1 %v8567_v11  ;;  %2803 = vmatprep.mubr.bf16.mxu0 %v8568_v61  ;;  %v8571_v23 = vld [vmem:[#allocation30_spill] sm:$0xff]  ;;  %v8572_v56 = vld [vmem:[#allocation127_spill] sm:$0xff] }
 0x29f   :  { %v2195_v48 = vpop.f32.mrf.mxu0  ;;  %3092 = vmatprep.mubr.bf16.mxu1 %v8569_v40 }
 0x2a0   :  { %3761 = vst [vmem:[%s7991_s3 + $0x5d8] sm:$0xff] %v3440_v24  ;;  %v3441_v6 = vmax.f32 %v2543_v59, 0.0  ;;  %v2547_v13 = vadd.f32 %v2546_v4, %v2194_v1  ;;  %v2196_v36 = vadd.f32 %v2195_v48, %v8566_v50  ;;  %v2548_v35 = vpop.f32.mrf.mxu1  ;;  %v8573_v24 = vld [vmem:[#allocation31_spill] sm:$0xff]  ;;  %v8574_v59 = vld [vmem:[#allocation32_spill] sm:$0xff]  ;;  %v8575_v4 = vld [vmem:[#allocation33_spill] sm:$0xff] }
 0x2a1   :  { %v2197_v16 = vpop.f32.mrf.mxu0 }
 0x2a2   :  { %3762 = vst [vmem:[%s7991_s3 + $0x5e0] sm:$0xff] %v3441_v6  ;;  %v3445_v19 = vmax.f32 %v2547_v13, 0.0  ;;  %v2549_v0 = vadd.f32 %v2548_v35, %v2196_v36  ;;  %v2198_v43 = vadd.f32 %v2197_v16, %v8570_v41  ;;  %v2550_v5 = vpop.f32.mrf.mxu1  ;;  %v8576_v35 = vld [vmem:[#allocation128_spill] sm:$0xff] }
 0x2a3   :  { %v2199_v37 = vpop.f32.mrf.mxu0 }
 0x2a4   :  { %3766 = vst [vmem:[%s7991_s3 + $0x600] sm:$0xff] %v3445_v19  ;;  %v3446_v45 = vmax.f32 %v2549_v0, 0.0  ;;  %v2551_v39 = vadd.f32 %v2550_v5, %v2198_v43  ;;  %v2200_v44 = vadd.f32 %v2199_v37, %v8570_v41  ;;  %v2552_v8 = vpop.f32.mrf.mxu1 }
 0x2a5   :  { %v2203_v54 = vpop.f32.mrf.mxu0  ;;  %2804 = vmatmul.mubr.bf16.gmra.mxu0 %v8571_v23  ;;  %v8578_v23 = vld [vmem:[#allocation129_spill] sm:$0xff] }
 0x2a6   :  { %3767 = vst [vmem:[%s7991_s3 + $0x608] sm:$0xff] %v3446_v45  ;;  %v3450_v18 = vmax.f32 %v2551_v39, 0.0  ;;  %v2553_v30 = vadd.f32 %v2552_v8, %v2200_v44  ;;  %v2204_v57 = vadd.f32 %v2203_v54, %v8572_v56  ;;  %v2556_v33 = vpop.f32.mrf.mxu1  ;;  %3093 = vmatmul.mubr.bf16.gmra.mxu1 %v8573_v24  ;;  %2811 = vmatprep.mubr.bf16.mxu0 %v8574_v59  ;;  %v8577_v44 = vld [vmem:[#allocation34_spill] sm:$0xff]  ;;  %v8581_v59 = vld [vmem:[#allocation37_spill] sm:$0xff] }
 0x2a7   :  { %v2205_v1 = vpop.f32.mrf.mxu0  ;;  %3100 = vmatprep.mubr.bf16.mxu1 %v8575_v4 }
 0x2a8   :  { %3771 = vst [vmem:[%s7991_s3 + $0x628] sm:$0xff] %v3450_v18  ;;  %v3451_v11 = vmax.f32 %v2553_v30, 0.0  ;;  %v2557_v61 = vadd.f32 %v2556_v33, %v2204_v57  ;;  %v2206_v48 = vadd.f32 %v2205_v1, %v8572_v56  ;;  %v2558_v40 = vpop.f32.mrf.mxu1  ;;  %v8579_v57 = vld [vmem:[#allocation35_spill] sm:$0xff]  ;;  %v8580_v33 = vld [vmem:[#allocation36_spill] sm:$0xff] }
 0x2a9   :  { %v2207_v6 = vpop.f32.mrf.mxu0 }
 0x2aa   :  { %3772 = vst [vmem:[%s7991_s3 + $0x630] sm:$0xff] %v3451_v11  ;;  %v3455_v13 = vmax.f32 %v2557_v61, 0.0  ;;  %v2559_v36 = vadd.f32 %v2558_v40, %v2206_v48  ;;  %v2208_v16 = vadd.f32 %v2207_v6, %v8576_v35  ;;  %v2560_v19 = vpop.f32.mrf.mxu1 }
 0x2ab   :  { %v2209_v0 = vpop.f32.mrf.mxu0 }
 0x2ac   :  { %3776 = vst [vmem:[%s7991_s3 + $0x650] sm:$0xff] %v3455_v13  ;;  %v3456_v43 = vmax.f32 %v2559_v36, 0.0  ;;  %v2561_v5 = vadd.f32 %v2560_v19, %v2208_v16  ;;  %v2210_v37 = vadd.f32 %v2209_v0, %v8576_v35  ;;  %v2562_v45 = vpop.f32.mrf.mxu1  ;;  %v8582_v13 = vld [vmem:[#allocation130_spill] sm:$0xff] }
 0x2ad   :  { %v2213_v39 = vpop.f32.mrf.mxu0  ;;  %2812 = vmatmul.mubr.bf16.gmra.mxu0 %v8577_v44 }
 0x2ae   :  { %3777 = vst [vmem:[%s7991_s3 + $0x658] sm:$0xff] %v3456_v43  ;;  %v3460_v8 = vmax.f32 %v2561_v5, 0.0  ;;  %v2563_v54 = vadd.f32 %v2562_v45, %v2210_v37  ;;  %v2214_v18 = vadd.f32 %v2213_v39, %v8578_v23  ;;  %v2566_v30 = vpop.f32.mrf.mxu1  ;;  %3101 = vmatmul.mubr.bf16.gmra.mxu1 %v8579_v57  ;;  %2819 = vmatprep.mubr.bf16.mxu0 %v8580_v33  ;;  %v8583_v39 = vld [vmem:[#allocation38_spill] sm:$0xff]  ;;  %v8585_v57 = vld [vmem:[#allocation39_spill] sm:$0xff]  ;;  %v8586_v33 = vld [vmem:[#allocation40_spill] sm:$0xff] }
 0x2af   :  { %v2215_v24 = vpop.f32.mrf.mxu0  ;;  %3108 = vmatprep.mubr.bf16.mxu1 %v8581_v59  ;;  %v8587_v59 = vld [vmem:[#allocation41_spill] sm:$0xff] }
 0x2b0   :  { %3781 = vst [vmem:[%s7991_s3 + $0x678] sm:$0xff] %v3460_v8  ;;  %v3461_v1 = vmax.f32 %v2563_v54, 0.0  ;;  %v2567_v4 = vadd.f32 %v2566_v30, %v2214_v18  ;;  %v2216_v11 = vadd.f32 %v2215_v24, %v8578_v23  ;;  %v2568_v61 = vpop.f32.mrf.mxu1  ;;  %v8584_v54 = vld [vmem:[#allocation131_spill] sm:$0xff] }
 0x2b1   :  { %v2217_v48 = vpop.f32.mrf.mxu0 }
 0x2b2   :  { %3782 = vst [vmem:[%s7991_s3 + $0x680] sm:$0xff] %v3461_v1  ;;  %v3465_v40 = vmax.f32 %v2567_v4, 0.0  ;;  %v2569_v6 = vadd.f32 %v2568_v61, %v2216_v11  ;;  %v2218_v36 = vadd.f32 %v2217_v48, %v8582_v13  ;;  %v2570_v16 = vpop.f32.mrf.mxu1 }
 0x2b3   :  { %v2219_v19 = vpop.f32.mrf.mxu0 }
 0x2b4   :  { %3786 = vst [vmem:[%s7991_s3 + $0x6a0] sm:$0xff] %v3465_v40  ;;  %v3466_v0 = vmax.f32 %v2569_v6, 0.0  ;;  %v2571_v43 = vadd.f32 %v2570_v16, %v2218_v36  ;;  %v2220_v5 = vadd.f32 %v2219_v19, %v8582_v13  ;;  %v2572_v37 = vpop.f32.mrf.mxu1  ;;  %v8588_v36 = vld [vmem:[#allocation132_spill] sm:$0xff] }
 0x2b5   :  { %v2223_v45 = vpop.f32.mrf.mxu0  ;;  %2820 = vmatmul.mubr.bf16.gmra.mxu0 %v8583_v39 }
 0x2b6   :  { %3787 = vst [vmem:[%s7991_s3 + $0x6a8] sm:$0xff] %v3466_v0  ;;  %v3470_v44 = vmax.f32 %v2571_v43, 0.0  ;;  %v2573_v8 = vadd.f32 %v2572_v37, %v2220_v5  ;;  %v2224_v18 = vadd.f32 %v2223_v45, %v8584_v54  ;;  %v2576_v30 = vpop.f32.mrf.mxu1  ;;  %3109 = vmatmul.mubr.bf16.gmra.mxu1 %v8585_v57  ;;  %2827 = vmatprep.mubr.bf16.mxu0 %v8586_v33  ;;  %v8590_v33 = vld [vmem:[#allocation43_spill] sm:$0xff] }
 0x2b7   :  { %v2225_v24 = vpop.f32.mrf.mxu0  ;;  %3116 = vmatprep.mubr.bf16.mxu1 %v8587_v59 }
 0x2b8   :  { %3791 = vst [vmem:[%s7991_s3 + $0x6c8] sm:$0xff] %v3470_v44  ;;  %v3471_v1 = vmax.f32 %v2573_v8, 0.0  ;;  %v2577_v4 = vadd.f32 %v2576_v30, %v2224_v18  ;;  %v2226_v11 = vadd.f32 %v2225_v24, %v8584_v54  ;;  %v2578_v61 = vpop.f32.mrf.mxu1  ;;  %v8589_v44 = vld [vmem:[#allocation42_spill] sm:$0xff]  ;;  %v8591_v24 = vld [vmem:[#allocation44_spill] sm:$0xff] }
 0x2b9   :  { %v2227_v48 = vpop.f32.mrf.mxu0 }
 0x2ba   :  { %3792 = vst [vmem:[%s7991_s3 + $0x6d0] sm:$0xff] %v3471_v1  ;;  %v3475_v40 = vmax.f32 %v2577_v4, 0.0  ;;  %v2579_v6 = vadd.f32 %v2578_v61, %v2226_v11  ;;  %v2228_v16 = vadd.f32 %v2227_v48, %v8588_v36  ;;  %v2580_v19 = vpop.f32.mrf.mxu1  ;;  %v8592_v1 = vld [vmem:[#allocation45_spill] sm:$0xff] }
 0x2bb   :  { %v2229_v0 = vpop.f32.mrf.mxu0 }
 0x2bc   :  { %3796 = vst [vmem:[%s7991_s3 + $0x6f0] sm:$0xff] %v3475_v40  ;;  %v3476_v43 = vmax.f32 %v2579_v6, 0.0  ;;  %v2581_v5 = vadd.f32 %v2580_v19, %v2228_v16  ;;  %v2230_v37 = vadd.f32 %v2229_v0, %v8588_v36  ;;  %v2582_v45 = vpop.f32.mrf.mxu1  ;;  %v8593_v19 = vld [vmem:[#allocation133_spill] sm:$0xff] }
 0x2bd   :  { %v2233_v39 = vpop.f32.mrf.mxu0  ;;  %2828 = vmatmul.mubr.bf16.gmra.mxu0 %v8589_v44 }
 0x2be   :  { %3797 = vst [vmem:[%s7991_s3 + $0x6f8] sm:$0xff] %v3476_v43  ;;  %v3480_v8 = vmax.f32 %v2581_v5, 0.0  ;;  %v2583_v18 = vadd.f32 %v2582_v45, %v2230_v37  ;;  %v2234_v30 = vadd.f32 %v2233_v39, %v6757_v49  ;;  %v2586_v57 = vpop.f32.mrf.mxu1  ;;  %3117 = vmatmul.mubr.bf16.gmra.mxu1 %v8590_v33  ;;  %2835 = vmatprep.mubr.bf16.mxu0 %v8591_v24  ;;  %v8595_v33 = vld [vmem:[#allocation134_spill] sm:$0xff] }
 0x2bf   :  { %v2235_v59 = vpop.f32.mrf.mxu0  ;;  %3124 = vmatprep.mubr.bf16.mxu1 %v8592_v1  ;;  %v8596_v1 = vld [vmem:[#allocation47_spill] sm:$0xff] }
 0x2c0   :  { %3801 = vst [vmem:[%s7991_s3 + $0x718] sm:$0xff] %v3480_v8  ;;  %v3481_v4 = vmax.f32 %v2583_v18, 0.0  ;;  %v2587_v11 = vadd.f32 %v2586_v57, %v2234_v30  ;;  %v2236_v61 = vadd.f32 %v2235_v59, %v6757_v49  ;;  %v2588_v48 = vpop.f32.mrf.mxu1  ;;  %v8594_v18 = vld [vmem:[#allocation46_spill] sm:$0xff] }
 0x2c1   :  { %v2237_v40 = vpop.f32.mrf.mxu0 }
 0x2c2   :  { %3802 = vst [vmem:[%s7991_s3 + $0x720] sm:$0xff] %v3481_v4  ;;  %v3485_v6 = vmax.f32 %v2587_v11, 0.0  ;;  %v2589_v16 = vadd.f32 %v2588_v48, %v2236_v61  ;;  %v2238_v0 = vadd.f32 %v2237_v40, %v8593_v19  ;;  %v2590_v43 = vpop.f32.mrf.mxu1  ;;  %v8597_v4 = vld [vmem:[#allocation48_spill] sm:$0xff]  ;;  %v8598_v61 = vld [vmem:[#allocation49_spill] sm:$0xff] }
 0x2c3   :  { %v2239_v5 = vpop.f32.mrf.mxu0 }
 0x2c4   :  { %3806 = vst [vmem:[%s7991_s3 + $0x740] sm:$0xff] %v3485_v6  ;;  %v3486_v37 = vmax.f32 %v2589_v16, 0.0  ;;  %v2591_v45 = vadd.f32 %v2590_v43, %v2238_v0  ;;  %v2240_v39 = vadd.f32 %v2239_v5, %v8593_v19  ;;  %v2592_v44 = vpop.f32.mrf.mxu1 }
 0x2c5   :  { %v2243_v8 = vpop.f32.mrf.mxu0  ;;  %2836 = vmatmul.mubr.bf16.gmra.mxu0 %v8594_v18 }
 0x2c6   :  { %3807 = vst [vmem:[%s7991_s3 + $0x748] sm:$0xff] %v3486_v37  ;;  %v3490_v30 = vmax.f32 %v2591_v45, 0.0  ;;  %v2593_v57 = vadd.f32 %v2592_v44, %v2240_v39  ;;  %v2244_v24 = vadd.f32 %v2243_v8, %v8595_v33  ;;  %v2596_v59 = vpop.f32.mrf.mxu1  ;;  %3125 = vmatmul.mubr.bf16.gmra.mxu1 %v8596_v1  ;;  %2843 = vmatprep.mubr.bf16.mxu0 %v8597_v4  ;;  %v8599_v37 = vld [vmem:[#allocation135_spill] sm:$0xff] }
 0x2c7   :  { %v2245_v11 = vpop.f32.mrf.mxu0  ;;  %3132 = vmatprep.mubr.bf16.mxu1 %v8598_v61 }
 0x2c8   :  { %3811 = vst [vmem:[%s7991_s3 + $0x768] sm:$0xff] %v3490_v30  ;;  %v3491_v48 = vmax.f32 %v2593_v57, 0.0  ;;  %v2597_v40 = vadd.f32 %v2596_v59, %v2244_v24  ;;  %v2246_v6 = vadd.f32 %v2245_v11, %v8595_v33  ;;  %v2598_v16 = vpop.f32.mrf.mxu1  ;;  %v8600_v59 = vld [vmem:[#allocation50_spill] sm:$0xff]  ;;  %v8601_v11 = vld [vmem:[#allocation136_spill] sm:$0xff] }
 0x2c9   :  { %v2247_v0 = vpop.f32.mrf.mxu0 }
 0x2ca   :  { %3812 = vst [vmem:[%s7991_s3 + $0x770] sm:$0xff] %v3491_v48  ;;  %v3495_v43 = vmax.f32 %v2597_v40, 0.0  ;;  %v2599_v5 = vadd.f32 %v2598_v16, %v2246_v6  ;;  %v2248_v45 = vadd.f32 %v2247_v0, %v8599_v37  ;;  %v2600_v39 = vpop.f32.mrf.mxu1  ;;  %v8602_v40 = vld [vmem:[#allocation51_spill] sm:$0xff]  ;;  %v8603_v6 = vld [vmem:[#allocation52_spill] sm:$0xff]  ;;  %v8604_v0 = vld [vmem:[#allocation53_spill] sm:$0xff] }
 0x2cb   :  { %v2249_v44 = vpop.f32.mrf.mxu0 }
 0x2cc   :  { %3816 = vst [vmem:[%s7991_s3 + $0x790] sm:$0xff] %v3495_v43  ;;  %v3496_v8 = vmax.f32 %v2599_v5, 0.0  ;;  %v2601_v18 = vadd.f32 %v2600_v39, %v2248_v45  ;;  %v2250_v30 = vadd.f32 %v2249_v44, %v8599_v37  ;;  %v2602_v57 = vpop.f32.mrf.mxu1 }
 0x2cd   :  { %v2253_v24 = vpop.f32.mrf.mxu0  ;;  %2844 = vmatmul.mubr.bf16.gmra.mxu0 %v8600_v59 }
 0x2ce   :  { %3817 = vst [vmem:[%s7991_s3 + $0x798] sm:$0xff] %v3496_v8  ;;  %v3500_v1 = vmax.f32 %v2601_v18, 0.0  ;;  %v2603_v4 = vadd.f32 %v2602_v57, %v2250_v30  ;;  %v2254_v61 = vadd.f32 %v2253_v24, %v8601_v11  ;;  %v2606_v48 = vpop.f32.mrf.mxu1  ;;  %3133 = vmatmul.mubr.bf16.gmra.mxu1 %v8602_v40  ;;  %2851 = vmatprep.mubr.bf16.mxu0 %v8603_v6  ;;  %v8605_v30 = vld [vmem:[#allocation137_spill] sm:$0xff]  ;;  %v8606_v6 = vld [vmem:[#allocation54_spill] sm:$0xff] }
 0x2cf   :  { %v2255_v16 = vpop.f32.mrf.mxu0  ;;  %3140 = vmatprep.mubr.bf16.mxu1 %v8604_v0 }
 0x2d0   :  { %3821 = vst [vmem:[%s7991_s3 + $0x7b8] sm:$0xff] %v3500_v1  ;;  %v3501_v43 = vmax.f32 %v2603_v4, 0.0  ;;  %v2607_v5 = vadd.f32 %v2606_v48, %v2254_v61  ;;  %v2256_v45 = vadd.f32 %v2255_v16, %v8601_v11  ;;  %v2608_v39 = vpop.f32.mrf.mxu1 }
 0x2d1   :  { %v2257_v44 = vpop.f32.mrf.mxu0 }
 0x2d2   :  { %3822 = vst [vmem:[%s7991_s3 + $0x7c0] sm:$0xff] %v3501_v43  ;;  %v3505_v8 = vmax.f32 %v2607_v5, 0.0  ;;  %v2609_v18 = vadd.f32 %v2608_v39, %v2256_v45  ;;  %v2258_v57 = vadd.f32 %v2257_v44, %v8605_v30  ;;  %v2610_v24 = vpop.f32.mrf.mxu1  ;;  %v8607_v43 = vld [vmem:[#allocation138_spill] sm:$0xff]  ;;  %v8608_v39 = vld [vmem:[#allocation55_spill] sm:$0xff]  ;;  %v8609_v44 = vld [vmem:[#allocation56_spill] sm:$0xff] }
 0x2d3   :  { %v2259_v59 = vpop.f32.mrf.mxu0 }
 0x2d4   :  { %3826 = vst [vmem:[%s7991_s3 + $0x7e0] sm:$0xff] %v3505_v8  ;;  %v3506_v1 = vmax.f32 %v2609_v18, 0.0  ;;  %v2611_v4 = vadd.f32 %v2610_v24, %v2258_v57  ;;  %v2260_v61 = vadd.f32 %v2259_v59, %v8605_v30  ;;  %v2612_v48 = vpop.f32.mrf.mxu1  ;;  %v8610_v18 = vld [vmem:[#allocation57_spill] sm:$0xff] }
 0x2d5   :  { %v2263_v40 = vpop.f32.mrf.mxu0  ;;  %2852 = vmatmul.mubr.bf16.gmra.mxu0 %v8606_v6 }
 0x2d6   :  { %3827 = vst [vmem:[%s7991_s3 + $0x7e8] sm:$0xff] %v3506_v1  ;;  %v3510_v16 = vmax.f32 %v2611_v4, 0.0  ;;  %v2613_v0 = vadd.f32 %v2612_v48, %v2260_v61  ;;  %v2264_v5 = vadd.f32 %v2263_v40, %v8607_v43  ;;  %v2616_v45 = vpop.f32.mrf.mxu1  ;;  %3141 = vmatmul.mubr.bf16.gmra.mxu1 %v8608_v39  ;;  %2859 = vmatprep.mubr.bf16.mxu0 %v8609_v44  ;;  %v8611_v40 = vld [vmem:[#allocation139_spill] sm:$0xff] }
 0x2d7   :  { %v2265_v8 = vpop.f32.mrf.mxu0  ;;  %3148 = vmatprep.mubr.bf16.mxu1 %v8610_v18  ;;  %v8612_v18 = vld [vmem:[#allocation58_spill] sm:$0xff] }
 0x2d8   :  { %3831 = vst [vmem:[%s7991_s3 + $0x808] sm:$0xff] %v3510_v16  ;;  %v3511_v57 = vmax.f32 %v2613_v0, 0.0  ;;  %v2617_v24 = vadd.f32 %v2616_v45, %v2264_v5  ;;  %v2266_v59 = vadd.f32 %v2265_v8, %v8607_v43  ;;  %v2618_v1 = vpop.f32.mrf.mxu1  ;;  %v8614_v43 = vld [vmem:[#allocation59_spill] sm:$0xff] }
 0x2d9   :  { %v2267_v4 = vpop.f32.mrf.mxu0 }
 0x2da   :  { %3832 = vst [vmem:[%s7991_s3 + $0x810] sm:$0xff] %v3511_v57  ;;  %v3515_v61 = vmax.f32 %v2617_v24, 0.0  ;;  %v2619_v48 = vadd.f32 %v2618_v1, %v2266_v59  ;;  %v2268_v6 = vadd.f32 %v2267_v4, %v8611_v40  ;;  %v2620_v39 = vpop.f32.mrf.mxu1  ;;  %v8613_v59 = vld [vmem:[#allocation140_spill] sm:$0xff] }
 0x2db   :  { %v2269_v44 = vpop.f32.mrf.mxu0 }
 0x2dc   :  { %3836 = vst [vmem:[%s7991_s3 + $0x830] sm:$0xff] %v3515_v61  ;;  %v3516_v16 = vmax.f32 %v2619_v48, 0.0  ;;  %v2621_v0 = vadd.f32 %v2620_v39, %v2268_v6  ;;  %v2270_v5 = vadd.f32 %v2269_v44, %v8611_v40  ;;  %v2622_v45 = vpop.f32.mrf.mxu1  ;;  %v8615_v61 = vld [vmem:[#allocation60_spill] sm:$0xff]  ;;  %v8616_v6 = vld [vmem:[#allocation61_spill] sm:$0xff]  ;;  %v8620_v40 = vld [vmem:[#allocation63_spill] sm:$0xff] }
 0x2dd   :  { %v2273_v8 = vpop.f32.mrf.mxu0  ;;  %2860 = vmatmul.mubr.bf16.gmra.mxu0 %v8612_v18 }
 0x2de   :  { %3837 = vst [vmem:[%s7991_s3 + $0x838] sm:$0xff] %v3516_v16  ;;  %v3520_v57 = vmax.f32 %v2621_v0, 0.0  ;;  %v2623_v24 = vadd.f32 %v2622_v45, %v2270_v5  ;;  %v2274_v1 = vadd.f32 %v2273_v8, %v8613_v59  ;;  %v2626_v4 = vpop.f32.mrf.mxu1  ;;  %3149 = vmatmul.mubr.bf16.gmra.mxu1 %v8614_v43  ;;  %2867 = vmatprep.mubr.bf16.mxu0 %v8615_v61  ;;  %v8617_v8 = vld [vmem:[#allocation141_spill] sm:$0xff] }
 0x2df   :  { %v2275_v48 = vpop.f32.mrf.mxu0  ;;  %3156 = vmatprep.mubr.bf16.mxu1 %v8616_v6 }
 0x2e0   :  { %3841 = vst [vmem:[%s7991_s3 + $0x858] sm:$0xff] %v3520_v57  ;;  %v3521_v39 = vmax.f32 %v2623_v24, 0.0  ;;  %v2627_v44 = vadd.f32 %v2626_v4, %v2274_v1  ;;  %v2276_v16 = vadd.f32 %v2275_v48, %v8613_v59  ;;  %v2628_v0 = vpop.f32.mrf.mxu1  ;;  %v8618_v59 = vld [vmem:[#allocation62_spill] sm:$0xff] }
 0x2e1   :  { %v2277_v5 = vpop.f32.mrf.mxu0 }
 0x2e2   :  { %3842 = vst [vmem:[%s7991_s3 + $0x860] sm:$0xff] %v3521_v39  ;;  %v3525_v43 = vmax.f32 %v2627_v44, 0.0  ;;  %v2629_v45 = vadd.f32 %v2628_v0, %v2276_v16  ;;  %v2278_v18 = vadd.f32 %v2277_v5, %v8617_v8  ;;  %v2630_v61 = vpop.f32.mrf.mxu1  ;;  %v8619_v16 = vld [vmem:[#allocation142_spill] sm:$0xff] }
 0x2e3   :  { %v2279_v6 = vpop.f32.mrf.mxu0 }
 0x2e4   :  { %3846 = vst [vmem:[%s7991_s3 + $0x880] sm:$0xff] %v3525_v43  ;;  %v3526_v57 = vmax.f32 %v2629_v45, 0.0  ;;  %v2631_v24 = vadd.f32 %v2630_v61, %v2278_v18  ;;  %v2280_v1 = vadd.f32 %v2279_v6, %v8617_v8  ;;  %v2632_v4 = vpop.f32.mrf.mxu1  ;;  %v8621_v43 = vld [vmem:[#allocation64_spill] sm:$0xff]  ;;  %v8622_v18 = vld [vmem:[#allocation65_spill] sm:$0xff]  ;;  %v8626_v8 = vld [vmem:[#allocation67_spill] sm:$0xff] }
 0x2e5   :  { %v2283_v48 = vpop.f32.mrf.mxu0  ;;  %2868 = vmatmul.mubr.bf16.gmra.mxu0 %v8618_v59 }
 0x2e6   :  { %3847 = vst [vmem:[%s7991_s3 + $0x888] sm:$0xff] %v3526_v57  ;;  %v3530_v39 = vmax.f32 %v2631_v24, 0.0  ;;  %v2633_v44 = vadd.f32 %v2632_v4, %v2280_v1  ;;  %v2284_v0 = vadd.f32 %v2283_v48, %v8619_v16  ;;  %v2636_v5 = vpop.f32.mrf.mxu1  ;;  %3157 = vmatmul.mubr.bf16.gmra.mxu1 %v8620_v40  ;;  %2875 = vmatprep.mubr.bf16.mxu0 %v8621_v43  ;;  %v8623_v4 = vld [vmem:[#allocation143_spill] sm:$0xff] }
 0x2e7   :  { %v2285_v45 = vpop.f32.mrf.mxu0  ;;  %3164 = vmatprep.mubr.bf16.mxu1 %v8622_v18 }
 0x2e8   :  { %3851 = vst [vmem:[%s7991_s3 + $0x8a8] sm:$0xff] %v3530_v39  ;;  %v3531_v59 = vmax.f32 %v2633_v44, 0.0  ;;  %v2637_v61 = vadd.f32 %v2636_v5, %v2284_v0  ;;  %v2286_v6 = vadd.f32 %v2285_v45, %v8619_v16  ;;  %v2638_v57 = vpop.f32.mrf.mxu1  ;;  %v8624_v16 = vld [vmem:[#allocation66_spill] sm:$0xff] }
 0x2e9   :  { %v2287_v24 = vpop.f32.mrf.mxu0 }
 0x2ea   :  { %3852 = vst [vmem:[%s7991_s3 + $0x8b0] sm:$0xff] %v3531_v59  ;;  %v3535_v40 = vmax.f32 %v2637_v61, 0.0  ;;  %v2639_v1 = vadd.f32 %v2638_v57, %v2286_v6  ;;  %v2288_v48 = vadd.f32 %v2287_v24, %v8623_v4  ;;  %v2640_v43 = vpop.f32.mrf.mxu1  ;;  %v8625_v6 = vld [vmem:[#allocation144_spill] sm:$0xff] }
 0x2eb   :  { %v2289_v18 = vpop.f32.mrf.mxu0 }
 0x2ec   :  { %3856 = vst [vmem:[%s7991_s3 + $0x8d0] sm:$0xff] %v3535_v40  ;;  %v3536_v39 = vmax.f32 %v2639_v1, 0.0  ;;  %v2641_v44 = vadd.f32 %v2640_v43, %v2288_v48  ;;  %v2290_v0 = vadd.f32 %v2289_v18, %v8623_v4  ;;  %v2642_v5 = vpop.f32.mrf.mxu1  ;;  %v8627_v40 = vld [vmem:[#allocation68_spill] sm:$0xff]  ;;  %v8628_v48 = vld [vmem:[#allocation69_spill] sm:$0xff]  ;;  %v8632_v4 = vld [vmem:[#allocation71_spill] sm:$0xff] }
 0x2ed   :  { %v2293_v45 = vpop.f32.mrf.mxu0  ;;  %2876 = vmatmul.mubr.bf16.gmra.mxu0 %v8624_v16 }
 0x2ee   :  { %3857 = vst [vmem:[%s7991_s3 + $0x8d8] sm:$0xff] %v3536_v39  ;;  %v3540_v59 = vmax.f32 %v2641_v44, 0.0  ;;  %v2643_v61 = vadd.f32 %v2642_v5, %v2290_v0  ;;  %v2294_v57 = vadd.f32 %v2293_v45, %v8625_v6  ;;  %v2646_v24 = vpop.f32.mrf.mxu1  ;;  %3165 = vmatmul.mubr.bf16.gmra.mxu1 %v8626_v8  ;;  %2883 = vmatprep.mubr.bf16.mxu0 %v8627_v40  ;;  %v8629_v5 = vld [vmem:[#allocation145_spill] sm:$0xff] }
 0x2ef   :  { %v2295_v1 = vpop.f32.mrf.mxu0  ;;  %3172 = vmatprep.mubr.bf16.mxu1 %v8628_v48 }
 0x2f0   :  { %3861 = vst [vmem:[%s7991_s3 + $0x8f8] sm:$0xff] %v3540_v59  ;;  %v3541_v16 = vmax.f32 %v2643_v61, 0.0  ;;  %v2647_v43 = vadd.f32 %v2646_v24, %v2294_v57  ;;  %v2296_v18 = vadd.f32 %v2295_v1, %v8625_v6  ;;  %v2648_v39 = vpop.f32.mrf.mxu1  ;;  %v8630_v6 = vld [vmem:[#allocation70_spill] sm:$0xff] }
 0x2f1   :  { %v2297_v44 = vpop.f32.mrf.mxu0 }
 0x2f2   :  { %3862 = vst [vmem:[%s7991_s3 + $0x900] sm:$0xff] %v3541_v16  ;;  %v3545_v8 = vmax.f32 %v2647_v43, 0.0  ;;  %v2649_v0 = vadd.f32 %v2648_v39, %v2296_v18  ;;  %v2298_v45 = vadd.f32 %v2297_v44, %v8629_v5  ;;  %v2650_v40 = vpop.f32.mrf.mxu1  ;;  %v8631_v18 = vld [vmem:[#allocation146_spill] sm:$0xff] }
 0x2f3   :  { %v2299_v48 = vpop.f32.mrf.mxu0 }
 0x2f4   :  { %3866 = vst [vmem:[%s7991_s3 + $0x920] sm:$0xff] %v3545_v8  ;;  %v3546_v59 = vmax.f32 %v2649_v0, 0.0  ;;  %v2651_v61 = vadd.f32 %v2650_v40, %v2298_v45  ;;  %v2300_v57 = vadd.f32 %v2299_v48, %v8629_v5  ;;  %v2652_v24 = vpop.f32.mrf.mxu1  ;;  %v8633_v8 = vld [vmem:[#allocation72_spill] sm:$0xff]  ;;  %v8634_v45 = vld [vmem:[#allocation73_spill] sm:$0xff]  ;;  %v8638_v5 = vld [vmem:[#allocation75_spill] sm:$0xff] }
 0x2f5   :  { %v2303_v1 = vpop.f32.mrf.mxu0  ;;  %2884 = vmatmul.mubr.bf16.gmra.mxu0 %v8630_v6 }
 0x2f6   :  { %3867 = vst [vmem:[%s7991_s3 + $0x928] sm:$0xff] %v3546_v59  ;;  %v3550_v16 = vmax.f32 %v2651_v61, 0.0  ;;  %v2653_v43 = vadd.f32 %v2652_v24, %v2300_v57  ;;  %v2304_v39 = vadd.f32 %v2303_v1, %v8631_v18  ;;  %v2656_v44 = vpop.f32.mrf.mxu1  ;;  %3173 = vmatmul.mubr.bf16.gmra.mxu1 %v8632_v4  ;;  %2891 = vmatprep.mubr.bf16.mxu0 %v8633_v8  ;;  %v8635_v24 = vld [vmem:[#allocation147_spill] sm:$0xff] }
 0x2f7   :  { %v2305_v0 = vpop.f32.mrf.mxu0  ;;  %3180 = vmatprep.mubr.bf16.mxu1 %v8634_v45 }
 0x2f8   :  { %3871 = vst [vmem:[%s7991_s3 + $0x948] sm:$0xff] %v3550_v16  ;;  %v3551_v6 = vmax.f32 %v2653_v43, 0.0  ;;  %v2657_v40 = vadd.f32 %v2656_v44, %v2304_v39  ;;  %v2306_v48 = vadd.f32 %v2305_v0, %v8631_v18  ;;  %v2658_v59 = vpop.f32.mrf.mxu1  ;;  %v8636_v18 = vld [vmem:[#allocation74_spill] sm:$0xff] }
 0x2f9   :  { %v2307_v61 = vpop.f32.mrf.mxu0 }
 0x2fa   :  { %3872 = vst [vmem:[%s7991_s3 + $0x950] sm:$0xff] %v3551_v6  ;;  %v3555_v4 = vmax.f32 %v2657_v40, 0.0  ;;  %v2659_v57 = vadd.f32 %v2658_v59, %v2306_v48  ;;  %v2308_v1 = vadd.f32 %v2307_v61, %v8635_v24  ;;  %v2660_v8 = vpop.f32.mrf.mxu1  ;;  %v8637_v48 = vld [vmem:[#allocation148_spill] sm:$0xff] }
 0x2fb   :  { %v2309_v45 = vpop.f32.mrf.mxu0 }
 0x2fc   :  { %3876 = vst [vmem:[%s7991_s3 + $0x970] sm:$0xff] %v3555_v4  ;;  %v3556_v16 = vmax.f32 %v2659_v57, 0.0  ;;  %v2661_v43 = vadd.f32 %v2660_v8, %v2308_v1  ;;  %v2310_v39 = vadd.f32 %v2309_v45, %v8635_v24  ;;  %v2662_v44 = vpop.f32.mrf.mxu1  ;;  %v8639_v4 = vld [vmem:[#allocation76_spill] sm:$0xff]  ;;  %v8640_v1 = vld [vmem:[#allocation77_spill] sm:$0xff] }
 0x2fd   :  { %v2313_v0 = vpop.f32.mrf.mxu0  ;;  %2892 = vmatmul.mubr.bf16.gmra.mxu0 %v8636_v18 }
 0x2fe   :  { %3877 = vst [vmem:[%s7991_s3 + $0x978] sm:$0xff] %v3556_v16  ;;  %v3560_v6 = vmax.f32 %v2661_v43, 0.0  ;;  %v2663_v40 = vadd.f32 %v2662_v44, %v2310_v39  ;;  %v2314_v59 = vadd.f32 %v2313_v0, %v8637_v48  ;;  %v2666_v61 = vpop.f32.mrf.mxu1  ;;  %3181 = vmatmul.mubr.bf16.gmra.mxu1 %v8638_v5  ;;  %2899 = vmatprep.mubr.bf16.mxu0 %v8639_v4 }
 0x2ff   :  { %v2315_v57 = vpop.f32.mrf.mxu0  ;;  %3188 = vmatprep.mubr.bf16.mxu1 %v8640_v1  ;;  %v8641_v1 = vld [vmem:[#allocation79_spill] sm:$0xff] }
 0x300   :  { %3881 = vst [vmem:[%s7991_s3 + $0x998] sm:$0xff] %v3560_v6  ;;  %v3561_v18 = vmax.f32 %v2663_v40, 0.0  ;;  %v2667_v8 = vadd.f32 %v2666_v61, %v2314_v59  ;;  %v2316_v45 = vadd.f32 %v2315_v57, %v8637_v48  ;;  %v2668_v16 = vpop.f32.mrf.mxu1  ;;  %v8643_v48 = vld [vmem:[#allocation80_spill] sm:$0xff] }
 0x301   :  { %v2317_v43 = vpop.f32.mrf.mxu0 }
 0x302   :  { %3882 = vst [vmem:[%s7991_s3 + $0x9a0] sm:$0xff] %v3561_v18  ;;  %v3565_v5 = vmax.f32 %v2667_v8, 0.0  ;;  %v2669_v39 = vadd.f32 %v2668_v16, %v2316_v45  ;;  %v2318_v44 = vadd.f32 %v2317_v43, %v6974_v15  ;;  %v2670_v0 = vpop.f32.mrf.mxu1  ;;  %v8642_v45 = vld [vmem:[#allocation78_spill] sm:$0xff] }
 0x303   :  { %v2319_v4 = vpop.f32.mrf.mxu0 }
 0x304   :  { %3886 = vst [vmem:[%s7991_s3 + $0x9c0] sm:$0xff] %v3565_v5  ;;  %v3566_v6 = vmax.f32 %v2669_v39, 0.0  ;;  %v2671_v40 = vadd.f32 %v2670_v0, %v2318_v44  ;;  %v2320_v59 = vadd.f32 %v2319_v4, %v6974_v15  ;;  %v2672_v61 = vpop.f32.mrf.mxu1  ;;  %v8644_v5 = vld [vmem:[#allocation81_spill] sm:$0xff]  ;;  %v8645_v44 = vld [vmem:[#allocation82_spill] sm:$0xff] }
 0x305   :  { %v2709_v57 = vpop.f32.mrf.mxu0  ;;  %2900 = vmatmul.mubr.bf16.gmra.mxu0 %v8641_v1 }
 0x306   :  { %3887 = vst [vmem:[%s7991_s3 + $0x9c8] sm:$0xff] %v3566_v6  ;;  %v3570_v18 = vmax.f32 %v2671_v40, 0.0  ;;  %v2673_v8 = vadd.f32 %v2672_v61, %v2320_v59  ;;  %v2710_v16 = vadd.f32 %v2709_v57, %v8642_v45  ;;  %v2998_v43 = vpop.f32.mrf.mxu1  ;;  %3189 = vmatmul.mubr.bf16.gmra.mxu1 %v8643_v48  ;;  %2907 = vmatprep.mubr.bf16.mxu0 %v8644_v5  ;;  %v8646_v48 = vld [vmem:[#allocation83_spill] sm:$0xff]  ;;  %v8648_v5 = vld [vmem:[#allocation84_spill] sm:$0xff] }
 0x307   :  { %v2711_v39 = vpop.f32.mrf.mxu0  ;;  %3196 = vmatprep.mubr.bf16.mxu1 %v8645_v44 }
 0x308   :  { %3891 = vst [vmem:[%s7991_s3 + $0x9e8] sm:$0xff] %v3570_v18  ;;  %v3571_v0 = vmax.f32 %v2673_v8, 0.0  ;;  %v2999_v4 = vadd.f32 %v2998_v43, %v2710_v16  ;;  %v3000_v1 = vpop.f32.mrf.mxu1  ;;  %v8647_v16 = vld [vmem:[#allocation85_spill] sm:$0xff] }
 0x309   :  { %v2712_v6 = vpop.f32.mrf.mxu0 }
 0x30a   :  { %3892 = vst [vmem:[%s7991_s3 + $0x9f0] sm:$0xff] %v3571_v0  ;;  %v3257_v40 = vmax.f32 %v2999_v4, 0.0  ;;  %v2713_v59 = vadd.f32 %v2712_v6, %v8646_v48  ;;  %v3001_v61 = vpop.f32.mrf.mxu1  ;;  %v8649_v0 = vld [vmem:[#allocation86_spill] sm:$0xff]  ;;  %v8650_v4 = vld [vmem:[#allocation87_spill] sm:$0xff]  ;;  %v8651_v6 = vld [vmem:[#allocation88_spill] sm:$0xff] }
 0x30b   :  { %v2714_v57 = vpop.f32.mrf.mxu0 }
 0x30c   :  { %3578 = vst.msk [vmem:[%s7991_s3 + $0x20] sm:$0xff] %vm3577_vm0, %v3257_v40  ;;  %v3002_v18 = vadd.f32 %v3001_v61, %v2713_v59  ;;  %v3003_v8 = vpop.f32.mrf.mxu1  ;;  %v8652_v57 = vld [vmem:[#allocation89_spill] sm:$0xff] }
 0x30d   :  { %v2717_v45 = vpop.f32.mrf.mxu0  ;;  %2908 = vmatmul.mubr.bf16.gmra.mxu0 %v8647_v16 }
 0x30e   :  { %v3262_v43 = vmax.f32 %v3002_v18, 0.0  ;;  %v2718_v39 = vadd.f32 %v2717_v45, %v8648_v5  ;;  %v3006_v44 = vpop.f32.mrf.mxu1  ;;  %3197 = vmatmul.mubr.bf16.gmra.mxu1 %v8649_v0  ;;  %2915 = vmatprep.mubr.bf16.mxu0 %v8650_v4  ;;  %v8653_v4 = vld [vmem:[#allocation90_spill] sm:$0xff] }
 0x30f   :  { %v2719_v1 = vpop.f32.mrf.mxu0  ;;  %3204 = vmatprep.mubr.bf16.mxu1 %v8651_v6  ;;  %v8655_v6 = vld [vmem:[#allocation91_spill] sm:$0xff] }
 0x310   :  { %3583 = vst.msk [vmem:[%s7991_s3 + $0x48] sm:$0xff] %vm3577_vm0, %v3262_v43  ;;  %v3007_v40 = vadd.f32 %v3006_v44, %v2718_v39  ;;  %v3008_v48 = vpop.f32.mrf.mxu1  ;;  %v8654_v43 = vld [vmem:[#allocation93_spill] sm:$0xff] }
 0x311   :  { %v2720_v59 = vpop.f32.mrf.mxu0 }
 0x312   :  { %v3267_v61 = vmax.f32 %v3007_v40, 0.0  ;;  %v2721_v18 = vadd.f32 %v2720_v59, %v8652_v57  ;;  %v3009_v8 = vpop.f32.mrf.mxu1  ;;  %v8656_v40 = vld [vmem:[#allocation92_spill] sm:$0xff]  ;;  %v8657_v59 = vld [vmem:[#allocation94_spill] sm:$0xff] }
 0x313   :  { %v2722_v45 = vpop.f32.mrf.mxu0 }
 0x314   :  { %3588 = vst.msk [vmem:[%s7991_s3 + $0x70] sm:$0xff] %vm3577_vm0, %v3267_v61  ;;  %v3010_v16 = vadd.f32 %v3009_v8, %v2721_v18  ;;  %v3011_v5 = vpop.f32.mrf.mxu1  ;;  %v8658_v45 = vld [vmem:[#allocation95_spill] sm:$0xff] }
 0x315   :  { %v2725_v0 = vpop.f32.mrf.mxu0  ;;  %2916 = vmatmul.mubr.bf16.gmra.mxu0 %v8653_v4 }
 0x316   :  { %v3272_v1 = vmax.f32 %v3010_v16, 0.0  ;;  %v2726_v39 = vadd.f32 %v2725_v0, %v8654_v43  ;;  %v3014_v44 = vpop.f32.mrf.mxu1  ;;  %3205 = vmatmul.mubr.bf16.gmra.mxu1 %v8655_v6  ;;  %2923 = vmatprep.mubr.bf16.mxu0 %v8656_v40  ;;  %v8659_v40 = vld [vmem:[#allocation96_spill] sm:$0xff] }
 0x317   :  { %v2727_v48 = vpop.f32.mrf.mxu0  ;;  %3212 = vmatprep.mubr.bf16.mxu1 %v8657_v59  ;;  %v8661_v59 = vld [vmem:[#allocation97_spill] sm:$0xff] }
 0x318   :  { %3593 = vst.msk [vmem:[%s7991_s3 + $0x98] sm:$0xff] %vm3577_vm0, %v3272_v1  ;;  %v3015_v61 = vadd.f32 %v3014_v44, %v2726_v39  ;;  %v3016_v57 = vpop.f32.mrf.mxu1  ;;  %v8660_v1 = vld [vmem:[#allocation99_spill] sm:$0xff] }
 0x319   :  { %v2728_v18 = vpop.f32.mrf.mxu0 }
 0x31a   :  { %v3277_v8 = vmax.f32 %v3015_v61, 0.0  ;;  %v2729_v16 = vadd.f32 %v2728_v18, %v8658_v45  ;;  %v3017_v5 = vpop.f32.mrf.mxu1  ;;  %v8662_v61 = vld [vmem:[#allocation98_spill] sm:$0xff]  ;;  %v8663_v18 = vld [vmem:[#allocation100_spill] sm:$0xff] }
 0x31b   :  { %v2730_v0 = vpop.f32.mrf.mxu0 }
 0x31c   :  { %3598 = vst.msk [vmem:[%s7991_s3 + $0xc0] sm:$0xff] %vm3577_vm0, %v3277_v8  ;;  %v3018_v4 = vadd.f32 %v3017_v5, %v2729_v16  ;;  %v3019_v43 = vpop.f32.mrf.mxu1  ;;  %v8664_v0 = vld [vmem:[#allocation101_spill] sm:$0xff] }
 0x31d   :  { %v2733_v6 = vpop.f32.mrf.mxu0  ;;  %2924 = vmatmul.mubr.bf16.gmra.mxu0 %v8659_v40 }
 0x31e   :  { %v3282_v48 = vmax.f32 %v3018_v4, 0.0  ;;  %v2734_v39 = vadd.f32 %v2733_v6, %v8660_v1  ;;  %v3022_v44 = vpop.f32.mrf.mxu1  ;;  %3213 = vmatmul.mubr.bf16.gmra.mxu1 %v8661_v59  ;;  %2931 = vmatprep.mubr.bf16.mxu0 %v8662_v61  ;;  %v8665_v61 = vld [vmem:[#allocation102_spill] sm:$0xff] }
 0x31f   :  { %v2735_v57 = vpop.f32.mrf.mxu0  ;;  %3220 = vmatprep.mubr.bf16.mxu1 %v8663_v18  ;;  %v8667_v18 = vld [vmem:[#allocation103_spill] sm:$0xff] }
 0x320   :  { %3603 = vst.msk [vmem:[%s7991_s3 + $0xe8] sm:$0xff] %vm3577_vm0, %v3282_v48  ;;  %v3023_v8 = vadd.f32 %v3022_v44, %v2734_v39  ;;  %v3024_v45 = vpop.f32.mrf.mxu1  ;;  %v8666_v48 = vld [vmem:[#allocation105_spill] sm:$0xff] }
 0x321   :  { %v2736_v16 = vpop.f32.mrf.mxu0 }
 0x322   :  { %v3287_v5 = vmax.f32 %v3023_v8, 0.0  ;;  %v2737_v4 = vadd.f32 %v2736_v16, %v8664_v0  ;;  %v3025_v43 = vpop.f32.mrf.mxu1  ;;  %v8668_v8 = vld [vmem:[#allocation104_spill] sm:$0xff]  ;;  %v8669_v16 = vld [vmem:[#allocation106_spill] sm:$0xff] }
 0x323   :  { %v2738_v6 = vpop.f32.mrf.mxu0 }
 0x324   :  { %3608 = vst.msk [vmem:[%s7991_s3 + $0x110] sm:$0xff] %vm3577_vm0, %v3287_v5  ;;  %v3026_v40 = vadd.f32 %v3025_v43, %v2737_v4  ;;  %v3027_v1 = vpop.f32.mrf.mxu1 }
 0x325   :  { %v2741_v59 = vpop.f32.mrf.mxu0  ;;  %2932 = vmatmul.mubr.bf16.gmra.mxu0 %v8665_v61 }
 0x326   :  { %v3292_v57 = vmax.f32 %v3026_v40, 0.0  ;;  %v2742_v39 = vadd.f32 %v2741_v59, %v8666_v48  ;;  %v3030_v44 = vpop.f32.mrf.mxu1  ;;  %3221 = vmatmul.mubr.bf16.gmra.mxu1 %v8667_v18  ;;  %2939 = vmatprep.mubr.bf16.mxu0 %v8668_v8  ;;  %v8671_v8 = vld [vmem:[#allocation110_spill] sm:$0xff] }
 0x327   :  { %v2743_v45 = vpop.f32.mrf.mxu0  ;;  %3228 = vmatprep.mubr.bf16.mxu1 %v8669_v16 }
 0x328   :  { %3613 = vst.msk [vmem:[%s7991_s3 + $0x138] sm:$0xff] %vm3577_vm0, %v3292_v57  ;;  %v3031_v5 = vadd.f32 %v3030_v44, %v2742_v39  ;;  %v3032_v0 = vpop.f32.mrf.mxu1  ;;  %v8670_v44 = vld [vmem:[#allocation109_spill] sm:$0xff]  ;;  %v8672_v45 = vld [vmem:[#allocation112_spill] sm:$0xff] }
 0x329   :  { %v2744_v4 = vpop.f32.mrf.mxu0 }
 0x32a   :  { %v3297_v43 = vmax.f32 %v3031_v5, 0.0  ;;  %v2745_v6 = vadd.f32 %v2744_v4, %v8524_v62  ;;  %v3033_v40 = vpop.f32.mrf.mxu1 }
 0x32b   :  { %v2746_v1 = vpop.f32.mrf.mxu0 }
 0x32c   :  { %3618 = vst.msk [vmem:[%s7991_s3 + $0x160] sm:$0xff] %vm3577_vm0, %v3297_v43  ;;  %v3034_v59 = vadd.f32 %v3033_v40, %v2745_v6  ;;  %v3035_v61 = vpop.f32.mrf.mxu1 }
 0x32d   :  { %v2749_v48 = vpop.f32.mrf.mxu0  ;;  %2940 = vmatmul.mubr.bf16.gmra.mxu0 %v8525_v31 }
 0x32e   :  { %v3302_v18 = vmax.f32 %v3034_v59, 0.0  ;;  %v2750_v57 = vadd.f32 %v2749_v48, %v8526_v10  ;;  %v3038_v39 = vpop.f32.mrf.mxu1  ;;  %3229 = vmatmul.mubr.bf16.gmra.mxu1 %v8670_v44  ;;  %2947 = vmatprep.mubr.bf16.mxu0 %v8671_v8 }
 0x32f   :  { %v2751_v62 = vpop.f32.mrf.mxu0  ;;  %3236 = vmatprep.mubr.bf16.mxu1 %v8672_v45 }
 0x330   :  { %3623 = vst.msk [vmem:[%s7991_s3 + $0x188] sm:$0xff] %vm3577_vm0, %v3302_v18  ;;  %v3039_v16 = vadd.f32 %v3038_v39, %v2750_v57  ;;  %v3040_v5 = vpop.f32.mrf.mxu1  ;;  %v8673_v18 = vld [vmem:[#allocation113_spill] sm:$0xff]  ;;  %v8674_v57 = vld [vmem:[#allocation114_spill] sm:$0xff]  ;;  %v8675_v39 = vld [vmem:[#allocation115_spill] sm:$0xff] }
 0x331   :  { %v2752_v0 = vpop.f32.mrf.mxu0 }
 0x332   :  { %v3307_v31 = vmax.f32 %v3039_v16, 0.0  ;;  %v2753_v4 = vadd.f32 %v2752_v0, %v6092_v53  ;;  %v3041_v10 = vpop.f32.mrf.mxu1 }
 0x333   :  { %v2754_v43 = vpop.f32.mrf.mxu0 }
 0x334   :  { %3628 = vst.msk [vmem:[%s7991_s3 + $0x1b0] sm:$0xff] %vm3577_vm0, %v3307_v31  ;;  %v3042_v6 = vadd.f32 %v3041_v10, %v2753_v4  ;;  %v3043_v40 = vpop.f32.mrf.mxu1  ;;  %v8676_v10 = vld [vmem:[#allocation117_spill] sm:$0xff] }
 0x335   :  { %v2757_v1 = vpop.f32.mrf.mxu0  ;;  %2948 = vmatmul.mubr.bf16.gmra.mxu0 %v6111_v51  ;;  %v8677_v40 = vld [vmem:[#allocation116_spill] sm:$0xff] }
 0x336   :  { %v3312_v59 = vmax.f32 %v3042_v6, 0.0  ;;  %v2758_v61 = vadd.f32 %v2757_v1, %v6121_v3  ;;  %v3046_v48 = vpop.f32.mrf.mxu1  ;;  %3237 = vmatmul.mubr.bf16.gmra.mxu1 %v8673_v18  ;;  %2955 = vmatprep.mubr.bf16.mxu0 %v8674_v57 }
 0x337   :  { %v2759_v53 = vpop.f32.mrf.mxu0  ;;  %3244 = vmatprep.mubr.bf16.mxu1 %v8675_v39 }
 0x338   :  { %3633 = vst.msk [vmem:[%s7991_s3 + $0x1d8] sm:$0xff] %vm3577_vm0, %v3312_v59  ;;  %v3047_v44 = vadd.f32 %v3046_v48, %v2758_v61  ;;  %v3048_v8 = vpop.f32.mrf.mxu1 }
 0x339   :  { %v2760_v62 = vpop.f32.mrf.mxu0 }
 0x33a   :  { %v3317_v51 = vmax.f32 %v3047_v44, 0.0  ;;  %v2761_v45 = vadd.f32 %v2760_v62, %v6142_v2  ;;  %v3049_v3 = vpop.f32.mrf.mxu1 }
 0x33b   :  { %v2762_v16 = vpop.f32.mrf.mxu0 }
 0x33c   :  { %3638 = vst.msk [vmem:[%s7991_s3 + $0x200] sm:$0xff] %vm3577_vm0, %v3317_v51  ;;  %v3050_v5 = vadd.f32 %v3049_v3, %v2761_v45  ;;  %v3051_v0 = vpop.f32.mrf.mxu1 }
 0x33d   :  { %v2765_v31 = vpop.f32.mrf.mxu0  ;;  %2956 = vmatmul.mubr.bf16.gmra.mxu0 %v6155_v34 }
 0x33e   :  { %v3322_v4 = vmax.f32 %v3050_v5, 0.0  ;;  %v2766_v43 = vadd.f32 %v2765_v31, %v8676_v10  ;;  %v3054_v6 = vpop.f32.mrf.mxu1  ;;  %3245 = vmatmul.mubr.bf16.gmra.mxu1 %v8677_v40 }
 0x33f   :  { %v2767_v1 = vpop.f32.mrf.mxu0 }
 0x340   :  { %3643 = vst.msk [vmem:[%s7991_s3 + $0x228] sm:$0xff] %vm3577_vm0, %v3322_v4  ;;  %v3055_v2 = vadd.f32 %v3054_v6, %v2766_v43  ;;  %v3056_v59 = vpop.f32.mrf.mxu1 }
 0x341   :  { %v2768_v61 = vpop.f32.mrf.mxu0 }
 0x342   :  { %v3327_v48 = vmax.f32 %v3055_v2, 0.0  ;;  %v2769_v18 = vadd.f32 %v2768_v61, %v6176_v47  ;;  %v3057_v57 = vpop.f32.mrf.mxu1 }
 0x343   :  { %v2770_v34 = vpop.f32.mrf.mxu0 }
 0x344   :  { %3648 = vst.msk [vmem:[%s7991_s3 + $0x250] sm:$0xff] %vm3577_vm0, %v3327_v48  ;;  %v3058_v53 = vadd.f32 %v3057_v57, %v2769_v18  ;;  %v3059_v39 = vpop.f32.mrf.mxu1 }
 0x345   :  { %v2773_v44 = vpop.f32.mrf.mxu0 }
 0x346   :  { %v3332_v8 = vmax.f32 %v3058_v53, 0.0  ;;  %v2774_v62 = vadd.f32 %v2773_v44, %v6199_v58  ;;  %v3062_v51 = vpop.f32.mrf.mxu1 }
 0x347   :  { %v2775_v45 = vpop.f32.mrf.mxu0 }
 0x348   :  { %3653 = vst.msk [vmem:[%s7991_s3 + $0x278] sm:$0xff] %vm3577_vm0, %v3332_v8  ;;  %v3063_v47 = vadd.f32 %v3062_v51, %v2774_v62  ;;  %v3064_v3 = vpop.f32.mrf.mxu1 }
 0x349   :  { %v2776_v16 = vpop.f32.mrf.mxu0 }
 0x34a   :  { %v3337_v5 = vmax.f32 %v3063_v47, 0.0  ;;  %v2777_v0 = vadd.f32 %v2776_v16, %v6223_v21  ;;  %v3065_v31 = vpop.f32.mrf.mxu1 }
 0x34b   :  { %v2778_v4 = vpop.f32.mrf.mxu0 }
 0x34c   :  { %3658 = vst.msk [vmem:[%s7991_s3 + $0x2a0] sm:$0xff] %vm3577_vm0, %v3337_v5  ;;  %v3066_v58 = vadd.f32 %v3065_v31, %v2777_v0  ;;  %v3067_v10 = vpop.f32.mrf.mxu1 }
 0x34d   :  { %v2781_v43 = vpop.f32.mrf.mxu0 }
 0x34e   :  { %v3342_v6 = vmax.f32 %v3066_v58, 0.0  ;;  %v2782_v40 = vadd.f32 %v2781_v43, %v8539_v20  ;;  %v3070_v1 = vpop.f32.mrf.mxu1 }
 0x34f   :  { %v2783_v2 = vpop.f32.mrf.mxu0 }
 0x350   :  { %3663 = vst.msk [vmem:[%s7991_s3 + $0x2c8] sm:$0xff] %vm3577_vm0, %v3342_v6  ;;  %v3071_v21 = vadd.f32 %v3070_v1, %v2782_v40  ;;  %v3072_v59 = vpop.f32.mrf.mxu1 }
 0x351   :  { %v2784_v61 = vpop.f32.mrf.mxu0 }
 0x352   :  { %v3347_v48 = vmax.f32 %v3071_v21, 0.0  ;;  %v2785_v18 = vadd.f32 %v2784_v61, %v6276_v63  ;;  %v3073_v57 = vpop.f32.mrf.mxu1 }
 0x353   :  { %v2786_v34 = vpop.f32.mrf.mxu0 }
 0x354   :  { %3668 = vst.msk [vmem:[%s7991_s3 + $0x2f0] sm:$0xff] %vm3577_vm0, %v3347_v48  ;;  %v3074_v20 = vadd.f32 %v3073_v57, %v2785_v18  ;;  %v3075_v53 = vpop.f32.mrf.mxu1 }
 0x355   :  { %v2789_v39 = vpop.f32.mrf.mxu0 }
 0x356   :  { %v3352_v44 = vmax.f32 %v3074_v20, 0.0  ;;  %v2790_v8 = vadd.f32 %v2789_v39, %v6301_v52  ;;  %v3078_v62 = vpop.f32.mrf.mxu1 }
 0x357   :  { %v2791_v51 = vpop.f32.mrf.mxu0 }
 0x358   :  { %3673 = vst.msk [vmem:[%s7991_s3 + $0x318] sm:$0xff] %vm3577_vm0, %v3352_v44  ;;  %v3079_v63 = vadd.f32 %v3078_v62, %v2790_v8  ;;  %v3080_v45 = vpop.f32.mrf.mxu1 }
 0x359   :  { %v2792_v47 = vpop.f32.mrf.mxu0 }
 0x35a   :  { %v3357_v3 = vmax.f32 %v3079_v63, 0.0  ;;  %v2793_v16 = vadd.f32 %v2792_v47, %v6328_v26  ;;  %v3081_v5 = vpop.f32.mrf.mxu1 }
 0x35b   :  { %v2794_v0 = vpop.f32.mrf.mxu0 }
 0x35c   :  { %3678 = vst.msk [vmem:[%s7991_s3 + $0x340] sm:$0xff] %vm3577_vm0, %v3357_v3  ;;  %v3082_v52 = vadd.f32 %v3081_v5, %v2793_v16  ;;  %v3083_v31 = vpop.f32.mrf.mxu1 }
 0x35d   :  { %v2797_v4 = vpop.f32.mrf.mxu0 }
 0x35e   :  { %v3362_v58 = vmax.f32 %v3082_v52, 0.0  ;;  %v2798_v10 = vadd.f32 %v2797_v4, %v6353_v25  ;;  %v3086_v43 = vpop.f32.mrf.mxu1 }
 0x35f   :  { %v2799_v6 = vpop.f32.mrf.mxu0 }
 0x360   :  { %3683 = vst.msk [vmem:[%s7991_s3 + $0x368] sm:$0xff] %vm3577_vm0, %v3362_v58  ;;  %v3087_v26 = vadd.f32 %v3086_v43, %v2798_v10  ;;  %v3088_v40 = vpop.f32.mrf.mxu1 }
 0x361   :  { %v2800_v1 = vpop.f32.mrf.mxu0 }
 0x362   :  { %v3367_v2 = vmax.f32 %v3087_v26, 0.0  ;;  %v2801_v21 = vadd.f32 %v2800_v1, %v6380_v28  ;;  %v3089_v59 = vpop.f32.mrf.mxu1 }
 0x363   :  { %v2802_v61 = vpop.f32.mrf.mxu0 }
 0x364   :  { %3688 = vst.msk [vmem:[%s7991_s3 + $0x390] sm:$0xff] %vm3577_vm0, %v3367_v2  ;;  %v3090_v25 = vadd.f32 %v3089_v59, %v2801_v21  ;;  %v3091_v48 = vpop.f32.mrf.mxu1 }
 0x365   :  { %v2805_v18 = vpop.f32.mrf.mxu0 }
 0x366   :  { %v3372_v57 = vmax.f32 %v3090_v25, 0.0  ;;  %v2806_v34 = vadd.f32 %v2805_v18, %v6405_v7  ;;  %v3094_v20 = vpop.f32.mrf.mxu1 }
 0x367   :  { %v2807_v53 = vpop.f32.mrf.mxu0 }
 0x368   :  { %3693 = vst.msk [vmem:[%s7991_s3 + $0x3b8] sm:$0xff] %vm3577_vm0, %v3372_v57  ;;  %v3095_v28 = vadd.f32 %v3094_v20, %v2806_v34  ;;  %v3096_v39 = vpop.f32.mrf.mxu1 }
 0x369   :  { %v2808_v44 = vpop.f32.mrf.mxu0 }
 0x36a   :  { %v3377_v8 = vmax.f32 %v3095_v28, 0.0  ;;  %v2809_v62 = vadd.f32 %v2808_v44, %v6432_v27  ;;  %v3097_v51 = vpop.f32.mrf.mxu1 }
 0x36b   :  { %v2810_v63 = vpop.f32.mrf.mxu0 }
 0x36c   :  { %3698 = vst.msk [vmem:[%s7991_s3 + $0x3e0] sm:$0xff] %vm3577_vm0, %v3377_v8  ;;  %v3098_v7 = vadd.f32 %v3097_v51, %v2809_v62  ;;  %v3099_v45 = vpop.f32.mrf.mxu1 }
 0x36d   :  { %v2813_v47 = vpop.f32.mrf.mxu0 }
 0x36e   :  { %v3382_v3 = vmax.f32 %v3098_v7, 0.0  ;;  %v2814_v16 = vadd.f32 %v2813_v47, %v6445_v29  ;;  %v3102_v5 = vpop.f32.mrf.mxu1 }
 0x36f   :  { %v2815_v0 = vpop.f32.mrf.mxu0 }
 0x370   :  { %3703 = vst.msk [vmem:[%s7991_s3 + $0x408] sm:$0xff] %vm3577_vm0, %v3382_v3  ;;  %v3103_v27 = vadd.f32 %v3102_v5, %v2814_v16  ;;  %v3104_v52 = vpop.f32.mrf.mxu1 }
 0x371   :  { %v2816_v31 = vpop.f32.mrf.mxu0 }
 0x372   :  { %v3387_v4 = vmax.f32 %v3103_v27, 0.0  ;;  %v2817_v58 = vadd.f32 %v2816_v31, %v6472_v38  ;;  %v3105_v10 = vpop.f32.mrf.mxu1 }
 0x373   :  { %v2818_v43 = vpop.f32.mrf.mxu0 }
 0x374   :  { %3708 = vst.msk [vmem:[%s7991_s3 + $0x430] sm:$0xff] %vm3577_vm0, %v3387_v4  ;;  %v3106_v29 = vadd.f32 %v3105_v10, %v2817_v58  ;;  %v3107_v6 = vpop.f32.mrf.mxu1 }
 0x375   :  { %v2821_v26 = vpop.f32.mrf.mxu0 }
 0x376   :  { %v3392_v40 = vmax.f32 %v3106_v29, 0.0  ;;  %v2822_v1 = vadd.f32 %v2821_v26, %v6485_v60  ;;  %v3110_v2 = vpop.f32.mrf.mxu1 }
 0x377   :  { %v2823_v21 = vpop.f32.mrf.mxu0 }
 0x378   :  { %3713 = vst.msk [vmem:[%s7991_s3 + $0x458] sm:$0xff] %vm3577_vm0, %v3392_v40  ;;  %v3111_v38 = vadd.f32 %v3110_v2, %v2822_v1  ;;  %v3112_v59 = vpop.f32.mrf.mxu1 }
 0x379   :  { %v2824_v61 = vpop.f32.mrf.mxu0 }
 0x37a   :  { %v3397_v25 = vmax.f32 %v3111_v38, 0.0  ;;  %v2825_v48 = vadd.f32 %v2824_v61, %v6498_v17  ;;  %v3113_v18 = vpop.f32.mrf.mxu1 }
 0x37b   :  { %v2826_v57 = vpop.f32.mrf.mxu0 }
 0x37c   :  { %3718 = vst.msk [vmem:[%s7991_s3 + $0x480] sm:$0xff] %vm3577_vm0, %v3397_v25  ;;  %v3114_v60 = vadd.f32 %v3113_v18, %v2825_v48  ;;  %v3115_v34 = vpop.f32.mrf.mxu1 }
 0x37d   :  { %v2829_v20 = vpop.f32.mrf.mxu0 }
 0x37e   :  { %v3402_v53 = vmax.f32 %v3114_v60, 0.0  ;;  %v2830_v28 = vadd.f32 %v2829_v20, %v6509_v42  ;;  %v3118_v39 = vpop.f32.mrf.mxu1 }
 0x37f   :  { %v2831_v44 = vpop.f32.mrf.mxu0 }
 0x380   :  { %3723 = vst.msk [vmem:[%s7991_s3 + $0x4a8] sm:$0xff] %vm3577_vm0, %v3402_v53  ;;  %v3119_v17 = vadd.f32 %v3118_v39, %v2830_v28  ;;  %v3120_v8 = vpop.f32.mrf.mxu1 }
 0x381   :  { %v2832_v62 = vpop.f32.mrf.mxu0 }
 0x382   :  { %v3407_v51 = vmax.f32 %v3119_v17, 0.0  ;;  %v2833_v63 = vadd.f32 %v2832_v62, %v6534_v22  ;;  %v3121_v7 = vpop.f32.mrf.mxu1 }
 0x383   :  { %v2834_v45 = vpop.f32.mrf.mxu0 }
 0x384   :  { %3728 = vst.msk [vmem:[%s7991_s3 + $0x4d0] sm:$0xff] %vm3577_vm0, %v3407_v51  ;;  %v3122_v42 = vadd.f32 %v3121_v7, %v2833_v63  ;;  %v3123_v47 = vpop.f32.mrf.mxu1 }
 0x385   :  { %v2837_v3 = vpop.f32.mrf.mxu0 }
 0x386   :  { %v3412_v16 = vmax.f32 %v3122_v42, 0.0  ;;  %v2838_v5 = vadd.f32 %v2837_v3, %v8548_v32  ;;  %v3126_v0 = vpop.f32.mrf.mxu1 }
 0x387   :  { %v2839_v27 = vpop.f32.mrf.mxu0 }
 0x388   :  { %3733 = vst.msk [vmem:[%s7991_s3 + $0x4f8] sm:$0xff] %vm3577_vm0, %v3412_v16  ;;  %v3127_v22 = vadd.f32 %v3126_v0, %v2838_v5  ;;  %v3128_v52 = vpop.f32.mrf.mxu1 }
 0x389   :  { %v2840_v31 = vpop.f32.mrf.mxu0 }
 0x38a   :  { %v3417_v4 = vmax.f32 %v3127_v22, 0.0  ;;  %v2841_v58 = vadd.f32 %v2840_v31, %v8552_v9  ;;  %v3129_v10 = vpop.f32.mrf.mxu1 }
 0x38b   :  { %v2842_v43 = vpop.f32.mrf.mxu0 }
 0x38c   :  { %3738 = vst.msk [vmem:[%s7991_s3 + $0x520] sm:$0xff] %vm3577_vm0, %v3417_v4  ;;  %v3130_v32 = vadd.f32 %v3129_v10, %v2841_v58  ;;  %v3131_v29 = vpop.f32.mrf.mxu1 }
 0x38d   :  { %v2845_v6 = vpop.f32.mrf.mxu0 }
 0x38e   :  { %v3422_v26 = vmax.f32 %v3130_v32, 0.0  ;;  %v2846_v40 = vadd.f32 %v2845_v6, %v8554_v55  ;;  %v3134_v1 = vpop.f32.mrf.mxu1 }
 0x38f   :  { %v2847_v2 = vpop.f32.mrf.mxu0 }
 0x390   :  { %3743 = vst.msk [vmem:[%s7991_s3 + $0x548] sm:$0xff] %vm3577_vm0, %v3422_v26  ;;  %v3135_v9 = vadd.f32 %v3134_v1, %v2846_v40  ;;  %v3136_v21 = vpop.f32.mrf.mxu1 }
 0x391   :  { %v2848_v38 = vpop.f32.mrf.mxu0 }
 0x392   :  { %v3427_v59 = vmax.f32 %v3135_v9, 0.0  ;;  %v2849_v61 = vadd.f32 %v2848_v38, %v8558_v46  ;;  %v3137_v25 = vpop.f32.mrf.mxu1 }
 0x393   :  { %v2850_v48 = vpop.f32.mrf.mxu0 }
 0x394   :  { %3748 = vst.msk [vmem:[%s7991_s3 + $0x570] sm:$0xff] %vm3577_vm0, %v3427_v59  ;;  %v3138_v55 = vadd.f32 %v3137_v25, %v2849_v61  ;;  %v3139_v18 = vpop.f32.mrf.mxu1 }
 0x395   :  { %v2853_v57 = vpop.f32.mrf.mxu0 }
 0x396   :  { %v3432_v60 = vmax.f32 %v3138_v55, 0.0  ;;  %v2854_v34 = vadd.f32 %v2853_v57, %v8560_v12  ;;  %v3142_v20 = vpop.f32.mrf.mxu1 }
 0x397   :  { %v2855_v53 = vpop.f32.mrf.mxu0 }
 0x398   :  { %3753 = vst.msk [vmem:[%s7991_s3 + $0x598] sm:$0xff] %vm3577_vm0, %v3432_v60  ;;  %v3143_v46 = vadd.f32 %v3142_v20, %v2854_v34  ;;  %v3144_v28 = vpop.f32.mrf.mxu1 }
 0x399   :  { %v2856_v39 = vpop.f32.mrf.mxu0 }
 0x39a   :  { %v3437_v44 = vmax.f32 %v3143_v46, 0.0  ;;  %v2857_v17 = vadd.f32 %v2856_v39, %v8564_v14  ;;  %v3145_v8 = vpop.f32.mrf.mxu1 }
 0x39b   :  { %v2858_v62 = vpop.f32.mrf.mxu0 }
 0x39c   :  { %3758 = vst.msk [vmem:[%s7991_s3 + $0x5c0] sm:$0xff] %vm3577_vm0, %v3437_v44  ;;  %v3146_v12 = vadd.f32 %v3145_v8, %v2857_v17  ;;  %v3147_v51 = vpop.f32.mrf.mxu1 }
 0x39d   :  { %v2861_v63 = vpop.f32.mrf.mxu0 }
 0x39e   :  { %v3442_v7 = vmax.f32 %v3146_v12, 0.0  ;;  %v2862_v45 = vadd.f32 %v2861_v63, %v8566_v50  ;;  %v3150_v42 = vpop.f32.mrf.mxu1 }
 0x39f   :  { %v2863_v47 = vpop.f32.mrf.mxu0 }
 0x3a0   :  { %3763 = vst.msk [vmem:[%s7991_s3 + $0x5e8] sm:$0xff] %vm3577_vm0, %v3442_v7  ;;  %v3151_v14 = vadd.f32 %v3150_v42, %v2862_v45  ;;  %v3152_v3 = vpop.f32.mrf.mxu1 }
 0x3a1   :  { %v2864_v16 = vpop.f32.mrf.mxu0 }
 0x3a2   :  { %v3447_v5 = vmax.f32 %v3151_v14, 0.0  ;;  %v2865_v0 = vadd.f32 %v2864_v16, %v8570_v41  ;;  %v3153_v27 = vpop.f32.mrf.mxu1 }
 0x3a3   :  { %v2866_v22 = vpop.f32.mrf.mxu0 }
 0x3a4   :  { %3768 = vst.msk [vmem:[%s7991_s3 + $0x610] sm:$0xff] %vm3577_vm0, %v3447_v5  ;;  %v3154_v50 = vadd.f32 %v3153_v27, %v2865_v0  ;;  %v3155_v52 = vpop.f32.mrf.mxu1 }
 0x3a5   :  { %v2869_v31 = vpop.f32.mrf.mxu0 }
 0x3a6   :  { %v3452_v4 = vmax.f32 %v3154_v50, 0.0  ;;  %v2870_v58 = vadd.f32 %v2869_v31, %v8572_v56  ;;  %v3158_v10 = vpop.f32.mrf.mxu1 }
 0x3a7   :  { %v2871_v43 = vpop.f32.mrf.mxu0 }
 0x3a8   :  { %3773 = vst.msk [vmem:[%s7991_s3 + $0x638] sm:$0xff] %vm3577_vm0, %v3452_v4  ;;  %v3159_v41 = vadd.f32 %v3158_v10, %v2870_v58  ;;  %v3160_v32 = vpop.f32.mrf.mxu1 }
 0x3a9   :  { %v2872_v29 = vpop.f32.mrf.mxu0 }
 0x3aa   :  { %v3457_v6 = vmax.f32 %v3159_v41, 0.0  ;;  %v2873_v26 = vadd.f32 %v2872_v29, %v8576_v35  ;;  %v3161_v40 = vpop.f32.mrf.mxu1 }
 0x3ab   :  { %v2874_v1 = vpop.f32.mrf.mxu0 }
 0x3ac   :  { %3778 = vst.msk [vmem:[%s7991_s3 + $0x660] sm:$0xff] %vm3577_vm0, %v3457_v6  ;;  %v3162_v56 = vadd.f32 %v3161_v40, %v2873_v26  ;;  %v3163_v2 = vpop.f32.mrf.mxu1 }
 0x3ad   :  { %v2877_v9 = vpop.f32.mrf.mxu0 }
 0x3ae   :  { %v3462_v21 = vmax.f32 %v3162_v56, 0.0  ;;  %v2878_v38 = vadd.f32 %v2877_v9, %v8578_v23  ;;  %v3166_v59 = vpop.f32.mrf.mxu1 }
 0x3af   :  { %v2879_v61 = vpop.f32.mrf.mxu0 }
 0x3b0   :  { %3783 = vst.msk [vmem:[%s7991_s3 + $0x688] sm:$0xff] %vm3577_vm0, %v3462_v21  ;;  %v3167_v35 = vadd.f32 %v3166_v59, %v2878_v38  ;;  %v3168_v25 = vpop.f32.mrf.mxu1 }
 0x3b1   :  { %v2880_v48 = vpop.f32.mrf.mxu0 }
 0x3b2   :  { %v3467_v55 = vmax.f32 %v3167_v35, 0.0  ;;  %v2881_v18 = vadd.f32 %v2880_v48, %v8582_v13  ;;  %v3169_v57 = vpop.f32.mrf.mxu1 }
 0x3b3   :  { %v2882_v60 = vpop.f32.mrf.mxu0 }
 0x3b4   :  { %3788 = vst.msk [vmem:[%s7991_s3 + $0x6b0] sm:$0xff] %vm3577_vm0, %v3467_v55  ;;  %v3170_v23 = vadd.f32 %v3169_v57, %v2881_v18  ;;  %v3171_v34 = vpop.f32.mrf.mxu1  ;;  %v8678_v60 = vld [vmem:[#allocation138_spill] sm:$0xff] }
 0x3b5   :  { %v2885_v20 = vpop.f32.mrf.mxu0 }
 0x3b6   :  { %v3472_v53 = vmax.f32 %v3170_v23, 0.0  ;;  %v2886_v46 = vadd.f32 %v2885_v20, %v8584_v54  ;;  %v3174_v28 = vpop.f32.mrf.mxu1 }
 0x3b7   :  { %v2887_v39 = vpop.f32.mrf.mxu0 }
 0x3b8   :  { %3793 = vst.msk [vmem:[%s7991_s3 + $0x6d8] sm:$0xff] %vm3577_vm0, %v3472_v53  ;;  %v3175_v13 = vadd.f32 %v3174_v28, %v2886_v46  ;;  %v3176_v44 = vpop.f32.mrf.mxu1  ;;  %v8679_v39 = vld [vmem:[#allocation139_spill] sm:$0xff] }
 0x3b9   :  { %v2888_v17 = vpop.f32.mrf.mxu0 }
 0x3ba   :  { %v3477_v8 = vmax.f32 %v3175_v13, 0.0  ;;  %v2889_v62 = vadd.f32 %v2888_v17, %v8588_v36  ;;  %v3177_v12 = vpop.f32.mrf.mxu1 }
 0x3bb   :  { %v2890_v51 = vpop.f32.mrf.mxu0 }
 0x3bc   :  { %3798 = vst.msk [vmem:[%s7991_s3 + $0x700] sm:$0xff] %vm3577_vm0, %v3477_v8  ;;  %v3178_v54 = vadd.f32 %v3177_v12, %v2889_v62  ;;  %v3179_v63 = vpop.f32.mrf.mxu1 }
 0x3bd   :  { %v2893_v7 = vpop.f32.mrf.mxu0 }
 0x3be   :  { %v3482_v45 = vmax.f32 %v3178_v54, 0.0  ;;  %v2894_v42 = vadd.f32 %v2893_v7, %v6757_v49  ;;  %v3182_v47 = vpop.f32.mrf.mxu1  ;;  %v8680_v54 = vld [vmem:[#allocation140_spill] sm:$0xff] }
 0x3bf   :  { %v2895_v14 = vpop.f32.mrf.mxu0 }
 0x3c0   :  { %3803 = vst.msk [vmem:[%s7991_s3 + $0x728] sm:$0xff] %vm3577_vm0, %v3482_v45  ;;  %v3183_v36 = vadd.f32 %v3182_v47, %v2894_v42  ;;  %v3184_v3 = vpop.f32.mrf.mxu1 }
 0x3c1   :  { %v2896_v16 = vpop.f32.mrf.mxu0  ;;  %v8681_v3 = vld [vmem:[#allocation141_spill] sm:$0xff] }
 0x3c2   :  { %v3487_v5 = vmax.f32 %v3183_v36, 0.0  ;;  %v2897_v0 = vadd.f32 %v2896_v16, %v8593_v19  ;;  %v3185_v27 = vpop.f32.mrf.mxu1 }
 0x3c3   :  { %v2898_v22 = vpop.f32.mrf.mxu0 }
 0x3c4   :  { %3808 = vst.msk [vmem:[%s7991_s3 + $0x750] sm:$0xff] %vm3577_vm0, %v3487_v5  ;;  %v3186_v49 = vadd.f32 %v3185_v27, %v2897_v0  ;;  %v3187_v50 = vpop.f32.mrf.mxu1 }
 0x3c5   :  { %v2901_v52 = vpop.f32.mrf.mxu0 }
 0x3c6   :  { %v3492_v31 = vmax.f32 %v3186_v49, 0.0  ;;  %v2902_v4 = vadd.f32 %v2901_v52, %v8595_v33  ;;  %v3190_v58 = vpop.f32.mrf.mxu1  ;;  %v8682_v52 = vld [vmem:[#allocation142_spill] sm:$0xff] }
 0x3c7   :  { %v2903_v10 = vpop.f32.mrf.mxu0 }
 0x3c8   :  { %3813 = vst.msk [vmem:[%s7991_s3 + $0x778] sm:$0xff] %vm3577_vm0, %v3492_v31  ;;  %v3191_v19 = vadd.f32 %v3190_v58, %v2902_v4  ;;  %v3192_v43 = vpop.f32.mrf.mxu1 }
 0x3c9   :  { %v2904_v41 = vpop.f32.mrf.mxu0 }
 0x3ca   :  { %v3497_v32 = vmax.f32 %v3191_v19, 0.0  ;;  %v2905_v29 = vadd.f32 %v2904_v41, %v8599_v37  ;;  %v3193_v6 = vpop.f32.mrf.mxu1 }
 0x3cb   :  { %v2906_v26 = vpop.f32.mrf.mxu0 }
 0x3cc   :  { %3818 = vst.msk [vmem:[%s7991_s3 + $0x7a0] sm:$0xff] %vm3577_vm0, %v3497_v32  ;;  %v3194_v33 = vadd.f32 %v3193_v6, %v2905_v29  ;;  %v3195_v40 = vpop.f32.mrf.mxu1  ;;  %v8683_v32 = vld [vmem:[#allocation143_spill] sm:$0xff] }
 0x3cd   :  { %v2909_v1 = vpop.f32.mrf.mxu0 }
 0x3ce   :  { %v3502_v56 = vmax.f32 %v3194_v33, 0.0  ;;  %v2910_v2 = vadd.f32 %v2909_v1, %v8601_v11  ;;  %v3198_v9 = vpop.f32.mrf.mxu1 }
 0x3cf   :  { %v2911_v21 = vpop.f32.mrf.mxu0 }
 0x3d0   :  { %3823 = vst.msk [vmem:[%s7991_s3 + $0x7c8] sm:$0xff] %vm3577_vm0, %v3502_v56  ;;  %v3199_v37 = vadd.f32 %v3198_v9, %v2910_v2  ;;  %v3200_v38 = vpop.f32.mrf.mxu1  ;;  %v8684_v2 = vld [vmem:[#allocation144_spill] sm:$0xff] }
 0x3d1   :  { %v2912_v59 = vpop.f32.mrf.mxu0 }
 0x3d2   :  { %v3507_v61 = vmax.f32 %v3199_v37, 0.0  ;;  %v2913_v35 = vadd.f32 %v2912_v59, %v8605_v30  ;;  %v3201_v25 = vpop.f32.mrf.mxu1 }
 0x3d3   :  { %v2914_v48 = vpop.f32.mrf.mxu0 }
 0x3d4   :  { %3828 = vst.msk [vmem:[%s7991_s3 + $0x7f0] sm:$0xff] %vm3577_vm0, %v3507_v61  ;;  %v3202_v11 = vadd.f32 %v3201_v25, %v2913_v35  ;;  %v3203_v55 = vpop.f32.mrf.mxu1  ;;  %v8685_v25 = vld [vmem:[#allocation145_spill] sm:$0xff] }
 0x3d5   :  { %v2917_v18 = vpop.f32.mrf.mxu0 }
 0x3d6   :  { %v3512_v57 = vmax.f32 %v3202_v11, 0.0  ;;  %v2918_v23 = vadd.f32 %v2917_v18, %v8678_v60  ;;  %v3206_v34 = vpop.f32.mrf.mxu1 }
 0x3d7   :  { %v2919_v20 = vpop.f32.mrf.mxu0 }
 0x3d8   :  { %3833 = vst.msk [vmem:[%s7991_s3 + $0x818] sm:$0xff] %vm3577_vm0, %v3512_v57  ;;  %v3207_v30 = vadd.f32 %v3206_v34, %v2918_v23  ;;  %v3208_v53 = vpop.f32.mrf.mxu1  ;;  %v8686_v34 = vld [vmem:[#allocation146_spill] sm:$0xff] }
 0x3d9   :  { %v2920_v46 = vpop.f32.mrf.mxu0 }
 0x3da   :  { %v3517_v28 = vmax.f32 %v3207_v30, 0.0  ;;  %v2921_v13 = vadd.f32 %v2920_v46, %v8679_v39  ;;  %v3209_v44 = vpop.f32.mrf.mxu1 }
 0x3db   :  { %v2922_v17 = vpop.f32.mrf.mxu0 }
 0x3dc   :  { %3838 = vst.msk [vmem:[%s7991_s3 + $0x840] sm:$0xff] %vm3577_vm0, %v3517_v28  ;;  %v3210_v8 = vadd.f32 %v3209_v44, %v2921_v13  ;;  %v3211_v62 = vpop.f32.mrf.mxu1 }
 0x3dd   :  { %v2925_v12 = vpop.f32.mrf.mxu0 }
 0x3de   :  { %v3522_v51 = vmax.f32 %v3210_v8, 0.0  ;;  %v2926_v63 = vadd.f32 %v2925_v12, %v8680_v54  ;;  %v3214_v7 = vpop.f32.mrf.mxu1 }
 0x3df   :  { %v2927_v45 = vpop.f32.mrf.mxu0 }
 0x3e0   :  { %3843 = vst.msk [vmem:[%s7991_s3 + $0x868] sm:$0xff] %vm3577_vm0, %v3522_v51  ;;  %v3215_v42 = vadd.f32 %v3214_v7, %v2926_v63  ;;  %v3216_v47 = vpop.f32.mrf.mxu1  ;;  %v8687_v63 = vld [vmem:[#allocation148_spill] sm:$0xff] }
 0x3e1   :  { %v2928_v14 = vpop.f32.mrf.mxu0 }
 0x3e2   :  { %v3527_v36 = vmax.f32 %v3215_v42, 0.0  ;;  %v2929_v16 = vadd.f32 %v2928_v14, %v8681_v3  ;;  %v3217_v5 = vpop.f32.mrf.mxu1 }
 0x3e3   :  { %v2930_v0 = vpop.f32.mrf.mxu0 }
 0x3e4   :  { %3848 = vst.msk [vmem:[%s7991_s3 + $0x890] sm:$0xff] %vm3577_vm0, %v3527_v36  ;;  %v3218_v27 = vadd.f32 %v3217_v5, %v2929_v16  ;;  %v3219_v22 = vpop.f32.mrf.mxu1 }
 0x3e5   :  { %v2933_v49 = vpop.f32.mrf.mxu0 }
 0x3e6   :  { %v3532_v50 = vmax.f32 %v3218_v27, 0.0  ;;  %v2934_v31 = vadd.f32 %v2933_v49, %v8682_v52  ;;  %v3222_v4 = vpop.f32.mrf.mxu1 }
 0x3e7   :  { %v2935_v58 = vpop.f32.mrf.mxu0 }
 0x3e8   :  { %3853 = vst.msk [vmem:[%s7991_s3 + $0x8b8] sm:$0xff] %vm3577_vm0, %v3532_v50  ;;  %v3223_v10 = vadd.f32 %v3222_v4, %v2934_v31  ;;  %v3224_v19 = vpop.f32.mrf.mxu1 }
 0x3e9   :  { %v2936_v43 = vpop.f32.mrf.mxu0 }
 0x3ea   :  { %v3537_v41 = vmax.f32 %v3223_v10, 0.0  ;;  %v2937_v29 = vadd.f32 %v2936_v43, %v8683_v32  ;;  %v3225_v6 = vpop.f32.mrf.mxu1 }
 0x3eb   :  { %v2938_v26 = vpop.f32.mrf.mxu0 }
 0x3ec   :  { %3858 = vst.msk [vmem:[%s7991_s3 + $0x8e0] sm:$0xff] %vm3577_vm0, %v3537_v41  ;;  %v3226_v33 = vadd.f32 %v3225_v6, %v2937_v29  ;;  %v3227_v40 = vpop.f32.mrf.mxu1 }
 0x3ed   :  { %v2941_v1 = vpop.f32.mrf.mxu0 }
 0x3ee   :  { %v3542_v56 = vmax.f32 %v3226_v33, 0.0  ;;  %v2942_v9 = vadd.f32 %v2941_v1, %v8684_v2  ;;  %v3230_v21 = vpop.f32.mrf.mxu1 }
 0x3ef   :  { %v2943_v37 = vpop.f32.mrf.mxu0 }
 0x3f0   :  { %3863 = vst.msk [vmem:[%s7991_s3 + $0x908] sm:$0xff] %vm3577_vm0, %v3542_v56  ;;  %v3231_v38 = vadd.f32 %v3230_v21, %v2942_v9  ;;  %v3232_v59 = vpop.f32.mrf.mxu1 }
 0x3f1   :  { %v2944_v61 = vpop.f32.mrf.mxu0 }
 0x3f2   :  { %v3547_v35 = vmax.f32 %v3231_v38, 0.0  ;;  %v2945_v48 = vadd.f32 %v2944_v61, %v8685_v25  ;;  %v3233_v11 = vpop.f32.mrf.mxu1 }
 0x3f3   :  { %v2946_v55 = vpop.f32.mrf.mxu0 }
 0x3f4   :  { %3868 = vst.msk [vmem:[%s7991_s3 + $0x930] sm:$0xff] %vm3577_vm0, %v3547_v35  ;;  %v3234_v18 = vadd.f32 %v3233_v11, %v2945_v48  ;;  %v3235_v57 = vpop.f32.mrf.mxu1 }
 0x3f5   :  { %v2949_v60 = vpop.f32.mrf.mxu0 }
 0x3f6   :  { %v3552_v23 = vmax.f32 %v3234_v18, 0.0  ;;  %v2950_v20 = vadd.f32 %v2949_v60, %v8686_v34  ;;  %v3238_v30 = vpop.f32.mrf.mxu1 }
 0x3f7   :  { %v2951_v53 = vpop.f32.mrf.mxu0 }
 0x3f8   :  { %3873 = vst.msk [vmem:[%s7991_s3 + $0x958] sm:$0xff] %vm3577_vm0, %v3552_v23  ;;  %v3239_v46 = vadd.f32 %v3238_v30, %v2950_v20  ;;  %v3240_v28 = vpop.f32.mrf.mxu1 }
 0x3f9   :  { %v2952_v39 = vpop.f32.mrf.mxu0 }
 0x3fa   :  { %v3557_v13 = vmax.f32 %v3239_v46, 0.0  ;;  %v2953_v44 = vadd.f32 %v2952_v39, %v8635_v24  ;;  %v3241_v17 = vpop.f32.mrf.mxu1 }
 0x3fb   :  { %v2954_v8 = vpop.f32.mrf.mxu0 }
 0x3fc   :  { %3878 = vst.msk [vmem:[%s7991_s3 + $0x980] sm:$0xff] %vm3577_vm0, %v3557_v13  ;;  %v3242_v62 = vadd.f32 %v3241_v17, %v2953_v44  ;;  %v3243_v12 = vpop.f32.mrf.mxu1 }
 0x3fd   :  { %v2957_v51 = vpop.f32.mrf.mxu0 }
 0x3fe   :  { %v3562_v54 = vmax.f32 %v3242_v62, 0.0  ;;  %v2958_v7 = vadd.f32 %v2957_v51, %v8687_v63  ;;  %v3246_v45 = vpop.f32.mrf.mxu1 }
 0x3ff   :  { %v2959_v42 = vpop.f32.mrf.mxu0 }
 0x400   :  { %3883 = vst.msk [vmem:[%s7991_s3 + $0x9a8] sm:$0xff] %vm3577_vm0, %v3562_v54  ;;  %v3247_v24 = vadd.f32 %v3246_v45, %v2958_v7  ;;  %v3248_v47 = vpop.f32.mrf.mxu1 }
 0x401   :  { %v2960_v14 = vpop.f32.mrf.mxu0 }
 0x402   :  { %v3567_v36 = vmax.f32 %v3247_v24, 0.0  ;;  %v2961_v3 = vadd.f32 %v2960_v14, %v6974_v15  ;;  %v3249_v16 = vpop.f32.mrf.mxu1 }
 0x403   :  { %v2962_v5 = vpop.f32.mrf.mxu0 }
 0x404   :  { %3888 = vst.msk [vmem:[%s7991_s3 + $0x9d0] sm:$0xff] %vm3577_vm0, %v3567_v36  ;;  %v3250_v0 = vadd.f32 %v3249_v16, %v2961_v3  ;;  %v3251_v27 = vpop.f32.mrf.mxu1 }
 0x406   :  { %v3572_v22 = vmax.f32 %v3250_v0, 0.0 }
 0x408   :  { %3893 = vst.msk [vmem:[%s7991_s3 + $0x9f8] sm:$0xff] %vm3577_vm0, %v3572_v22 }

</bundles_post_ra>
